<compile_context>
chip_gen: v7x
topology: tpu7x:2x2x1
jax: 0.10.0
libtpu: 0.0.40
codegen_flags: <defaults>
</compile_context>

<pallas_src>
import functools

import jax
import jax.numpy as jnp
from jax.experimental import pallas as pl
from jax.experimental.pallas import tpu as pltpu


# ----------------------------------------------------------------------------
# Pallas kernels: bf16 (M,K)@(K,N) -> f32, optional fused bias + ReLU,
# lane-dense (un-padded N) output store.
# ----------------------------------------------------------------------------
def _round_up(x, m):
    return (x + m - 1) // m * m


def _mm_bias_kernel(a_ref, w_ref, b_ref, o_ref, *, relu, out_n):
    acc = jnp.dot(a_ref[...], w_ref[...], preferred_element_type=jnp.float32)
    acc = acc + b_ref[...]
    if relu:
        acc = jnp.maximum(acc, 0.0)
    if out_n != acc.shape[1]:
        acc = acc[:, :out_n]           # store only the real columns (lane-dense HBM)
    o_ref[...] = acc


def _mm_kernel(a_ref, w_ref, o_ref, *, relu, out_n):
    acc = jnp.dot(a_ref[...], w_ref[...], preferred_element_type=jnp.float32)
    if relu:
        acc = jnp.maximum(acc, 0.0)
    if out_n != acc.shape[1]:
        acc = acc[:, :out_n]
    o_ref[...] = acc


def pallas_matmul(a, w_p, bias_row, out_n, *, relu, tm=None):
    """y = a @ w_p[:K, :out_n] (+ bias)(+ ReLU).

    a:        (M, K) float array (cast to bf16 inside)
    w_p:      (Kp, Np) bf16 pre-packed weight, Kp = roundup(K,16), Np = roundup(N,128)
    bias_row: (1, Np) f32 or None
    returns   (M, out_n) f32
    """
    M, K = a.shape
    Kp, Np = w_p.shape
    assert K <= Kp and out_n <= Np

    if tm is None:
        if M >= 2048:
            tm = 1024
        elif M > 512:
            tm = 512
        else:
            tm = max(16, _round_up(M, 16))
    Mp = _round_up(M, tm)

    a_p = jnp.pad(a.astype(jnp.bfloat16), ((0, Mp - M), (0, Kp - K)))

    flops = 2 * Mp * Kp * Np
    bytes_accessed = 2 * Mp * Kp + 2 * Kp * Np + 4 * Mp * out_n
    if bias_row is not None:
        bytes_accessed += 4 * Np
    cost = pl.CostEstimate(flops=flops, transcendentals=0,
                           bytes_accessed=bytes_accessed)

    grid = (Mp // tm,)
    out_shape = jax.ShapeDtypeStruct((Mp, out_n), jnp.float32)
    a_spec = pl.BlockSpec((tm, Kp), lambda i: (i, 0))     # A row-tile
    w_spec = pl.BlockSpec((Kp, Np), lambda i: (0, 0))     # full weight, VMEM-resident
    o_spec = pl.BlockSpec((tm, out_n), lambda i: (i, 0))  # lane-dense output tile
    cparams = pltpu.CompilerParams(dimension_semantics=("parallel",))

    if bias_row is not None:
        out = pl.pallas_call(
            functools.partial(_mm_bias_kernel, relu=relu, out_n=out_n),
            out_shape=out_shape,
            grid_spec=pltpu.PrefetchScalarGridSpec(
                num_scalar_prefetch=0, grid=grid,
                in_specs=[a_spec, w_spec, pl.BlockSpec((1, Np), lambda i: (0, 0))],
                out_specs=o_spec),
            compiler_params=cparams,
            cost_estimate=cost,
        )(a_p, w_p, bias_row)
    else:
        out = pl.pallas_call(
            functools.partial(_mm_kernel, relu=relu, out_n=out_n),
            out_shape=out_shape,
            grid_spec=pltpu.PrefetchScalarGridSpec(
                num_scalar_prefetch=0, grid=grid,
                in_specs=[a_spec, w_spec],
                out_specs=o_spec),
            compiler_params=cparams,
            cost_estimate=cost,
        )(a_p, w_p)

    return out[:M] if Mp != M else out


# ----------------------------------------------------------------------------
# One-time weight packing into matmul-ready (bf16, padded) matrices
# ----------------------------------------------------------------------------
def _pack_matmul_weight(wmat, bias_vec):
    K, N = wmat.shape
    Kp = max(16, _round_up(K, 16))
    Np = _round_up(N, 128)
    w_p = jnp.pad(wmat.astype(jnp.bfloat16), ((0, Kp - K), (0, Np - N)))
    b_row = None
    if bias_vec is not None:
        b_row = jnp.pad(bias_vec.astype(jnp.float32)[None, :], ((0, 0), (0, Np - N)))
    return {"w": w_p, "b": b_row, "n": N}


def pack_conv(w, b, stride):
    """w: (Cout, Cin, KH, KW) PyTorch Conv2d layout."""
    Cout, Cin, KH, KW = w.shape
    wmat = jnp.transpose(w, (2, 3, 1, 0)).reshape(KH * KW * Cin, Cout)
    d = _pack_matmul_weight(wmat, b)
    d.update(kind="conv", kh=KH, kw=KW, stride=tuple(stride))
    return d


def pack_convT(w, b, stride):
    """w: (Cin, Cout, KH, KW) PyTorch ConvTranspose2d layout."""
    Cin, Cout, KH, KW = w.shape
    wmat = jnp.transpose(w, (0, 2, 3, 1)).reshape(Cin, KH * KW * Cout)
    d = _pack_matmul_weight(wmat, None)
    d.update(kind="convT", kh=KH, kw=KW, cout=Cout, stride=tuple(stride),
             bias=b.astype(jnp.float32))
    return d


def pack_linear(w, b):
    """w: (out, in) PyTorch Linear layout."""
    return _pack_matmul_weight(w.T, b)


def pack_params(params):
    return {
        "enc1": pack_conv(params["enc1_w"], params["enc1_b"], (2, 2)),
        "enc2": pack_conv(params["enc2_w"], params["enc2_b"], (2, 2)),
        "enc3": pack_conv(params["enc3_w"], params["enc3_b"], (1, 1)),
        "lin":  pack_linear(params["lin_w"], params["lin_b"]),
        "dec1": pack_convT(params["dec1_w"], params["dec1_b"], (1, 1)),
        "dec2": pack_convT(params["dec2_w"], params["dec2_b"], (2, 2)),
        "dec3": pack_convT(params["dec3_w"], params["dec3_b"], (2, 2)),
        "up1":  pack_convT(params["up1_w"], params["up1_b"], (3, 4)),
        "up2":  pack_convT(params["up2_w"], params["up2_b"], (1, 2)),
        "up3":  pack_conv(params["up3_w"], params["up3_b"], (1, 1)),
    }


# ----------------------------------------------------------------------------
# Conv / ConvTranspose / Linear built on the Pallas matmul kernel (NHWC layout)
# ----------------------------------------------------------------------------
def conv2d(x, layer, *, relu):
    """x: (B, H, W, Cin) NHWC; VALID padding; returns (B, OH, OW, Cout) NHWC."""
    B, H, W, C = x.shape
    KH, KW = layer["kh"], layer["kw"]
    sh, sw = layer["stride"]
    OH = (H - KH) // sh + 1
    OW = (W - KW) // sw + 1
    xb = x.astype(jnp.bfloat16)                      # bf16 before im2col: half the glue bytes
    cols = [xb[:, i:i + sh * (OH - 1) + 1:sh, j:j + sw * (OW - 1) + 1:sw, :]
            for i in range(KH) for j in range(KW)]
    a = jnp.stack(cols, axis=3).reshape(B * OH * OW, KH * KW * C)
    y = pallas_matmul(a, layer["w"], layer["b"], layer["n"], relu=relu)
    return y.reshape(B, OH, OW, layer["n"])


def conv_transpose2d(x, layer, *, relu):
    """Sub-pixel (per-tap) ConvTranspose2d, padding=0, output_padding=0.

    x: (B, H, W, Cin) NHWC.  One small matmul on the un-dilated input produces all
    KH*KW taps; taps are interleaved into the output with lax.pad (interior padding)
    and summed — no zero-dilated im2col, no scatter.
    """
    B, H, W, C = x.shape
    KH, KW, Cout = layer["kh"], layer["kw"], layer["cout"]
    sh, sw = layer["stride"]
    OH = (H - 1) * sh + KH
    OW = (W - 1) * sw + KW

    a = x.reshape(B * H * W, C)
    taps = pallas_matmul(a, layer["w"], None, layer["n"], relu=False)
    taps = taps.reshape(B, H, W, KH, KW, Cout)

    zero = jnp.array(0.0, taps.dtype)
    out = None
    for ky in range(KH):
        for kx in range(KW):
            t = jax.lax.pad(
                taps[:, :, :, ky, kx, :], zero,
                ((0, 0, 0),
                 (ky, KH - 1 - ky, sh - 1),
                 (kx, KW - 1 - kx, sw - 1),
                 (0, 0, 0)))
            out = t if out is None else out + t
    out = out + layer["bias"]            # bias once per output pixel (broadcast over C)
    if relu:
        out = jnp.maximum(out, 0.0)
    return out


# ----------------------------------------------------------------------------
# Parameters (deterministic, synthetic init — shapes exactly as the module's __init__)
# ----------------------------------------------------------------------------
def init_params(key, in_channels=2, output_size=32):
    ks = jax.random.split(key, 20)

    def w(k, shape, scale=0.1):
        return scale * jax.random.normal(k, shape, jnp.float32)

    return {
        # encoder (small branch: kernels (5,5),(3,3),(3,3), strides (2,2),(2,2),(1,1))
        "enc1_w": w(ks[0], (32, in_channels, 5, 5)), "enc1_b": w(ks[1], (32,)),
        "enc2_w": w(ks[2], (64, 32, 3, 3)),          "enc2_b": w(ks[3], (64,)),
        "enc3_w": w(ks[4], (32, 64, 3, 3)),          "enc3_b": w(ks[5], (32,)),
        # cnn head: Linear(32 * 1 * 1 -> output_size)
        "lin_w": w(ks[6], (output_size, 32)),        "lin_b": w(ks[7], (output_size,)),
        # decoder
        "dec1_w": w(ks[8], (32, 64, 3, 3)),          "dec1_b": w(ks[9], (64,)),
        "dec2_w": w(ks[10], (64, 32, 3, 3)),         "dec2_b": w(ks[11], (32,)),
        "dec3_w": w(ks[12], (32, 2, 5, 6)),          "dec3_b": w(ks[13], (2,)),
        # upsampling
        "up1_w": w(ks[14], (2, 32, 5, 2)),           "up1_b": w(ks[15], (32,)),
        "up2_w": w(ks[16], (32, 32, 4, 2)),          "up2_b": w(ks[17], (32,)),
        "up3_w": w(ks[18], (2, 32, 1, 5)),           "up3_b": w(ks[19], (2,)),
    }


# ----------------------------------------------------------------------------
# Forward pass (Pallas-backed, NHWC internally)
# ----------------------------------------------------------------------------
def audio_autoencoder_forward(packed, spectrogram, aux=False):
    # observations['spectrogram'] is NHWC; PyTorch permutes to NCHW internally, we keep
    # NHWC throughout (mathematically identical) and only convert where the module's
    # output layout demands it.
    x = spectrogram

    # encoder
    e = conv2d(x, packed["enc1"], relu=True)
    e = conv2d(e, packed["enc2"], relu=True)
    e = conv2d(e, packed["enc3"], relu=False)

    dec = None
    if aux:
        # PyTorch decoder starts with nn.ReLU(inplace=True), mutating encoder_output;
        # the cnn Linear therefore sees relu(encoder_output) when aux=True.
        e = jnp.maximum(e, 0.0)
        d = conv_transpose2d(e, packed["dec1"], relu=True)
        d = conv_transpose2d(d, packed["dec2"], relu=True)
        d = conv_transpose2d(d, packed["dec3"], relu=True)
        dec = d  # NHWC == decoder_output.permute(0, 2, 3, 1)

    # cnn head: Flatten (on NCHW, channel-major) -> Linear -> ReLU
    B = e.shape[0]
    e_flat = jnp.transpose(e, (0, 3, 1, 2)).reshape(B, -1)   # (B,1,1,32) -> (B,32)
    lin = packed["lin"]
    emb = pallas_matmul(e_flat, lin["w"], lin["b"], lin["n"], relu=True)

    # upsampling branch operates on the raw input
    u = conv_transpose2d(x, packed["up1"], relu=True)
    u = conv_transpose2d(u, packed["up2"], relu=True)
    u = conv2d(u, packed["up3"], relu=True)
    u = jnp.transpose(u, (0, 3, 1, 2))   # returned NCHW, like the nn.Sequential output

    if aux:
        return emb, u, dec
    return emb, u


def make_forward(packed, aux=False):
    @jax.jit
    def fwd(spectrogram):
        return audio_autoencoder_forward(packed, spectrogram, aux=aux)
    return fwd


# ----------------------------------------------------------------------------
# Pure-JAX reference (lax convs).  dtype=bfloat16 mirrors the kernel's MXU operand
# precision (f32 accumulation); dtype=float32 gives a full-precision sanity check.
# ----------------------------------------------------------------------------
def _ref_conv(x, w, b, stride, dtype):
    prec = jax.lax.Precision.HIGHEST if dtype == jnp.float32 else None
    y = jax.lax.conv_general_dilated(
        x.astype(dtype), w.astype(dtype), window_strides=stride, padding="VALID",
        dimension_numbers=("NCHW", "OIHW", "NCHW"),
        preferred_element_type=jnp.float32, precision=prec)
    return y + b[None, :, None, None]


def _ref_convT(x, w, b, stride, dtype):
    prec = jax.lax.Precision.HIGHEST if dtype == jnp.float32 else None
    Cin, Cout, KH, KW = w.shape
    w_conv = jnp.flip(w, axis=(2, 3)).transpose(1, 0, 2, 3)
    y = jax.lax.conv_general_dilated(
        x.astype(dtype), w_conv.astype(dtype), window_strides=(1, 1),
        padding=[(KH - 1, KH - 1), (KW - 1, KW - 1)], lhs_dilation=stride,
        dimension_numbers=("NCHW", "OIHW", "NCHW"),
        preferred_element_type=jnp.float32, precision=prec)
    return y + b[None, :, None, None]


def ref_forward(params, spectrogram, aux=False, dtype=jnp.bfloat16):
    relu = lambda t: jnp.maximum(t, 0.0)
    x = jnp.transpose(spectrogram, (0, 3, 1, 2))
    e = relu(_ref_conv(x, params["enc1_w"], params["enc1_b"], (2, 2), dtype))
    e = relu(_ref_conv(e, params["enc2_w"], params["enc2_b"], (2, 2), dtype))
    e = _ref_conv(e, params["enc3_w"], params["enc3_b"], (1, 1), dtype)
    dec = None
    if aux:
        e = relu(e)  # inplace ReLU semantics
        d = relu(_ref_convT(e, params["dec1_w"], params["dec1_b"], (1, 1), dtype))
        d = relu(_ref_convT(d, params["dec2_w"], params["dec2_b"], (2, 2), dtype))
        d = relu(_ref_convT(d, params["dec3_w"], params["dec3_b"], (2, 2), dtype))
        dec = jnp.transpose(d, (0, 2, 3, 1))
    B = e.shape[0]
    emb = relu(jnp.dot(e.reshape(B, -1).astype(dtype), params["lin_w"].T.astype(dtype),
                       preferred_element_type=jnp.float32) + params["lin_b"])
    u = relu(_ref_convT(x, params["up1_w"], params["up1_b"], (3, 4), dtype))
    u = relu(_ref_convT(u, params["up2_w"], params["up2_b"], (1, 2), dtype))
    u = relu(_ref_conv(u, params["up3_w"], params["up3_b"], (1, 1), dtype))
    if aux:
        return emb, u, dec
    return emb, u


# ----------------------------------------------------------------------------
if __name__ == "__main__":
    key = jax.random.PRNGKey(0)
    pkey, xkey = jax.random.split(key)

    B, H, W, C = 2, 20, 20, 2          # spectrogram (H,W < 30 -> small branch)
    output_size = 32
    params = init_params(pkey, in_channels=C, output_size=output_size)
    packed = pack_params(params)
    spectrogram = jax.random.normal(xkey, (B, H, W, C), jnp.float32)

    fwd = make_forward(packed, aux=False)
    fwd_aux = make_forward(packed, aux=True)

    emb, ups = fwd(spectrogram)
    emb_a, ups_a, dec_a = fwd_aux(spectrogram)
    jax.block_until_ready((emb, ups, emb_a, ups_a, dec_a))

    # shape checks (match the PyTorch module with this observation space)
    assert emb.shape == (B, output_size), emb.shape
    assert ups.shape == (B, 2, 65, 152), ups.shape
    assert dec_a.shape == (B, 17, 18, 2), dec_a.shape

    # numeric check vs a reference using the same operand precision (bf16 MXU, f32 acc)
    r_emb, r_ups = ref_forward(params, spectrogram, aux=False)
    r_emb_a, r_ups_a, r_dec_a = ref_forward(params, spectrogram, aux=True)
    for got, want in [(emb, r_emb), (ups, r_ups),
                      (emb_a, r_emb_a), (ups_a, r_ups_a), (dec_a, r_dec_a)]:
        assert jnp.allclose(got, want, rtol=1e-2, atol=1e-2), "mismatch vs bf16 reference"

    # loose sanity check vs a full-f32 reference (bounds the bf16 operand error)
    f_emb, f_ups = ref_forward(params, spectrogram, aux=False, dtype=jnp.float32)
    assert jnp.allclose(emb, f_emb, rtol=1e-1, atol=1e-1), "mismatch vs f32 reference"
    assert jnp.allclose(ups, f_ups, rtol=1e-1, atol=1e-1), "mismatch vs f32 reference"

    print("KERNEL_OK")
</pallas_src>

<mosaic_0001>
module attributes {stable_mosaic.version = 11 : i64} {
  func.func @_mm_bias_kernel(%arg0: i32, %arg1: memref<128x64xbf16, #tpu.memory_space<vmem>>, %arg2: memref<64x128xbf16, #tpu.memory_space<vmem>>, %arg3: memref<1x128xf32, #tpu.memory_space<vmem>>, %arg4: memref<128x32xf32, #tpu.memory_space<vmem>>) attributes {dimension_semantics = [#tpu.dimension_semantics<parallel>], iteration_bounds = array<i64: 1>, scalar_prefetch = 0 : i64, scratch_operands = 0 : i64, tpu.core_type = #tpu.core_type<tc>, window_params = [{transform_indices = @transform_0, window_bounds = array<i64: 128, 64>}, {pipeline_mode = #tpu.pipeline_mode<synchronous>, transform_indices = @transform_1, window_bounds = array<i64: 64, 128>}, {pipeline_mode = #tpu.pipeline_mode<synchronous>, transform_indices = @transform_2, window_bounds = array<i64: 1, 128>}, {transform_indices = @transform_3, window_bounds = array<i64: 128, 32>}]} {
    %c0 = arith.constant 0 : index
    %c0_0 = arith.constant 0 : index
    %0 = vector.load %arg1[%c0, %c0_0] : memref<128x64xbf16, #tpu.memory_space<vmem>>, vector<128x64xbf16>
    %c0_1 = arith.constant 0 : index
    %c0_2 = arith.constant 0 : index
    %1 = vector.load %arg2[%c0_1, %c0_2] : memref<64x128xbf16, #tpu.memory_space<vmem>>, vector<64x128xbf16>
    %cst = arith.constant dense<0.000000e+00> : vector<128x128xf32>
    %2 = tpu.matmul %0, %1, %cst {dimension_numbers = #tpu.dot_dimension_numbers<[1], [0], [0], [1], [0, 0, 1, 1], [], []>} : vector<128x64xbf16>, vector<64x128xbf16>, vector<128x128xf32> -> vector<128x128xf32>
    %c0_3 = arith.constant 0 : index
    %c0_4 = arith.constant 0 : index
    %3 = vector.load %arg3[%c0_3, %c0_4] : memref<1x128xf32, #tpu.memory_space<vmem>>, vector<1x128xf32>
    %4 = vector.broadcast %3 : vector<1x128xf32> to vector<128x128xf32>
    %5 = arith.addf %2, %4 : vector<128x128xf32>
    %cst_5 = arith.constant 0.000000e+00 : f32
    %6 = vector.broadcast %cst_5 : f32 to vector<128x128xf32>
    %7 = arith.maximumf %5, %6 : vector<128x128xf32>
    %8 = vector.extract_strided_slice %7 {offsets = [0, 0], sizes = [128, 32], strides = [1, 1]} : vector<128x128xf32> to vector<128x32xf32>
    %c0_6 = arith.constant 0 : index
    %c0_7 = arith.constant 0 : index
    %9 = vector.load %arg4[%c0_6, %c0_7] : memref<128x32xf32, #tpu.memory_space<vmem>>, vector<128x32xf32>
    tpu.vector_store %arg4[%c0_6, %c0_7], %8 {strides = array<i32>} : memref<128x32xf32, #tpu.memory_space<vmem>>, vector<128x32xf32>,
    return
  }
  func.func @transform_0(%arg0: i32) -> (i32, i32) {
    %c0_i32 = arith.constant 0 : i32
    %c0_i32_0 = arith.constant 0 : i32
    return %arg0, %c0_i32 : i32, i32
  }
  func.func @transform_1(%arg0: i32) -> (i32, i32) {
    %c0_i32 = arith.constant 0 : i32
    %c0_i32_0 = arith.constant 0 : i32
    %c0_i32_1 = arith.constant 0 : i32
    return %c0_i32, %c0_i32_0 : i32, i32
  }
  func.func @transform_2(%arg0: i32) -> (i32, i32) {
    %c0_i32 = arith.constant 0 : i32
    %c0_i32_0 = arith.constant 0 : i32
    %c0_i32_1 = arith.constant 0 : i32
    return %c0_i32, %c0_i32_0 : i32, i32
  }
  func.func @transform_3(%arg0: i32) -> (i32, i32) {
    %c0_i32 = arith.constant 0 : i32
    %c0_i32_0 = arith.constant 0 : i32
    return %arg0, %c0_i32 : i32, i32
  }
}

module attributes {stable_mosaic.version = 11 : i64} {
  func.func @_mm_bias_kernel(%arg0: i32, %arg1: memref<32x288xbf16, #tpu.memory_space<vmem>>, %arg2: memref<288x128xbf16, #tpu.memory_space<vmem>>, %arg3: memref<1x128xf32, #tpu.memory_space<vmem>>, %arg4: memref<32x64xf32, #tpu.memory_space<vmem>>) attributes {dimension_semantics = [#tpu.dimension_semantics<parallel>], iteration_bounds = array<i64: 1>, scalar_prefetch = 0 : i64, scratch_operands = 0 : i64, tpu.core_type = #tpu.core_type<tc>, window_params = [{transform_indices = @transform_0, window_bounds = array<i64: 32, 288>}, {pipeline_mode = #tpu.pipeline_mode<synchronous>, transform_indices = @transform_1, window_bounds = array<i64: 288, 128>}, {pipeline_mode = #tpu.pipeline_mode<synchronous>, transform_indices = @transform_2, window_bounds = array<i64: 1, 128>}, {transform_indices = @transform_3, window_bounds = array<i64: 32, 64>}]} {
    %c0 = arith.constant 0 : index
    %c0_0 = arith.constant 0 : index
    %0 = vector.load %arg1[%c0, %c0_0] : memref<32x288xbf16, #tpu.memory_space<vmem>>, vector<32x288xbf16>
    %c0_1 = arith.constant 0 : index
    %c0_2 = arith.constant 0 : index
    %1 = vector.load %arg2[%c0_1, %c0_2] : memref<288x128xbf16, #tpu.memory_space<vmem>>, vector<288x128xbf16>
    %cst = arith.constant dense<0.000000e+00> : vector<32x128xf32>
    %2 = tpu.matmul %0, %1, %cst {dimension_numbers = #tpu.dot_dimension_numbers<[1], [0], [0], [1], [0, 0, 1, 1], [], []>} : vector<32x288xbf16>, vector<288x128xbf16>, vector<32x128xf32> -> vector<32x128xf32>
    %c0_3 = arith.constant 0 : index
    %c0_4 = arith.constant 0 : index
    %3 = vector.load %arg3[%c0_3, %c0_4] : memref<1x128xf32, #tpu.memory_space<vmem>>, vector<1x128xf32>
    %4 = vector.broadcast %3 : vector<1x128xf32> to vector<32x128xf32>
    %5 = arith.addf %2, %4 : vector<32x128xf32>
    %cst_5 = arith.constant 0.000000e+00 : f32
    %6 = vector.broadcast %cst_5 : f32 to vector<32x128xf32>
    %7 = arith.maximumf %5, %6 : vector<32x128xf32>
    %8 = vector.extract_strided_slice %7 {offsets = [0, 0], sizes = [32, 64], strides = [1, 1]} : vector<32x128xf32> to vector<32x64xf32>
    %c0_6 = arith.constant 0 : index
    %c0_7 = arith.constant 0 : index
    %9 = vector.load %arg4[%c0_6, %c0_7] : memref<32x64xf32, #tpu.memory_space<vmem>>, vector<32x64xf32>
    tpu.vector_store %arg4[%c0_6, %c0_7], %8 {strides = array<i32>} : memref<32x64xf32, #tpu.memory_space<vmem>>, vector<32x64xf32>,
    return
  }
  func.func @transform_0(%arg0: i32) -> (i32, i32) {
    %c0_i32 = arith.constant 0 : i32
    %c0_i32_0 = arith.constant 0 : i32
    return %arg0, %c0_i32 : i32, i32
  }
  func.func @transform_1(%arg0: i32) -> (i32, i32) {
    %c0_i32 = arith.constant 0 : i32
    %c0_i32_0 = arith.constant 0 : i32
    %c0_i32_1 = arith.constant 0 : i32
    return %c0_i32, %c0_i32_0 : i32, i32
  }
  func.func @transform_2(%arg0: i32) -> (i32, i32) {
    %c0_i32 = arith.constant 0 : i32
    %c0_i32_0 = arith.constant 0 : i32
    %c0_i32_1 = arith.constant 0 : i32
    return %c0_i32, %c0_i32_0 : i32, i32
  }
  func.func @transform_3(%arg0: i32) -> (i32, i32) {
    %c0_i32 = arith.constant 0 : i32
    %c0_i32_0 = arith.constant 0 : i32
    return %arg0, %c0_i32 : i32, i32
  }
}

module attributes {stable_mosaic.version = 11 : i64} {
  func.func @_mm_bias_kernel(%arg0: i32, %arg1: memref<16x576xbf16, #tpu.memory_space<vmem>>, %arg2: memref<576x128xbf16, #tpu.memory_space<vmem>>, %arg3: memref<1x128xf32, #tpu.memory_space<vmem>>, %arg4: memref<16x32xf32, #tpu.memory_space<vmem>>) attributes {dimension_semantics = [#tpu.dimension_semantics<parallel>], iteration_bounds = array<i64: 1>, scalar_prefetch = 0 : i64, scratch_operands = 0 : i64, tpu.core_type = #tpu.core_type<tc>, window_params = [{transform_indices = @transform_0, window_bounds = array<i64: 16, 576>}, {pipeline_mode = #tpu.pipeline_mode<synchronous>, transform_indices = @transform_1, window_bounds = array<i64: 576, 128>}, {pipeline_mode = #tpu.pipeline_mode<synchronous>, transform_indices = @transform_2, window_bounds = array<i64: 1, 128>}, {transform_indices = @transform_3, window_bounds = array<i64: 16, 32>}]} {
    %c0 = arith.constant 0 : index
    %c0_0 = arith.constant 0 : index
    %0 = vector.load %arg1[%c0, %c0_0] : memref<16x576xbf16, #tpu.memory_space<vmem>>, vector<16x576xbf16>
    %c0_1 = arith.constant 0 : index
    %c0_2 = arith.constant 0 : index
    %1 = vector.load %arg2[%c0_1, %c0_2] : memref<576x128xbf16, #tpu.memory_space<vmem>>, vector<576x128xbf16>
    %cst = arith.constant dense<0.000000e+00> : vector<16x128xf32>
    %2 = tpu.matmul %0, %1, %cst {dimension_numbers = #tpu.dot_dimension_numbers<[1], [0], [0], [1], [0, 0, 1, 1], [], []>} : vector<16x576xbf16>, vector<576x128xbf16>, vector<16x128xf32> -> vector<16x128xf32>
    %c0_3 = arith.constant 0 : index
    %c0_4 = arith.constant 0 : index
    %3 = vector.load %arg3[%c0_3, %c0_4] : memref<1x128xf32, #tpu.memory_space<vmem>>, vector<1x128xf32>
    %4 = vector.broadcast %3 : vector<1x128xf32> to vector<16x128xf32>
    %5 = arith.addf %2, %4 : vector<16x128xf32>
    %6 = vector.extract_strided_slice %5 {offsets = [0, 0], sizes = [16, 32], strides = [1, 1]} : vector<16x128xf32> to vector<16x32xf32>
    %c0_5 = arith.constant 0 : index
    %c0_6 = arith.constant 0 : index
    %7 = vector.load %arg4[%c0_5, %c0_6] : memref<16x32xf32, #tpu.memory_space<vmem>>, vector<16x32xf32>
    tpu.vector_store %arg4[%c0_5, %c0_6], %6 {strides = array<i32>} : memref<16x32xf32, #tpu.memory_space<vmem>>, vector<16x32xf32>,
    return
  }
  func.func @transform_0(%arg0: i32) -> (i32, i32) {
    %c0_i32 = arith.constant 0 : i32
    %c0_i32_0 = arith.constant 0 : i32
    return %arg0, %c0_i32 : i32, i32
  }
  func.func @transform_1(%arg0: i32) -> (i32, i32) {
    %c0_i32 = arith.constant 0 : i32
    %c0_i32_0 = arith.constant 0 : i32
    %c0_i32_1 = arith.constant 0 : i32
    return %c0_i32, %c0_i32_0 : i32, i32
  }
  func.func @transform_2(%arg0: i32) -> (i32, i32) {
    %c0_i32 = arith.constant 0 : i32
    %c0_i32_0 = arith.constant 0 : i32
    %c0_i32_1 = arith.constant 0 : i32
    return %c0_i32, %c0_i32_0 : i32, i32
  }
  func.func @transform_3(%arg0: i32) -> (i32, i32) {
    %c0_i32 = arith.constant 0 : i32
    %c0_i32_0 = arith.constant 0 : i32
    return %arg0, %c0_i32 : i32, i32
  }
}

module attributes {stable_mosaic.version = 11 : i64} {
  func.func @_mm_bias_kernel(%arg0: i32, %arg1: memref<16x32xbf16, #tpu.memory_space<vmem>>, %arg2: memref<32x128xbf16, #tpu.memory_space<vmem>>, %arg3: memref<1x128xf32, #tpu.memory_space<vmem>>, %arg4: memref<16x32xf32, #tpu.memory_space<vmem>>) attributes {dimension_semantics = [#tpu.dimension_semantics<parallel>], iteration_bounds = array<i64: 1>, scalar_prefetch = 0 : i64, scratch_operands = 0 : i64, tpu.core_type = #tpu.core_type<tc>, window_params = [{transform_indices = @transform_0, window_bounds = array<i64: 16, 32>}, {pipeline_mode = #tpu.pipeline_mode<synchronous>, transform_indices = @transform_1, window_bounds = array<i64: 32, 128>}, {pipeline_mode = #tpu.pipeline_mode<synchronous>, transform_indices = @transform_2, window_bounds = array<i64: 1, 128>}, {transform_indices = @transform_3, window_bounds = array<i64: 16, 32>}]} {
    %c0 = arith.constant 0 : index
    %c0_0 = arith.constant 0 : index
    %0 = vector.load %arg1[%c0, %c0_0] : memref<16x32xbf16, #tpu.memory_space<vmem>>, vector<16x32xbf16>
    %c0_1 = arith.constant 0 : index
    %c0_2 = arith.constant 0 : index
    %1 = vector.load %arg2[%c0_1, %c0_2] : memref<32x128xbf16, #tpu.memory_space<vmem>>, vector<32x128xbf16>
    %cst = arith.constant dense<0.000000e+00> : vector<16x128xf32>
    %2 = tpu.matmul %0, %1, %cst {dimension_numbers = #tpu.dot_dimension_numbers<[1], [0], [0], [1], [0, 0, 1, 1], [], []>} : vector<16x32xbf16>, vector<32x128xbf16>, vector<16x128xf32> -> vector<16x128xf32>
    %c0_3 = arith.constant 0 : index
    %c0_4 = arith.constant 0 : index
    %3 = vector.load %arg3[%c0_3, %c0_4] : memref<1x128xf32, #tpu.memory_space<vmem>>, vector<1x128xf32>
    %4 = vector.broadcast %3 : vector<1x128xf32> to vector<16x128xf32>
    %5 = arith.addf %2, %4 : vector<16x128xf32>
    %cst_5 = arith.constant 0.000000e+00 : f32
    %6 = vector.broadcast %cst_5 : f32 to vector<16x128xf32>
    %7 = arith.maximumf %5, %6 : vector<16x128xf32>
    %8 = vector.extract_strided_slice %7 {offsets = [0, 0], sizes = [16, 32], strides = [1, 1]} : vector<16x128xf32> to vector<16x32xf32>
    %c0_6 = arith.constant 0 : index
    %c0_7 = arith.constant 0 : index
    %9 = vector.load %arg4[%c0_6, %c0_7] : memref<16x32xf32, #tpu.memory_space<vmem>>, vector<16x32xf32>
    tpu.vector_store %arg4[%c0_6, %c0_7], %8 {strides = array<i32>} : memref<16x32xf32, #tpu.memory_space<vmem>>, vector<16x32xf32>,
    return
  }
  func.func @transform_0(%arg0: i32) -> (i32, i32) {
    %c0_i32 = arith.constant 0 : i32
    %c0_i32_0 = arith.constant 0 : i32
    return %arg0, %c0_i32 : i32, i32
  }
  func.func @transform_1(%arg0: i32) -> (i32, i32) {
    %c0_i32 = arith.constant 0 : i32
    %c0_i32_0 = arith.constant 0 : i32
    %c0_i32_1 = arith.constant 0 : i32
    return %c0_i32, %c0_i32_0 : i32, i32
  }
  func.func @transform_2(%arg0: i32) -> (i32, i32) {
    %c0_i32 = arith.constant 0 : i32
    %c0_i32_0 = arith.constant 0 : i32
    %c0_i32_1 = arith.constant 0 : i32
    return %c0_i32, %c0_i32_0 : i32, i32
  }
  func.func @transform_3(%arg0: i32) -> (i32, i32) {
    %c0_i32 = arith.constant 0 : i32
    %c0_i32_0 = arith.constant 0 : i32
    return %arg0, %c0_i32 : i32, i32
  }
}

module attributes {stable_mosaic.version = 11 : i64} {
  func.func @_mm_kernel(%arg0: i32, %arg1: memref<512x16xbf16, #tpu.memory_space<vmem>>, %arg2: memref<16x384xbf16, #tpu.memory_space<vmem>>, %arg3: memref<512x320xf32, #tpu.memory_space<vmem>>) attributes {dimension_semantics = [#tpu.dimension_semantics<parallel>], iteration_bounds = array<i64: 2>, scalar_prefetch = 0 : i64, scratch_operands = 0 : i64, tpu.core_type = #tpu.core_type<tc>, window_params = [{transform_indices = @transform_0, window_bounds = array<i64: 512, 16>}, {pipeline_mode = #tpu.pipeline_mode<synchronous>, transform_indices = @transform_1, window_bounds = array<i64: 16, 384>}, {transform_indices = @transform_2, window_bounds = array<i64: 512, 320>}]} {
    %c0 = arith.constant 0 : index
    %c0_0 = arith.constant 0 : index
    %0 = vector.load %arg1[%c0, %c0_0] : memref<512x16xbf16, #tpu.memory_space<vmem>>, vector<512x16xbf16>
    %c0_1 = arith.constant 0 : index
    %c0_2 = arith.constant 0 : index
    %1 = vector.load %arg2[%c0_1, %c0_2] : memref<16x384xbf16, #tpu.memory_space<vmem>>, vector<16x384xbf16>
    %cst = arith.constant dense<0.000000e+00> : vector<512x384xf32>
    %2 = tpu.matmul %0, %1, %cst {dimension_numbers = #tpu.dot_dimension_numbers<[1], [0], [0], [1], [0, 0, 1, 1], [], []>} : vector<512x16xbf16>, vector<16x384xbf16>, vector<512x384xf32> -> vector<512x384xf32>
    %3 = vector.extract_strided_slice %2 {offsets = [0, 0], sizes = [512, 320], strides = [1, 1]} : vector<512x384xf32> to vector<512x320xf32>
    %c0_3 = arith.constant 0 : index
    %c0_4 = arith.constant 0 : index
    %4 = vector.load %arg3[%c0_3, %c0_4] : memref<512x320xf32, #tpu.memory_space<vmem>>, vector<512x320xf32>
    tpu.vector_store %arg3[%c0_3, %c0_4], %3 {strides = array<i32>} : memref<512x320xf32, #tpu.memory_space<vmem>>, vector<512x320xf32>,
    return
  }
  func.func @transform_0(%arg0: i32) -> (i32, i32) {
    %c0_i32 = arith.constant 0 : i32
    %c0_i32_0 = arith.constant 0 : i32
    return %arg0, %c0_i32 : i32, i32
  }
  func.func @transform_1(%arg0: i32) -> (i32, i32) {
    %c0_i32 = arith.constant 0 : i32
    %c0_i32_0 = arith.constant 0 : i32
    %c0_i32_1 = arith.constant 0 : i32
    return %c0_i32, %c0_i32_0 : i32, i32
  }
  func.func @transform_2(%arg0: i32) -> (i32, i32) {
    %c0_i32 = arith.constant 0 : i32
    %c0_i32_0 = arith.constant 0 : i32
    return %arg0, %c0_i32 : i32, i32
  }
}

module attributes {stable_mosaic.version = 11 : i64} {
  func.func @_mm_kernel(%arg0: i32, %arg1: memref<1024x32xbf16, #tpu.memory_space<vmem>>, %arg2: memref<32x256xbf16, #tpu.memory_space<vmem>>, %arg3: memref<1024x256xf32, #tpu.memory_space<vmem>>) attributes {dimension_semantics = [#tpu.dimension_semantics<parallel>], iteration_bounds = array<i64: 10>, scalar_prefetch = 0 : i64, scratch_operands = 0 : i64, tpu.core_type = #tpu.core_type<tc>, window_params = [{transform_indices = @transform_0, window_bounds = array<i64: 1024, 32>}, {pipeline_mode = #tpu.pipeline_mode<synchronous>, transform_indices = @transform_1, window_bounds = array<i64: 32, 256>}, {transform_indices = @transform_2, window_bounds = array<i64: 1024, 256>}]} {
    %c0 = arith.constant 0 : index
    %c0_0 = arith.constant 0 : index
    %0 = vector.load %arg1[%c0, %c0_0] : memref<1024x32xbf16, #tpu.memory_space<vmem>>, vector<1024x32xbf16>
    %c0_1 = arith.constant 0 : index
    %c0_2 = arith.constant 0 : index
    %1 = vector.load %arg2[%c0_1, %c0_2] : memref<32x256xbf16, #tpu.memory_space<vmem>>, vector<32x256xbf16>
    %cst = arith.constant dense<0.000000e+00> : vector<1024x256xf32>
    %2 = tpu.matmul %0, %1, %cst {dimension_numbers = #tpu.dot_dimension_numbers<[1], [0], [0], [1], [0, 0, 1, 1], [], []>} : vector<1024x32xbf16>, vector<32x256xbf16>, vector<1024x256xf32> -> vector<1024x256xf32>
    %c0_3 = arith.constant 0 : index
    %c0_4 = arith.constant 0 : index
    %3 = vector.load %arg3[%c0_3, %c0_4] : memref<1024x256xf32, #tpu.memory_space<vmem>>, vector<1024x256xf32>
    tpu.vector_store %arg3[%c0_3, %c0_4], %2 {strides = array<i32>} : memref<1024x256xf32, #tpu.memory_space<vmem>>, vector<1024x256xf32>,
    return
  }
  func.func @transform_0(%arg0: i32) -> (i32, i32) {
    %c0_i32 = arith.constant 0 : i32
    %c0_i32_0 = arith.constant 0 : i32
    return %arg0, %c0_i32 : i32, i32
  }
  func.func @transform_1(%arg0: i32) -> (i32, i32) {
    %c0_i32 = arith.constant 0 : i32
    %c0_i32_0 = arith.constant 0 : i32
    %c0_i32_1 = arith.constant 0 : i32
    return %c0_i32, %c0_i32_0 : i32, i32
  }
  func.func @transform_2(%arg0: i32) -> (i32, i32) {
    %c0_i32 = arith.constant 0 : i32
    %c0_i32_0 = arith.constant 0 : i32
    return %arg0, %c0_i32 : i32, i32
  }
}

module attributes {stable_mosaic.version = 11 : i64} {
  func.func @_mm_bias_kernel(%arg0: i32, %arg1: memref<1024x160xbf16, #tpu.memory_space<vmem>>, %arg2: memref<160x128xbf16, #tpu.memory_space<vmem>>, %arg3: memref<1x128xf32, #tpu.memory_space<vmem>>, %arg4: memref<1024x2xf32, #tpu.memory_space<vmem>>) attributes {dimension_semantics = [#tpu.dimension_semantics<parallel>], iteration_bounds = array<i64: 20>, scalar_prefetch = 0 : i64, scratch_operands = 0 : i64, tpu.core_type = #tpu.core_type<tc>, window_params = [{transform_indices = @transform_0, window_bounds = array<i64: 1024, 160>}, {pipeline_mode = #tpu.pipeline_mode<synchronous>, transform_indices = @transform_1, window_bounds = array<i64: 160, 128>}, {pipeline_mode = #tpu.pipeline_mode<synchronous>, transform_indices = @transform_2, window_bounds = array<i64: 1, 128>}, {transform_indices = @transform_3, window_bounds = array<i64: 1024, 2>}]} {
    %c0 = arith.constant 0 : index
    %c0_0 = arith.constant 0 : index
    %0 = vector.load %arg1[%c0, %c0_0] : memref<1024x160xbf16, #tpu.memory_space<vmem>>, vector<1024x160xbf16>
    %c0_1 = arith.constant 0 : index
    %c0_2 = arith.constant 0 : index
    %1 = vector.load %arg2[%c0_1, %c0_2] : memref<160x128xbf16, #tpu.memory_space<vmem>>, vector<160x128xbf16>
    %cst = arith.constant dense<0.000000e+00> : vector<1024x128xf32>
    %2 = tpu.matmul %0, %1, %cst {dimension_numbers = #tpu.dot_dimension_numbers<[1], [0], [0], [1], [0, 0, 1, 1], [], []>} : vector<1024x160xbf16>, vector<160x128xbf16>, vector<1024x128xf32> -> vector<1024x128xf32>
    %c0_3 = arith.constant 0 : index
    %c0_4 = arith.constant 0 : index
    %3 = vector.load %arg3[%c0_3, %c0_4] : memref<1x128xf32, #tpu.memory_space<vmem>>, vector<1x128xf32>
    %4 = vector.broadcast %3 : vector<1x128xf32> to vector<1024x128xf32>
    %5 = arith.addf %2, %4 : vector<1024x128xf32>
    %cst_5 = arith.constant 0.000000e+00 : f32
    %6 = vector.broadcast %cst_5 : f32 to vector<1024x128xf32>
    %7 = arith.maximumf %5, %6 : vector<1024x128xf32>
    %8 = vector.extract_strided_slice %7 {offsets = [0, 0], sizes = [1024, 2], strides = [1, 1]} : vector<1024x128xf32> to vector<1024x2xf32>
    %c0_6 = arith.constant 0 : index
    %c0_7 = arith.constant 0 : index
    %9 = vector.load %arg4[%c0_6, %c0_7] : memref<1024x2xf32, #tpu.memory_space<vmem>>, vector<1024x2xf32>
    tpu.vector_store %arg4[%c0_6, %c0_7], %8 {strides = array<i32>} : memref<1024x2xf32, #tpu.memory_space<vmem>>, vector<1024x2xf32>,
    return
  }
  func.func @transform_0(%arg0: i32) -> (i32, i32) {
    %c0_i32 = arith.constant 0 : i32
    %c0_i32_0 = arith.constant 0 : i32
    return %arg0, %c0_i32 : i32, i32
  }
  func.func @transform_1(%arg0: i32) -> (i32, i32) {
    %c0_i32 = arith.constant 0 : i32
    %c0_i32_0 = arith.constant 0 : i32
    %c0_i32_1 = arith.constant 0 : i32
    return %c0_i32, %c0_i32_0 : i32, i32
  }
  func.func @transform_2(%arg0: i32) -> (i32, i32) {
    %c0_i32 = arith.constant 0 : i32
    %c0_i32_0 = arith.constant 0 : i32
    %c0_i32_1 = arith.constant 0 : i32
    return %c0_i32, %c0_i32_0 : i32, i32
  }
  func.func @transform_3(%arg0: i32) -> (i32, i32) {
    %c0_i32 = arith.constant 0 : i32
    %c0_i32_0 = arith.constant 0 : i32
    return %arg0, %c0_i32 : i32, i32
  }
}

</mosaic_0001>

<bundles_post_ra>
// kernel: fwd.7
= control target key start
LH: loop header
LB: loop body
LE: loop exit
PB: predicated region body
PF: predicated region fallthrough
CT: control target
= control target key end

     0   :  { %8 = vsyncpa [#allocation3], 0  ;;  %s570_s0 = inlined_call_operand.vmem [shape: bf16[128,64], index: 0, kind: input, shape index: {}]   ;;  %s571_s1 = inlined_call_operand.hbm [shape: bf16[64,128], index: 1, kind: input, shape index: {}]   ;;  %s572_s2 = inlined_call_operand.hbm [shape: f32[1,128], index: 2, kind: input, shape index: {}]   ;;  %s573_s3 = inlined_call_operand.vmem [shape: f32[128,32], index: 3, kind: output, shape index: {}]  }
   0x1   :  { %9 = vsyncpa [#allocation5], 0  ;;  %s426_s12 = smov [#allocation2]   ;;  %s378_s16 = scalar_lea.hbm %s571_s1, 512 }
   0x2   :  { %s17_s13 = sshll.u32 %s426_s12, 4  ;;  %p379_p0 = scmp.ne.s32.totalorder %s571_s1, %s378_s16  ;;  %s18_s13 = int_to_ptr.vmem [resolvable:$true] %s17_s13 }
   0x3   :  { %p382_p1 = scmp.lt.u32.totalorder %s378_s16, %s571_s1 }
   0x5   :  { %p384_p2 = pnand %p382_p1, %p379_p0 }
   0x7   :  { %387 = shalt.err (!%p384_p2)
}
   0x8   :  { %s388_s21 = scalar_lea.vmem %s18_s13, 512  ;;  %p393_p4 = scmp.lt.s32.totalorder %s18_s13, %s18_s13 }
   0x9   :  { %p389_p3 = scmp.ne.s32.totalorder %s18_s13, %s388_s21  ;;  %p394_p5 = scmp.lt.s32.totalorder %s388_s21, %s388_s21 }
   0xb   :  { %p395_p6 = por %p394_p5, %p393_p4 }
   0xd   :  { %p396_p7 = pnand %p395_p6, %p389_p3 }
   0xf   :  { %399 = shalt.err (!%p396_p7)
}
  0x10   :  { %s427_s22 = smov 64   ;;  %s428_s23 = smov 4  }
  0x11   :  { %23 = dma.hbm_to_vmem [thread:$0]  %s571_s1, 512, %s18_s13, [#allocation3], %s427_s22, %s427_s22, %s428_s23  }
  0x12   :  { %s429_s26 = smov [#allocation4]   ;;  %s400_s30 = scalar_lea.hbm %s572_s2, 16 }
  0x13   :  { %s30_s27 = sshll.u32 %s429_s26, 4  ;;  %p401_p8 = scmp.ne.s32.totalorder %s572_s2, %s400_s30  ;;  %s31_s27 = int_to_ptr.vmem [resolvable:$true] %s30_s27 }
  0x14   :  { %p404_p9 = scmp.lt.u32.totalorder %s400_s30, %s572_s2 }
  0x16   :  { %p406_p10 = pnand %p404_p9, %p401_p8 }
  0x18   :  { %409 = shalt.err (!%p406_p10)
}
  0x19   :  { %s410_s8 = scalar_lea.vmem %s31_s27, 16  ;;  %s414_s1 = scalar_lea.vmem %s31_s27, 32 }
  0x1a   :  { %p411_p11 = scmp.ne.s32.totalorder %s31_s27, %s410_s8  ;;  %p415_p12 = scmp.lt.s32.totalorder %s31_s27, %s31_s27 }
  0x1b   :  { %p416_p13 = scmp.lt.s32.totalorder %s414_s1, %s410_s8 }
  0x1d   :  { %p417_p0 = por %p416_p13, %p415_p12 }
  0x1f   :  { %p418_p1 = pnand %p417_p0, %p411_p11 }
  0x21   :  { %421 = shalt.err (!%p418_p1)
}
  0x22   :  { %33 = dma.hbm_to_vmem [thread:$0]  %s572_s2, 16, %s31_s27, [#allocation5]  }
  0x23   :  { %422 = dma.done.wait [#allocation3], 512  }
  0x24   :  { %423 = vsyncadd [#allocation3], 4294966784 }
  0x25   :  { %424 = dma.done.wait [#allocation5], 16  }
  0x26   :  { %425 = vsyncadd [#allocation5], 4294967280  ;;  %v366_v0 = vld [vmem:[#allocation2] sm:$0xff]   ;;  %v367_v1 = vld [vmem:[#allocation2 + $0x8] sm:$0xff]   ;;  %vm136_vm0 = vcmask 523264   ;;  %vm274_vm1 = vcmask 261120  }
  0x27   :  { %330 = vmatprep.subr.bf16.mxu0 %v366_v0  ;;  %354 = vmatprep.subr.bf16.mxu1 %v366_v0  ;;  %v368_v2 = vld [vmem:[#allocation2 + $0x10] sm:$0xff]   ;;  %v370_v3 = vld [vmem:[%s570_s0] sm:$0xff]   ;;  %v369_v5 = vld [vmem:[#allocation2 + $0x18] sm:$0xff]  }
  0x28   :  { %331 = vmatpush3.bf16.msra.mxu0 %v366_v0  ;;  %358 = vmatpush3.bf16.msra.mxu1 %v366_v0  ;;  %v371_v4 = vld [vmem:[%s570_s0 + $0x20] sm:$0xff]   ;;  %v372_v6 = vld [vmem:[%s570_s0 + $0x8] sm:$0xff]   ;;  %v374_v8 = vld [vmem:[%s570_s0 + $0x10] sm:$0xff]  }
  0x29   :  { %332 = vmatprep.subr.bf16.mxu0 %v367_v1  ;;  %355 = vmatprep.subr.bf16.mxu1 %v367_v1  ;;  %v373_v7 = vld [vmem:[%s570_s0 + $0x28] sm:$0xff]   ;;  %v375_v9 = vld [vmem:[%s570_s0 + $0x30] sm:$0xff]   ;;  %v376_v10 = vld [vmem:[%s570_s0 + $0x18] sm:$0xff]  }
  0x2a   :  { %338 = vmatprep.mubr.msk.bf16.mxu0 %vm136_vm0, %v370_v3  ;;  %346 = vmatprep.mubr.msk.bf16.mxu1 %vm136_vm0, %v371_v4  ;;  %v377_v11 = vld [vmem:[%s570_s0 + $0x38] sm:$0xff]   ;;  %v297_v12 = vld [vmem:[#allocation4] ss:$0 sm:$0xff] }
  0x2c   :  { %333 = vmatpush3.bf16.msra.mxu0 %v367_v1  ;;  %359 = vmatpush3.bf16.msra.mxu1 %v367_v1 }
  0x2d   :  { %334 = vmatprep.subr.bf16.mxu0 %v368_v2  ;;  %356 = vmatprep.subr.bf16.mxu1 %v368_v2 }
  0x30   :  { %335 = vmatpush3.bf16.msra.mxu0 %v368_v2  ;;  %360 = vmatpush3.bf16.msra.mxu1 %v368_v2 }
  0x31   :  { %336 = vmatprep.subr.bf16.mxu0 %v369_v5  ;;  %357 = vmatprep.subr.bf16.mxu1 %v369_v5 }
  0x34   :  { %337 = vmatpush3.bf16.msra.mxu0 %v369_v5  ;;  %361 = vmatpush3.bf16.msra.mxu1 %v369_v5 }
  0x37   :  { %339 = vmatmul.mubr.msk.bf16.vlgmr.msra.gmra.mrb[0].mxu0 %vm136_vm0, %v372_v6  ;;  %347 = vmatmul.mubr.msk.bf16.vlgmr.msra.gmra.mrb[0].mxu1 %vm136_vm0, %v373_v7 }
  0x38   :  { %342 = vmatprep.mubr.msk.bf16.mxu0 %vm136_vm0, %v374_v8  ;;  %350 = vmatprep.mubr.msk.bf16.mxu1 %vm136_vm0, %v375_v9 }
  0x3f   :  { %343 = vmatmul.mubr.msk.bf16.gmra.mrb[4].mxu0 %vm136_vm0, %v376_v10  ;;  %351 = vmatmul.mubr.msk.bf16.gmra.mrb[4].mxu1 %vm136_vm0, %v377_v11 }
 0x10a   :  { %v340_v13 = vpop.f32.mrb[0].mxu0  ;;  %v348_v14 = vpop.f32.mrb[0].mxu1 }
 0x10b   :  { %v204_v15 = vadd.f32 %v340_v13, %v297_v12  ;;  %v236_v16 = vadd.f32 %v348_v14, %v297_v12  ;;  %v195_v17 = vpop.f32.mrb[1].mxu0  ;;  %v227_v18 = vpop.f32.mrb[1].mxu1 }
 0x10c   :  { %v196_v19 = vadd.f32 %v297_v12, %v195_v17  ;;  %v228_v20 = vadd.f32 %v297_v12, %v227_v18  ;;  %v341_v21 = vpop.f32.mrb[2].mxu0  ;;  %v349_v22 = vpop.f32.mrb[2].mxu1 }
 0x10d   :  { %v260_v23 = vmax.f32 %v204_v15, 0.0  ;;  %v268_v24 = vmax.f32 %v236_v16, 0.0  ;;  %v207_v25 = vadd.f32 %v341_v21, %v297_v12  ;;  %v239_v26 = vadd.f32 %v349_v22, %v297_v12  ;;  %v198_v27 = vpop.f32.mrb[3].mxu0  ;;  %v230_v28 = vpop.f32.mrb[3].mxu1 }
 0x10e   :  { %v258_v29 = vmax.f32 %v196_v19, 0.0  ;;  %v266_v30 = vmax.f32 %v228_v20, 0.0  ;;  %v199_v31 = vadd.f32 %v297_v12, %v198_v27  ;;  %v231_v32 = vadd.f32 %v297_v12, %v230_v28 }
 0x10f   :  { %277 = vst.msk [vmem:[%s573_s3 + $0x10] sm:$0xff] %vm274_vm1, %v260_v23  ;;  %285 = vst.msk [vmem:[%s573_s3 + $0x50] sm:$0xff] %vm274_vm1, %v268_v24  ;;  %v261_v33 = vmax.f32 %v207_v25, 0.0  ;;  %v269_v34 = vmax.f32 %v239_v26, 0.0 }
 0x110   :  { %275 = vst.msk [vmem:[%s573_s3] sm:$0xff] %vm274_vm1, %v258_v29  ;;  %283 = vst.msk [vmem:[%s573_s3 + $0x40] sm:$0xff] %vm274_vm1, %v266_v30  ;;  %v259_v35 = vmax.f32 %v199_v31, 0.0  ;;  %v267_v36 = vmax.f32 %v231_v32, 0.0 }
 0x111   :  { %278 = vst.msk [vmem:[%s573_s3 + $0x18] sm:$0xff] %vm274_vm1, %v261_v33  ;;  %286 = vst.msk [vmem:[%s573_s3 + $0x58] sm:$0xff] %vm274_vm1, %v269_v34 }
 0x112   :  { %276 = vst.msk [vmem:[%s573_s3 + $0x8] sm:$0xff] %vm274_vm1, %v259_v35  ;;  %284 = vst.msk [vmem:[%s573_s3 + $0x48] sm:$0xff] %vm274_vm1, %v267_v36  ;;  %v344_v37 = vpop.f32.mrb[4].mxu0  ;;  %v352_v38 = vpop.f32.mrb[4].mxu1 }
 0x113   :  { %v220_v39 = vadd.f32 %v344_v37, %v297_v12  ;;  %v252_v40 = vadd.f32 %v352_v38, %v297_v12  ;;  %v211_v41 = vpop.f32.mrb[5].mxu0  ;;  %v243_v42 = vpop.f32.mrb[5].mxu1 }
 0x114   :  { %v212_v43 = vadd.f32 %v297_v12, %v211_v41  ;;  %v244_v44 = vadd.f32 %v297_v12, %v243_v42  ;;  %v345_v45 = vpop.f32.mrb[6].mxu0  ;;  %v353_v46 = vpop.f32.mrb[6].mxu1 }
 0x115   :  { %v264_v47 = vmax.f32 %v220_v39, 0.0  ;;  %v272_v48 = vmax.f32 %v252_v40, 0.0  ;;  %v223_v49 = vadd.f32 %v345_v45, %v297_v12  ;;  %v255_v50 = vadd.f32 %v353_v46, %v297_v12  ;;  %v214_v51 = vpop.f32.mrb[7].mxu0  ;;  %v246_v52 = vpop.f32.mrb[7].mxu1 }
 0x116   :  { %v262_v53 = vmax.f32 %v212_v43, 0.0  ;;  %v270_v54 = vmax.f32 %v244_v44, 0.0  ;;  %v215_v55 = vadd.f32 %v297_v12, %v214_v51  ;;  %v247_v56 = vadd.f32 %v297_v12, %v246_v52 }
 0x117   :  { %281 = vst.msk [vmem:[%s573_s3 + $0x30] sm:$0xff] %vm274_vm1, %v264_v47  ;;  %289 = vst.msk [vmem:[%s573_s3 + $0x70] sm:$0xff] %vm274_vm1, %v272_v48  ;;  %v265_v57 = vmax.f32 %v223_v49, 0.0  ;;  %v273_v58 = vmax.f32 %v255_v50, 0.0 }
 0x118   :  { %279 = vst.msk [vmem:[%s573_s3 + $0x20] sm:$0xff] %vm274_vm1, %v262_v53  ;;  %287 = vst.msk [vmem:[%s573_s3 + $0x60] sm:$0xff] %vm274_vm1, %v270_v54  ;;  %v263_v59 = vmax.f32 %v215_v55, 0.0  ;;  %v271_v60 = vmax.f32 %v247_v56, 0.0 }
 0x119   :  { %282 = vst.msk [vmem:[%s573_s3 + $0x38] sm:$0xff] %vm274_vm1, %v265_v57  ;;  %290 = vst.msk [vmem:[%s573_s3 + $0x78] sm:$0xff] %vm274_vm1, %v273_v58 }
 0x11a   :  { %280 = vst.msk [vmem:[%s573_s3 + $0x28] sm:$0xff] %vm274_vm1, %v263_v59  ;;  %288 = vst.msk [vmem:[%s573_s3 + $0x68] sm:$0xff] %vm274_vm1, %v271_v60 }
 0x11b   :  { %295 = vsyncpa [#allocation3], 1 }
 0x11c   :  { %296 = vsyncpa [#allocation5], 1 }

// kernel: fwd.8
= control target key start
LH: loop header
LB: loop body
LE: loop exit
PB: predicated region body
PF: predicated region fallthrough
CT: control target
= control target key end

     0   :  { %vm204_vm0 = vcmask 261120   ;;  %vm313_vm1 = vcmask 523264   ;;  %s526_s1 = inlined_call_operand.vmem [shape: bf16[288,128], index: 1, kind: input, shape index: {}]   ;;  %s527_s0 = inlined_call_operand.vmem [shape: bf16[32,288], index: 0, kind: input, shape index: {}]   ;;  %s528_s2 = inlined_call_operand.vmem [shape: f32[1,128], index: 2, kind: input, shape index: {}]   ;;  %s529_s3 = inlined_call_operand.vmem [shape: f32[32,64], index: 3, kind: output, shape index: {}]  }
   0x1   :  { %v389_v0 = vld [vmem:[%s526_s1 + $0x40] sm:$0xff]   ;;  %v391_v2 = vld [vmem:[%s526_s1 + $0x48] sm:$0xff]   ;;  %v393_v4 = vld [vmem:[%s526_s1 + $0x50] sm:$0xff]  }
   0x2   :  { %v390_v1 = vld [vmem:[%s526_s1] sm:$0xff]   ;;  %349 = vmatprep.subr.bf16.mxu0 %v389_v0  ;;  %v392_v3 = vld [vmem:[%s526_s1 + $0x8] sm:$0xff]   ;;  %v394_v5 = vld [vmem:[%s526_s1 + $0x10] sm:$0xff]  }
   0x3   :  { %350 = vmatpush3.bf16.msra.mxu0 %v390_v1  ;;  %v395_v6 = vld [vmem:[%s526_s1 + $0x58] sm:$0xff]   ;;  %v397_v8 = vld [vmem:[%s526_s1 + $0x60] sm:$0xff]   ;;  %v399_v11 = vld [vmem:[%s526_s1 + $0x68] sm:$0xff]  }
   0x4   :  { %351 = vmatprep.subr.bf16.mxu0 %v391_v2  ;;  %v396_v7 = vld [vmem:[%s526_s1 + $0x18] sm:$0xff]   ;;  %v398_v9 = vld [vmem:[%s526_s1 + $0x20] sm:$0xff]   ;;  %v400_v12 = vld [vmem:[%s526_s1 + $0x28] sm:$0xff]  }
   0x5   :  { %v404_v10 = vld [vmem:[%s526_s1 + $0x80] sm:$0xff]   ;;  %v401_v13 = vld [vmem:[%s526_s1 + $0x70] sm:$0xff]   ;;  %v409_v15 = vld [vmem:[%s526_s1 + $0x88] sm:$0xff]  }
   0x6   :  { %381 = vmatprep.subr.bf16.mxu1 %v404_v10  ;;  %v408_v14 = vld [vmem:[%s527_s0 + $0x4] ss:$12 sps:$4 sm:$0xff]   ;;  %v410_v16 = vld [vmem:[%s527_s0 + $0x8] ss:$12 sps:$4 sm:$0xff]   ;;  %v411_v17 = vld [vmem:[%s527_s0 + $0x20] ss:$12 sps:$4 sm:$0xff]  }
   0x7   :  { %352 = vmatpush3.bf16.msra.mxu0 %v392_v3  ;;  %382 = vmatpush3.bf16.msra.mxu1 %v404_v10  ;;  %v402_v18 = vld [vmem:[%s526_s1 + $0x30] sm:$0xff]   ;;  %v403_v19 = vld [vmem:[%s526_s1 + $0x78] sm:$0xff]   ;;  %v406_v21 = vld [vmem:[%s527_s0] ss:$12 sps:$4 sm:$0xff]  }
   0x8   :  { %353 = vmatprep.subr.bf16.mxu0 %v393_v4  ;;  %243 = vmatprep.mubr.bf16.mxu0 %v408_v14  ;;  %v405_v20 = vld [vmem:[%s526_s1 + $0x38] sm:$0xff]   ;;  %v322_v30 = vld [vmem:[%s528_s2] ss:$0 sm:$0xff] }
   0x9   :  { %383 = vmatprep.subr.bf16.mxu1 %v409_v15  ;;  %385 = vmatprep.mubr.msk.bf16.mxu1 %vm204_vm0, %v410_v16  ;;  %v412_v22 = vld [vmem:[%s527_s0 + $0x1c] ss:$12 sps:$4 sm:$0xff]   ;;  %v414_v23 = vld [vmem:[%s527_s0 + $0x18] ss:$12 sps:$4 sm:$0xff]  }
   0xb   :  { %354 = vmatpush3.bf16.msra.mxu0 %v394_v5  ;;  %384 = vmatpush3.bf16.msra.mxu1 %v409_v15 }
   0xc   :  { %355 = vmatprep.subr.bf16.mxu0 %v395_v6 }
   0xe   :  { %386 = vmatmul.mubr.msk.bf16.vlgmr.msra.gmra.mrb[0].mxu1 %vm204_vm0, %v411_v17 }
   0xf   :  { %356 = vmatpush3.bf16.msra.mxu0 %v396_v7 }
  0x10   :  { %357 = vmatprep.subr.bf16.mxu0 %v397_v8 }
  0x13   :  { %358 = vmatpush3.bf16.msra.mxu0 %v398_v9 }
  0x14   :  { %359 = vmatprep.subr.bf16.mxu0 %v399_v11 }
  0x17   :  { %360 = vmatpush3.bf16.msra.mxu0 %v400_v12 }
  0x18   :  { %361 = vmatprep.subr.bf16.mxu0 %v401_v13 }
  0x1b   :  { %362 = vmatpush3.bf16.msra.mxu0 %v402_v18 }
  0x1c   :  { %363 = vmatprep.subr.bf16.mxu0 %v403_v19 }
  0x1f   :  { %364 = vmatpush3.bf16.msra.mxu0 %v405_v20 }
  0x22   :  { %244 = vmatmul.mubr.bf16.vlgmr.msra.gmra.mrb[0].mxu0 %v406_v21 }
  0x23   :  { %251 = vmatprep.mubr.bf16.mxu0 %v412_v22 }
  0x2a   :  { %252 = vmatmul.mubr.bf16.gmra.mrb[4].mxu0 %v414_v23 }
  0xe1   :  { %v387_v24 = vpop.f32.mrb[0].mxu1 }
  0xe2   :  { %v294_v25 = vpop.f32.mrb[1].mxu1 }
  0xe3   :  { %v388_v26 = vpop.f32.mrb[2].mxu1 }
  0xe4   :  { %v297_v27 = vpop.f32.mrb[3].mxu1 }
  0xf5   :  { %v365_v28 = vpop.f32.mrb[0].mxu0 }
  0xf6   :  { %v366_v29 = vpop.f32.mrb[1].mxu0 }
  0xf7   :  { %v367_v31 = vadd.f32 %v366_v29, %v365_v28  ;;  %v368_v32 = vpop.f32.mrb[2].mxu0 }
  0xf8   :  { %v369_v33 = vpop.f32.mrb[3].mxu0 }
  0xf9   :  { %v370_v34 = vadd.f32 %v369_v33, %v368_v32  ;;  %v246_v35 = vadd.f32 %v367_v31, %v322_v30 }
  0xfb   :  { %v295_v36 = vadd.f32 %v294_v25, %v246_v35  ;;  %v249_v37 = vadd.f32 %v370_v34, %v322_v30 }
  0xfd   :  { %v309_v38 = vmax.f32 %v295_v36, 0.0  ;;  %v298_v39 = vadd.f32 %v297_v27, %v249_v37  ;;  %v371_v40 = vpop.f32.mrb[4].mxu0 }
  0xfe   :  { %v372_v41 = vpop.f32.mrb[5].mxu0 }
  0xff   :  { %314 = vst.msk [vmem:[%s529_s3] sm:$0xff] %vm313_vm1, %v309_v38  ;;  %v310_v42 = vmax.f32 %v298_v39, 0.0  ;;  %v373_v43 = vadd.f32 %v372_v41, %v371_v40  ;;  %v374_v44 = vpop.f32.mrb[6].mxu0 }
 0x100   :  { %v375_v45 = vpop.f32.mrb[7].mxu0 }
 0x101   :  { %315 = vst.msk [vmem:[%s529_s3 + $0x8] sm:$0xff] %vm313_vm1, %v310_v42  ;;  %v254_v46 = vadd.f32 %v373_v43, %v322_v30  ;;  %v376_v47 = vadd.f32 %v375_v45, %v374_v44 }
 0x103   :  { %v303_v48 = vadd.f32 %v387_v24, %v254_v46  ;;  %v257_v49 = vadd.f32 %v376_v47, %v322_v30 }
 0x105   :  { %v311_v50 = vmax.f32 %v303_v48, 0.0  ;;  %v306_v51 = vadd.f32 %v388_v26, %v257_v49 }
 0x107   :  { %316 = vst.msk [vmem:[%s529_s3 + $0x10] sm:$0xff] %vm313_vm1, %v311_v50  ;;  %v312_v52 = vmax.f32 %v306_v51, 0.0 }
 0x109   :  { %317 = vst.msk [vmem:[%s529_s3 + $0x18] sm:$0xff] %vm313_vm1, %v312_v52 }

// kernel: fwd.10
= control target key start
LH: loop header
LB: loop body
LE: loop exit
PB: predicated region body
PF: predicated region fallthrough
CT: control target
= control target key end

     0   :  { %v119_v0 = vmov 0.0   ;;  %vm120_vm0 = vmmov 0   ;;  %vm45_vm1 = vcmask 261120   ;;  %s159_s1 = inlined_call_operand.vmem [shape: bf16[32,128], index: 1, kind: input, shape index: {}]   ;;  %s160_s0 = inlined_call_operand.vmem [shape: bf16[16,32], index: 0, kind: input, shape index: {}]   ;;  %s161_s2 = inlined_call_operand.vmem [shape: f32[1,128], index: 2, kind: input, shape index: {}]   ;;  %s162_s3 = inlined_call_operand.vmem [shape: f32[16,32], index: 3, kind: output, shape index: {}]  }
   0x1   :  { %106 = vmatprep.subr.bf16.mxu0 %v119_v0  ;;  %v116_v1 = vld [vmem:[%s159_s1] sm:$0xff]   ;;  %110 = vmatprep.mubr.msk.bf16.mxu0 %vm120_vm0, %v119_v0  ;;  %v117_v2 = vld [vmem:[%s159_s1 + $0x8] sm:$0xff]  }
   0x2   :  { %107 = vmatpush3.bf16.msra.mxu0 %v116_v1  ;;  %v118_v3 = vld [vmem:[%s160_s0] sm:$0xff]  }
   0x3   :  { %108 = vmatprep.subr.bf16.mxu0 %v119_v0  ;;  %v98_v4 = vld [vmem:[%s161_s2] ss:$0 sm:$0xff] }
   0x6   :  { %109 = vmatpush3.bf16.msra.mxu0 %v117_v2 }
   0x9   :  { %111 = vmatmul.mubr.msk.bf16.vlgmr.msra.gmra.mrb[0].mxu0 %vm45_vm1, %v118_v3 }
  0xdc   :  { %v83_v5 = vpop.f32.mrb[0].mxu0 }
  0xdd   :  { %v84_v6 = vadd.f32 %v98_v4, %v83_v5  ;;  %v112_v7 = vpop.f32.mrb[1].mxu0 }
  0xde   :  { %v86_v8 = vpop.f32.mrb[2].mxu0 }
  0xdf   :  { %v90_v9 = vmax.f32 %v84_v6, 0.0  ;;  %v87_v10 = vadd.f32 %v98_v4, %v86_v8  ;;  %v113_v11 = vpop.f32.mrb[3].mxu0 }
  0xe1   :  { %92 = vst.msk [vmem:[%s162_s3] sm:$0xff] %vm45_vm1, %v90_v9  ;;  %v91_v12 = vmax.f32 %v87_v10, 0.0 }
  0xe3   :  { %93 = vst.msk [vmem:[%s162_s3 + $0x8] sm:$0xff] %vm45_vm1, %v91_v12 }

// kernel: fwd.9
= control target key start
LH: loop header
LB: loop body
LE: loop exit
PB: predicated region body
PF: predicated region fallthrough
CT: control target
= control target key end

     0   :  { %v624_v33 = vmov 0.0   ;;  %vm625_vm0 = vmmov 0   ;;  %vm341_vm1 = vcmask 523264   ;;  %vm468_vm2 = vcmask 261120   ;;  %s778_s1 = inlined_call_operand.vmem [shape: bf16[576,128], index: 1, kind: input, shape index: {}]   ;;  %s779_s0 = inlined_call_operand.vmem [shape: bf16[16,576], index: 0, kind: input, shape index: {}]   ;;  %s780_s2 = inlined_call_operand.vmem [shape: f32[1,128], index: 2, kind: input, shape index: {}]   ;;  %s781_s3 = inlined_call_operand.vmem [shape: f32[16,32], index: 3, kind: output, shape index: {}]  }
   0x1   :  { %v581_v0 = vld [vmem:[%s778_s1 + $0x40] sm:$0xff]   ;;  %v585_v4 = vld [vmem:[%s778_s1 + $0x48] sm:$0xff]   ;;  %v589_v8 = vld [vmem:[%s778_s1 + $0x50] sm:$0xff]  }
   0x2   :  { %v582_v1 = vld [vmem:[%s778_s1] sm:$0xff]   ;;  %518 = vmatprep.subr.bf16.mxu0 %v581_v0  ;;  %v586_v5 = vld [vmem:[%s778_s1 + $0x8] sm:$0xff]   ;;  %v590_v9 = vld [vmem:[%s778_s1 + $0x10] sm:$0xff]  }
   0x3   :  { %v583_v2 = vld [vmem:[%s778_s1 + $0xc0] sm:$0xff]   ;;  %519 = vmatpush3.bf16.msra.mxu0 %v582_v1  ;;  %v587_v6 = vld [vmem:[%s778_s1 + $0xc8] sm:$0xff]   ;;  %v591_v10 = vld [vmem:[%s778_s1 + $0xd0] sm:$0xff]  }
   0x4   :  { %v584_v3 = vld [vmem:[%s778_s1 + $0x80] sm:$0xff]   ;;  %540 = vmatprep.subr.bf16.mxu1 %v583_v2  ;;  %520 = vmatprep.subr.bf16.mxu0 %v585_v4  ;;  %v588_v7 = vld [vmem:[%s778_s1 + $0x88] sm:$0xff]   ;;  %v592_v11 = vld [vmem:[%s778_s1 + $0x90] sm:$0xff]  }
   0x5   :  { %541 = vmatpush3.bf16.msra.mxu1 %v584_v3  ;;  %v593_v12 = vld [vmem:[%s778_s1 + $0x58] sm:$0xff]   ;;  %v597_v16 = vld [vmem:[%s778_s1 + $0x60] sm:$0xff]   ;;  %v601_v20 = vld [vmem:[%s778_s1 + $0x68] sm:$0xff]  }
   0x6   :  { %542 = vmatprep.subr.bf16.mxu1 %v587_v6  ;;  %v594_v13 = vld [vmem:[%s778_s1 + $0x18] sm:$0xff]   ;;  %v598_v17 = vld [vmem:[%s778_s1 + $0x20] sm:$0xff]   ;;  %v602_v21 = vld [vmem:[%s778_s1 + $0x28] sm:$0xff]  }
   0x7   :  { %521 = vmatpush3.bf16.msra.mxu0 %v586_v5  ;;  %v595_v14 = vld [vmem:[%s778_s1 + $0xd8] sm:$0xff]   ;;  %v599_v18 = vld [vmem:[%s778_s1 + $0xe0] sm:$0xff]   ;;  %v603_v22 = vld [vmem:[%s778_s1 + $0xe8] sm:$0xff]  }
   0x8   :  { %522 = vmatprep.subr.bf16.mxu0 %v589_v8  ;;  %v596_v15 = vld [vmem:[%s778_s1 + $0x98] sm:$0xff]   ;;  %v600_v19 = vld [vmem:[%s778_s1 + $0xa0] sm:$0xff]   ;;  %v604_v23 = vld [vmem:[%s778_s1 + $0xa8] sm:$0xff]  }
   0x9   :  { %543 = vmatpush3.bf16.msra.mxu1 %v588_v7  ;;  %v605_v24 = vld [vmem:[%s778_s1 + $0x70] sm:$0xff]   ;;  %v609_v28 = vld [vmem:[%s778_s1 + $0x78] sm:$0xff]   ;;  %v618_v36 = vld [vmem:[%s779_s0 + $0xc] ss:$20 sps:$4 sm:$0xff]  }
   0xa   :  { %544 = vmatprep.subr.bf16.mxu1 %v591_v10  ;;  %v606_v25 = vld [vmem:[%s778_s1 + $0x30] sm:$0xff]   ;;  %v610_v29 = vld [vmem:[%s778_s1 + $0x38] sm:$0xff]   ;;  %v619_v37 = vld [vmem:[%s778_s1 + $0x100] sm:$0xff]   ;;  %418 = vmatprep.mubr.bf16.mxu1 %v618_v36 }
   0xb   :  { %523 = vmatpush3.bf16.msra.mxu0 %v590_v9  ;;  %v607_v26 = vld [vmem:[%s778_s1 + $0xf0] sm:$0xff]   ;;  %v611_v30 = vld [vmem:[%s778_s1 + $0xf8] sm:$0xff]   ;;  %v620_v38 = vld [vmem:[%s778_s1 + $0x108] sm:$0xff]  }
   0xc   :  { %524 = vmatprep.subr.bf16.mxu0 %v593_v12  ;;  %v608_v27 = vld [vmem:[%s778_s1 + $0xb0] sm:$0xff]   ;;  %v614_v32 = vld [vmem:[%s779_s0 + $0x4] ss:$20 sps:$4 sm:$0xff]   ;;  %v616_v35 = vld [vmem:[%s779_s0 + $0x8] ss:$20 sps:$4 sm:$0xff]  }
   0xd   :  { %545 = vmatpush3.bf16.msra.mxu1 %v592_v11  ;;  %v612_v31 = vld [vmem:[%s779_s0] ss:$20 sps:$4 sm:$0xff]   ;;  %v615_v34 = vld [vmem:[%s778_s1 + $0xb8] sm:$0xff]   ;;  %377 = vmatprep.mubr.bf16.mxu0 %v614_v32  ;;  %v623_v41 = vld [vmem:[%s779_s0 + $0x10] ss:$20 sps:$4 sm:$0xff]  }
   0xe   :  { %546 = vmatprep.subr.bf16.mxu1 %v595_v14  ;;  %v621_v39 = vld [vmem:[%s778_s1 + $0x110] sm:$0xff]   ;;  %v622_v40 = vld [vmem:[%s778_s1 + $0x118] sm:$0xff]   ;;  %v475_v43 = vld [vmem:[%s780_s2] ss:$0 sm:$0xff] }
   0xf   :  { %525 = vmatpush3.bf16.msra.mxu0 %v594_v13 }
  0x10   :  { %526 = vmatprep.subr.bf16.mxu0 %v597_v16 }
  0x11   :  { %547 = vmatpush3.bf16.msra.mxu1 %v596_v15 }
  0x12   :  { %548 = vmatprep.subr.bf16.mxu1 %v599_v18 }
  0x13   :  { %527 = vmatpush3.bf16.msra.mxu0 %v598_v17 }
  0x14   :  { %528 = vmatprep.subr.bf16.mxu0 %v601_v20 }
  0x15   :  { %549 = vmatpush3.bf16.msra.mxu1 %v600_v19 }
  0x16   :  { %550 = vmatprep.subr.bf16.mxu1 %v603_v22 }
  0x17   :  { %529 = vmatpush3.bf16.msra.mxu0 %v602_v21 }
  0x18   :  { %530 = vmatprep.subr.bf16.mxu0 %v605_v24 }
  0x19   :  { %551 = vmatpush3.bf16.msra.mxu1 %v604_v23 }
  0x1a   :  { %552 = vmatprep.subr.bf16.mxu1 %v607_v26 }
  0x1b   :  { %531 = vmatpush3.bf16.msra.mxu0 %v606_v25 }
  0x1c   :  { %532 = vmatprep.subr.bf16.mxu0 %v609_v28 }
  0x1d   :  { %553 = vmatpush3.bf16.msra.mxu1 %v608_v27 }
  0x1e   :  { %554 = vmatprep.subr.bf16.mxu1 %v611_v30 }
  0x1f   :  { %533 = vmatpush3.bf16.msra.mxu0 %v610_v29 }
  0x20   :  { %567 = vmatprep.subr.bf16.mxu0 %v624_v33 }
  0x21   :  { %555 = vmatpush3.bf16.msra.mxu1 %v615_v34 }
  0x22   :  { %378 = vmatmul.mubr.bf16.vlgmr.msra.gmra.mrb[0].mxu0 %v612_v31 }
  0x23   :  { %575 = vmatprep.mubr.msk.bf16.mxu0 %vm625_vm0, %v624_v33  ;;  %568 = vmatpush3.bf16.msra.mxu0 %v619_v37 }
  0x24   :  { %419 = vmatmul.mubr.bf16.vlgmr.msra.gmra.mrb[0].mxu1 %v616_v35  ;;  %569 = vmatprep.subr.bf16.mxu0 %v624_v33 }
  0x27   :  { %570 = vmatpush3.bf16.msra.mxu0 %v620_v38 }
  0x28   :  { %571 = vmatprep.subr.bf16.mxu0 %v624_v33 }
  0x2b   :  { %572 = vmatpush3.bf16.msra.mxu0 %v621_v39 }
  0x2c   :  { %573 = vmatprep.subr.bf16.mxu0 %v624_v33 }
  0x2f   :  { %574 = vmatpush3.bf16.msra.mxu0 %v622_v40 }
  0x32   :  { %576 = vmatmul.mubr.msk.bf16.vlgmr.msra.gmra.mrb[4].mxu0 %vm341_vm1, %v623_v41 }
  0xf5   :  { %v534_v42 = vpop.f32.mrb[0].mxu0 }
  0xf6   :  { %v535_v44 = vpop.f32.mrb[1].mxu0 }
  0xf7   :  { %v536_v45 = vadd.f32 %v535_v44, %v534_v42  ;;  %v537_v46 = vpop.f32.mrb[2].mxu0  ;;  %v556_v47 = vpop.f32.mrb[0].mxu1 }
  0xf8   :  { %v538_v48 = vpop.f32.mrb[3].mxu0  ;;  %v557_v51 = vpop.f32.mrb[1].mxu1 }
  0xf9   :  { %v380_v49 = vadd.f32 %v536_v45, %v475_v43  ;;  %v539_v50 = vadd.f32 %v538_v48, %v537_v46  ;;  %v558_v52 = vadd.f32 %v557_v51, %v556_v47  ;;  %v559_v53 = vpop.f32.mrb[2].mxu1 }
  0xfa   :  { %v560_v55 = vpop.f32.mrb[3].mxu1 }
  0xfb   :  { %v383_v54 = vadd.f32 %v539_v50, %v475_v43  ;;  %v561_v56 = vadd.f32 %v560_v55, %v559_v53  ;;  %v421_v57 = vadd.f32 %v558_v52, %v380_v49 }
  0xfd   :  { %v424_v58 = vadd.f32 %v561_v56, %v383_v54 }
 0x105   :  { %v461_v59 = vpop.f32.mrb[4].mxu0 }
 0x106   :  { %v462_v60 = vadd.f32 %v461_v59, %v421_v57  ;;  %v577_v61 = vpop.f32.mrb[5].mxu0 }
 0x107   :  { %v464_v62 = vpop.f32.mrb[6].mxu0 }
 0x108   :  { %469 = vst.msk [vmem:[%s781_s3] sm:$0xff] %vm468_vm2, %v462_v60  ;;  %v465_v63 = vadd.f32 %v464_v62, %v424_v58  ;;  %v578_v0 = vpop.f32.mrb[7].mxu0 }
 0x10a   :  { %470 = vst.msk [vmem:[%s781_s3 + $0x8] sm:$0xff] %vm468_vm2, %v465_v63 }

// kernel: fwd.11
= control target key start
LH: loop header
LB: loop body
LE: loop exit
PB: predicated region body
PF: predicated region fallthrough
CT: control target
= control target key end

     0   :  { %s1665_s9 = smov 0   ;;  %s2115_s0 = inlined_call_operand.vmem [shape: bf16[1024,16], index: 0, kind: input, shape index: {}]   ;;  %s2116_s1 = inlined_call_operand.vmem [shape: bf16[16,384], index: 1, kind: input, shape index: {}]   ;;  %s2117_s2 = inlined_call_operand.vmem [shape: f32[1024,320], index: 2, kind: output, shape index: {}]  }
   0x1 LB: > { %s1384_s10 = sadd.s32 4294967295, %s1647_s9   ;;  %p1388_p0 = scmp.ge.s32.totalorder %s1647_s9, 1  ;;  %s1647_s9 = sphi %s1665_s9, %s12_s9  }
   0x2   : > { %p113_p1 = scmp.lt.s32.totalorder %s1647_s9, 3 }
   0x4   : > { %p114_p2 = pnand %p1388_p0, %p113_p1 }
   0x5   : > { %v1605_v0 = vld [vmem:[%s2116_s1 + $0x4] ss:$12 sps:$4 sm:$0xff] (!%p114_p2)   ;;  %s1389_s13 = sshll.u32 (!%p114_p2), %s1384_s10, 6  ;;  %v1607_v1 = vld [vmem:[%s2116_s1] ss:$12 sps:$4 sm:$0xff] (!%p114_p2)   ;;  %v1649_v2 = vmov (!%p114_p2), 0  }
   0x6   : > { %117 = sbr.rel (%p114_p2) target bundleno = 418 (0x1a2), region = 28  ;;  %523 = vmatprep.mubr.bf16.mxu0 (!%p114_p2), %v1649_v2  ;;  %763 = vmatprep.mubr.bf16.mxu1 (!%p114_p2), %v1649_v2  ;;  %v1608_v3 = vld [vmem:[%s2116_s1 + $0x8] ss:$12 sps:$4 sm:$0xff] (!%p114_p2)   ;;  %p137_p3 = scmp.lt.s32.totalorder (!%p114_p2), %s1389_s13, 127  ;;  %vm394_vm0 = vcmask (!%p114_p2), 130048   ;;  %vm1135_vm1 = vcmask (!%p114_p2), 523264  }
   0x7   : > { %1593 = vmatprep.subr.bf16.mxu1 (!%p114_p2), %v1605_v0  ;;  %491 = vmatprep.subr.bf16.mxu0 (!%p114_p2), %v1605_v0 }
   0x8   : > { %1594 = vmatpush1.bf16.msra.mxu1 (!%p114_p2), %v1607_v1  ;;  %492 = vmatpush1.bf16.msra.mxu0 (!%p114_p2), %v1607_v1 }
   0x9   : > { %1527 = vmatprep.subr.bf16.mxu1 (!%p114_p2), %v1608_v3 }
   0xd   : > { %s2119_s13 = smov (!%p137_p3, %s1389_s13), 127 }
   0xe   : > { %s1390_s18 = sshll.u32 %s2119_s13, 2  ;;  %s1595_s22 = smul.u32 24, %s2119_s13 }
   0xf   : > { %s1690_s21 = scalar_lea.vmem %s2115_s0, %s1390_s18 }
  0x10   : > { %v1609_v4 = vld [vmem:[%s1690_s21] sm:$0xff]   ;;  %v1611_v6 = vld [vmem:[%s1690_s21 + $0x8] sm:$0xff]   ;;  %v1613_v8 = vld [vmem:[%s1690_s21 + $0x10] sm:$0xff]   ;;  %s1854_s25 = scalar_lea.vmem %s2117_s2, %s1595_s22 }
  0x11   : > { %v1694_v5 = vld [vmem:[%s1690_s21 + $0xc0] sm:$0xff]   ;;  %1428 = vmatmul.mubr.msk.bf16.vlgmr.msra.gmra.mrb[0].mxu0 %vm394_vm0, %v1609_v4  ;;  %v1703_v7 = vld [vmem:[%s1690_s21 + $0xc8] sm:$0xff]   ;;  %v1712_v9 = vld [vmem:[%s1690_s21 + $0xd0] sm:$0xff]  }
  0x12   : > { %1452 = vmatmul.mubr.msk.bf16.vlgmr.msra.gmra.mrb[0].mxu1 %vm394_vm0, %v1694_v5  ;;  %533 = vmatprep.mubr.bf16.mxu0 %v1649_v2  ;;  %v1615_v10 = vld [vmem:[%s1690_s21 + $0x18] sm:$0xff]   ;;  %v1617_v12 = vld [vmem:[%s1690_s21 + $0x20] sm:$0xff]   ;;  %v1619_v14 = vld [vmem:[%s1690_s21 + $0x28] sm:$0xff]  }
  0x13   : > { %1528 = vmatpush3.bf16.msra.mxu1 %v1608_v3  ;;  %773 = vmatprep.mubr.bf16.mxu1 %v1649_v2  ;;  %v1721_v11 = vld [vmem:[%s1690_s21 + $0xd8] sm:$0xff]   ;;  %v1730_v13 = vld [vmem:[%s1690_s21 + $0xe0] sm:$0xff]   ;;  %v1739_v15 = vld [vmem:[%s1690_s21 + $0xe8] sm:$0xff]  }
  0x14   : > { %v1621_v16 = vld [vmem:[%s1690_s21 + $0x30] sm:$0xff]   ;;  %v1623_v18 = vld [vmem:[%s1690_s21 + $0x38] sm:$0xff]   ;;  %v1625_v20 = vld [vmem:[%s1690_s21 + $0x40] sm:$0xff]  }
  0x15   : > { %v1748_v17 = vld [vmem:[%s1690_s21 + $0xf0] sm:$0xff]   ;;  %v1757_v19 = vld [vmem:[%s1690_s21 + $0xf8] sm:$0xff]   ;;  %v1626_v21 = vld [vmem:[%s1690_s21 + $0x48] sm:$0xff]  }
  0x16   : > { %v1627_v22 = vld [vmem:[%s1690_s21 + $0x50] sm:$0xff]   ;;  %v1628_v23 = vld [vmem:[%s1690_s21 + $0x58] sm:$0xff]   ;;  %v1629_v24 = vld [vmem:[%s1690_s21 + $0x60] sm:$0xff]  }
  0x17   : > { %v1630_v25 = vld [vmem:[%s1690_s21 + $0x68] sm:$0xff]   ;;  %v1631_v26 = vld [vmem:[%s1690_s21 + $0x70] sm:$0xff]   ;;  %v1632_v27 = vld [vmem:[%s1690_s21 + $0x78] sm:$0xff]  }
  0x18   : > { %v1633_v28 = vld [vmem:[%s1690_s21 + $0x80] sm:$0xff]   ;;  %v1634_v29 = vld [vmem:[%s1690_s21 + $0x88] sm:$0xff]   ;;  %v1635_v30 = vld [vmem:[%s1690_s21 + $0x90] sm:$0xff]  }
  0x19   : > { %1429 = vmatmul.mubr.msk.bf16.gmra.mrb[4].mxu0 %vm394_vm0, %v1611_v6  ;;  %v1636_v31 = vld [vmem:[%s1690_s21 + $0x98] sm:$0xff]   ;;  %v1637_v32 = vld [vmem:[%s1690_s21 + $0xa0] sm:$0xff]   ;;  %v1638_v33 = vld [vmem:[%s1690_s21 + $0xa8] sm:$0xff]  }
  0x1a   : > { %1453 = vmatmul.mubr.msk.bf16.gmra.mrb[4].mxu1 %vm394_vm0, %v1703_v7  ;;  %543 = vmatprep.mubr.bf16.mxu0 %v1649_v2  ;;  %v1639_v34 = vld [vmem:[%s1690_s21 + $0xb0] sm:$0xff]   ;;  %v1640_v35 = vld [vmem:[%s1690_s21 + $0xb8] sm:$0xff]  }
  0x1b   : > { %783 = vmatprep.mubr.bf16.mxu1 %v1649_v2 }
  0x21   : > { %1430 = vmatmul.mubr.msk.bf16.gmra.mrb[8].mxu0 %vm394_vm0, %v1613_v8 }
  0x22   : > { %1454 = vmatmul.mubr.msk.bf16.gmra.mrb[8].mxu1 %vm394_vm0, %v1712_v9  ;;  %553 = vmatprep.mubr.bf16.mxu0 %v1649_v2 }
  0x23   : > { %793 = vmatprep.mubr.bf16.mxu1 %v1649_v2 }
  0x29   : > { %1431 = vmatmul.mubr.msk.bf16.gmra.mrb[12].mxu0 %vm394_vm0, %v1615_v10 }
  0x2a   : > { %1455 = vmatmul.mubr.msk.bf16.gmra.mrb[12].mxu1 %vm394_vm0, %v1721_v11  ;;  %563 = vmatprep.mubr.bf16.mxu0 %v1649_v2 }
  0x2b   : > { %803 = vmatprep.mubr.bf16.mxu1 %v1649_v2 }
  0x31   : > { %1432 = vmatmul.mubr.msk.bf16.gmra.mrb[16].mxu0 %vm394_vm0, %v1617_v12 }
  0x32   : > { %1456 = vmatmul.mubr.msk.bf16.gmra.mrb[16].mxu1 %vm394_vm0, %v1730_v13  ;;  %573 = vmatprep.mubr.bf16.mxu0 %v1649_v2 }
  0x33   : > { %813 = vmatprep.mubr.bf16.mxu1 %v1649_v2 }
  0x39   : > { %1433 = vmatmul.mubr.msk.bf16.gmra.mrb[20].mxu0 %vm394_vm0, %v1619_v14 }
  0x3a   : > { %1457 = vmatmul.mubr.msk.bf16.gmra.mrb[20].mxu1 %vm394_vm0, %v1739_v15  ;;  %583 = vmatprep.mubr.bf16.mxu0 %v1649_v2 }
  0x3b   : > { %823 = vmatprep.mubr.bf16.mxu1 %v1649_v2 }
  0x41   : > { %1434 = vmatmul.mubr.msk.bf16.gmra.mrb[24].mxu0 %vm394_vm0, %v1621_v16 }
  0x42   : > { %1458 = vmatmul.mubr.msk.bf16.gmra.mrb[24].mxu1 %vm394_vm0, %v1748_v17  ;;  %593 = vmatprep.mubr.bf16.mxu0 %v1649_v2 }
  0x43   : > { %833 = vmatprep.mubr.bf16.mxu1 %v1649_v2 }
  0x49   : > { %1435 = vmatmul.mubr.msk.bf16.gmra.mrb[28].mxu0 %vm394_vm0, %v1623_v18 }
  0x4a   : > { %1459 = vmatmul.mubr.msk.bf16.gmra.mrb[28].mxu1 %vm394_vm0, %v1757_v19  ;;  %603 = vmatprep.mubr.bf16.mxu0 %v1649_v2 }
  0x4b   : > { %1529 = vmatprep.mubr.msk.bf16.mxu1 %vm394_vm0, %v1609_v4 }
  0x51   : > { %1436 = vmatmul.mubr.msk.bf16.gmra.mrb[32].mxu0 %vm394_vm0, %v1625_v20 }
  0x52   : > { %1530 = vmatmul.mubr.msk.bf16.vlgmr.msra.gmra.mrb[32].mxu1 %vm394_vm0, %v1611_v6  ;;  %613 = vmatprep.mubr.bf16.mxu0 %v1649_v2 }
  0x53   : > { %1533 = vmatprep.mubr.msk.bf16.mxu1 %vm394_vm0, %v1613_v8 }
  0x59   : > { %1437 = vmatmul.mubr.msk.bf16.gmra.mrb[36].mxu0 %vm394_vm0, %v1626_v21 }
  0x5a   : > { %1534 = vmatmul.mubr.msk.bf16.gmra.mrb[36].mxu1 %vm394_vm0, %v1615_v10  ;;  %623 = vmatprep.mubr.bf16.mxu0 %v1649_v2 }
  0x5b   : > { %1537 = vmatprep.mubr.msk.bf16.mxu1 %vm394_vm0, %v1617_v12 }
  0x61   : > { %1438 = vmatmul.mubr.msk.bf16.gmra.mrb[40].mxu0 %vm394_vm0, %v1627_v22 }
  0x62   : > { %1538 = vmatmul.mubr.msk.bf16.gmra.mrb[40].mxu1 %vm394_vm0, %v1619_v14  ;;  %633 = vmatprep.mubr.bf16.mxu0 %v1649_v2 }
  0x63   : > { %1541 = vmatprep.mubr.msk.bf16.mxu1 %vm394_vm0, %v1621_v16 }
  0x69   : > { %1439 = vmatmul.mubr.msk.bf16.gmra.mrb[44].mxu0 %vm394_vm0, %v1628_v23 }
  0x6a   : > { %1542 = vmatmul.mubr.msk.bf16.gmra.mrb[44].mxu1 %vm394_vm0, %v1623_v18  ;;  %643 = vmatprep.mubr.bf16.mxu0 %v1649_v2 }
  0x6b   : > { %1545 = vmatprep.mubr.msk.bf16.mxu1 %vm394_vm0, %v1625_v20 }
  0x71   : > { %1440 = vmatmul.mubr.msk.bf16.gmra.mrb[48].mxu0 %vm394_vm0, %v1629_v24 }
  0x72   : > { %1546 = vmatmul.mubr.msk.bf16.gmra.mrb[48].mxu1 %vm394_vm0, %v1626_v21  ;;  %653 = vmatprep.mubr.bf16.mxu0 %v1649_v2 }
  0x73   : > { %1549 = vmatprep.mubr.msk.bf16.mxu1 %vm394_vm0, %v1627_v22 }
  0x79   : > { %1441 = vmatmul.mubr.msk.bf16.gmra.mrb[52].mxu0 %vm394_vm0, %v1630_v25 }
  0x7a   : > { %1550 = vmatmul.mubr.msk.bf16.gmra.mrb[52].mxu1 %vm394_vm0, %v1628_v23  ;;  %663 = vmatprep.mubr.bf16.mxu0 %v1649_v2 }
  0x7b   : > { %1553 = vmatprep.mubr.msk.bf16.mxu1 %vm394_vm0, %v1629_v24 }
  0x81   : > { %1442 = vmatmul.mubr.msk.bf16.gmra.mrb[56].mxu0 %vm394_vm0, %v1631_v26 }
  0x82   : > { %1554 = vmatmul.mubr.msk.bf16.gmra.mrb[56].mxu1 %vm394_vm0, %v1630_v25  ;;  %673 = vmatprep.mubr.bf16.mxu0 %v1649_v2 }
  0x83   : > { %1557 = vmatprep.mubr.msk.bf16.mxu1 %vm394_vm0, %v1631_v26 }
  0x89   : > { %1443 = vmatmul.mubr.msk.bf16.gmra.mrb[60].mxu0 %vm394_vm0, %v1632_v27 }
  0x8a   : > { %1558 = vmatmul.mubr.msk.bf16.gmra.mrb[60].mxu1 %vm394_vm0, %v1632_v27  ;;  %683 = vmatprep.mubr.bf16.mxu0 %v1649_v2 }
  0x8b   : > { %1561 = vmatprep.mubr.msk.bf16.mxu1 %vm394_vm0, %v1633_v28 }
  0x91   : > { %1444 = vmatmul.mubr.msk.bf16.gmra.mrb[64].mxu0 %vm394_vm0, %v1633_v28 }
  0x92   : > { %1562 = vmatmul.mubr.msk.bf16.gmra.mrb[64].mxu1 %vm394_vm0, %v1634_v29  ;;  %693 = vmatprep.mubr.bf16.mxu0 %v1649_v2 }
  0x93   : > { %1565 = vmatprep.mubr.msk.bf16.mxu1 %vm394_vm0, %v1635_v30 }
  0x99   : > { %1445 = vmatmul.mubr.msk.bf16.gmra.mrb[68].mxu0 %vm394_vm0, %v1634_v29 }
  0x9a   : > { %1566 = vmatmul.mubr.msk.bf16.gmra.mrb[68].mxu1 %vm394_vm0, %v1636_v31  ;;  %703 = vmatprep.mubr.bf16.mxu0 %v1649_v2 }
  0x9b   : > { %1569 = vmatprep.mubr.msk.bf16.mxu1 %vm394_vm0, %v1637_v32 }
  0xa1   : > { %1446 = vmatmul.mubr.msk.bf16.gmra.mrb[72].mxu0 %vm394_vm0, %v1635_v30 }
  0xa2   : > { %1570 = vmatmul.mubr.msk.bf16.gmra.mrb[72].mxu1 %vm394_vm0, %v1638_v33  ;;  %713 = vmatprep.mubr.bf16.mxu0 %v1649_v2 }
  0xa3   : > { %1573 = vmatprep.mubr.msk.bf16.mxu1 %vm394_vm0, %v1639_v34 }
  0xa9   : > { %1447 = vmatmul.mubr.msk.bf16.gmra.mrb[76].mxu0 %vm394_vm0, %v1636_v31 }
  0xaa   : > { %1574 = vmatmul.mubr.msk.bf16.gmra.mrb[76].mxu1 %vm394_vm0, %v1640_v35  ;;  %723 = vmatprep.mubr.bf16.mxu0 %v1649_v2 }
  0xab   : > { %1577 = vmatprep.mubr.msk.bf16.mxu1 %vm394_vm0, %v1694_v5 }
  0xb1   : > { %1448 = vmatmul.mubr.msk.bf16.gmra.mrb[80].mxu0 %vm394_vm0, %v1637_v32 }
  0xb2   : > { %1578 = vmatmul.mubr.msk.bf16.gmra.mrb[80].mxu1 %vm394_vm0, %v1703_v7  ;;  %733 = vmatprep.mubr.bf16.mxu0 %v1649_v2 }
  0xb3   : > { %1581 = vmatprep.mubr.msk.bf16.mxu1 %vm394_vm0, %v1712_v9 }
  0xb9   : > { %1449 = vmatmul.mubr.msk.bf16.gmra.mrb[84].mxu0 %vm394_vm0, %v1638_v33 }
  0xba   : > { %1582 = vmatmul.mubr.msk.bf16.gmra.mrb[84].mxu1 %vm394_vm0, %v1721_v11  ;;  %743 = vmatprep.mubr.bf16.mxu0 %v1649_v2 }
  0xbb   : > { %1585 = vmatprep.mubr.msk.bf16.mxu1 %vm394_vm0, %v1730_v13 }
  0xc1   : > { %1450 = vmatmul.mubr.msk.bf16.gmra.mrb[88].mxu0 %vm394_vm0, %v1639_v34 }
  0xc2   : > { %1586 = vmatmul.mubr.msk.bf16.gmra.mrb[88].mxu1 %vm394_vm0, %v1739_v15  ;;  %753 = vmatprep.mubr.bf16.mxu0 %v1649_v2 }
  0xc3   : > { %1589 = vmatprep.mubr.msk.bf16.mxu1 %vm394_vm0, %v1748_v17 }
  0xc9   : > { %1451 = vmatmul.mubr.msk.bf16.gmra.mrb[92].mxu0 %vm394_vm0, %v1640_v35 }
  0xca   : > { %1590 = vmatmul.mubr.msk.bf16.gmra.mrb[92].mxu1 %vm394_vm0, %v1757_v19 }
  0xe4   : > { %v525_v36 = vpop.f32.mrb[0].mxu0 }
  0xe5   : > { %1133 = vst [vmem:[%s1854_s25] sm:$0xff] %v525_v36  ;;  %v765_v37 = vpop.f32.mrb[0].mxu1  ;;  %v527_v38 = vpop.f32.mrb[1].mxu0 }
  0xe6   : > { %1278 = vst [vmem:[%s1854_s25 + $0x480] sm:$0xff] %v765_v37  ;;  %1134 = vst [vmem:[%s1854_s25 + $0x8] sm:$0xff] %v527_v38  ;;  %v767_v39 = vpop.f32.mrb[1].mxu1  ;;  %v529_v40 = vpop.f32.mrb[2].mxu0 }
  0xe7   : > { %1279 = vst [vmem:[%s1854_s25 + $0x488] sm:$0xff] %v767_v39  ;;  %1137 = vst [vmem:[%s1854_s25 + $0x18] sm:$0xff] %v529_v40  ;;  %v769_v41 = vpop.f32.mrb[2].mxu1  ;;  %v531_v42 = vpop.f32.mrb[3].mxu0 }
  0xe8   : > { %1281 = vst [vmem:[%s1854_s25 + $0x498] sm:$0xff] %v769_v41  ;;  %1138 = vst [vmem:[%s1854_s25 + $0x20] sm:$0xff] %v531_v42  ;;  %v771_v43 = vpop.f32.mrb[3].mxu1 }
  0xe9   : > { %1282 = vst [vmem:[%s1854_s25 + $0x4a0] sm:$0xff] %v771_v43 }
  0xec   : > { %v535_v44 = vpop.f32.mrb[4].mxu0 }
  0xed   : > { %1140 = vst [vmem:[%s1854_s25 + $0x30] sm:$0xff] %v535_v44  ;;  %v775_v45 = vpop.f32.mrb[4].mxu1  ;;  %v537_v46 = vpop.f32.mrb[5].mxu0 }
  0xee   : > { %1284 = vst [vmem:[%s1854_s25 + $0x4b0] sm:$0xff] %v775_v45  ;;  %1141 = vst [vmem:[%s1854_s25 + $0x38] sm:$0xff] %v537_v46  ;;  %v777_v47 = vpop.f32.mrb[5].mxu1  ;;  %v539_v48 = vpop.f32.mrb[6].mxu0 }
  0xef   : > { %1285 = vst [vmem:[%s1854_s25 + $0x4b8] sm:$0xff] %v777_v47  ;;  %1143 = vst [vmem:[%s1854_s25 + $0x48] sm:$0xff] %v539_v48  ;;  %v779_v49 = vpop.f32.mrb[6].mxu1  ;;  %v541_v50 = vpop.f32.mrb[7].mxu0 }
  0xf0   : > { %1287 = vst [vmem:[%s1854_s25 + $0x4c8] sm:$0xff] %v779_v49  ;;  %1144 = vst [vmem:[%s1854_s25 + $0x50] sm:$0xff] %v541_v50  ;;  %v781_v51 = vpop.f32.mrb[7].mxu1 }
  0xf1   : > { %1288 = vst [vmem:[%s1854_s25 + $0x4d0] sm:$0xff] %v781_v51 }
  0xf4   : > { %v545_v52 = vpop.f32.mrb[8].mxu0 }
  0xf5   : > { %1146 = vst [vmem:[%s1854_s25 + $0x60] sm:$0xff] %v545_v52  ;;  %v785_v53 = vpop.f32.mrb[8].mxu1  ;;  %v547_v54 = vpop.f32.mrb[9].mxu0 }
  0xf6   : > { %1290 = vst [vmem:[%s1854_s25 + $0x4e0] sm:$0xff] %v785_v53  ;;  %1147 = vst [vmem:[%s1854_s25 + $0x68] sm:$0xff] %v547_v54  ;;  %v787_v55 = vpop.f32.mrb[9].mxu1  ;;  %v549_v56 = vpop.f32.mrb[10].mxu0 }
  0xf7   : > { %1291 = vst [vmem:[%s1854_s25 + $0x4e8] sm:$0xff] %v787_v55  ;;  %1149 = vst [vmem:[%s1854_s25 + $0x78] sm:$0xff] %v549_v56  ;;  %v789_v57 = vpop.f32.mrb[10].mxu1  ;;  %v551_v58 = vpop.f32.mrb[11].mxu0 }
  0xf8   : > { %1293 = vst [vmem:[%s1854_s25 + $0x4f8] sm:$0xff] %v789_v57  ;;  %1150 = vst [vmem:[%s1854_s25 + $0x80] sm:$0xff] %v551_v58  ;;  %v791_v59 = vpop.f32.mrb[11].mxu1 }
  0xf9   : > { %1294 = vst [vmem:[%s1854_s25 + $0x500] sm:$0xff] %v791_v59 }
  0xfc   : > { %v555_v60 = vpop.f32.mrb[12].mxu0 }
  0xfd   : > { %1152 = vst [vmem:[%s1854_s25 + $0x90] sm:$0xff] %v555_v60  ;;  %v795_v61 = vpop.f32.mrb[12].mxu1  ;;  %v557_v62 = vpop.f32.mrb[13].mxu0 }
  0xfe   : > { %1296 = vst [vmem:[%s1854_s25 + $0x510] sm:$0xff] %v795_v61  ;;  %1153 = vst [vmem:[%s1854_s25 + $0x98] sm:$0xff] %v557_v62  ;;  %v797_v63 = vpop.f32.mrb[13].mxu1  ;;  %v559_v0 = vpop.f32.mrb[14].mxu0 }
  0xff   : > { %1297 = vst [vmem:[%s1854_s25 + $0x518] sm:$0xff] %v797_v63  ;;  %1155 = vst [vmem:[%s1854_s25 + $0xa8] sm:$0xff] %v559_v0  ;;  %v799_v1 = vpop.f32.mrb[14].mxu1  ;;  %v561_v2 = vpop.f32.mrb[15].mxu0 }
 0x100   : > { %1299 = vst [vmem:[%s1854_s25 + $0x528] sm:$0xff] %v799_v1  ;;  %1156 = vst [vmem:[%s1854_s25 + $0xb0] sm:$0xff] %v561_v2  ;;  %v801_v3 = vpop.f32.mrb[15].mxu1 }
 0x101   : > { %1300 = vst [vmem:[%s1854_s25 + $0x530] sm:$0xff] %v801_v3 }
 0x104   : > { %v565_v4 = vpop.f32.mrb[16].mxu0 }
 0x105   : > { %1158 = vst [vmem:[%s1854_s25 + $0xc0] sm:$0xff] %v565_v4  ;;  %v805_v5 = vpop.f32.mrb[16].mxu1  ;;  %v567_v6 = vpop.f32.mrb[17].mxu0 }
 0x106   : > { %1302 = vst [vmem:[%s1854_s25 + $0x540] sm:$0xff] %v805_v5  ;;  %1159 = vst [vmem:[%s1854_s25 + $0xc8] sm:$0xff] %v567_v6  ;;  %v807_v7 = vpop.f32.mrb[17].mxu1  ;;  %v569_v8 = vpop.f32.mrb[18].mxu0 }
 0x107   : > { %1303 = vst [vmem:[%s1854_s25 + $0x548] sm:$0xff] %v807_v7  ;;  %1161 = vst [vmem:[%s1854_s25 + $0xd8] sm:$0xff] %v569_v8  ;;  %v809_v9 = vpop.f32.mrb[18].mxu1  ;;  %v571_v10 = vpop.f32.mrb[19].mxu0 }
 0x108   : > { %1305 = vst [vmem:[%s1854_s25 + $0x558] sm:$0xff] %v809_v9  ;;  %1162 = vst [vmem:[%s1854_s25 + $0xe0] sm:$0xff] %v571_v10  ;;  %v811_v11 = vpop.f32.mrb[19].mxu1 }
 0x109   : > { %1306 = vst [vmem:[%s1854_s25 + $0x560] sm:$0xff] %v811_v11 }
 0x10c   : > { %v575_v12 = vpop.f32.mrb[20].mxu0 }
 0x10d   : > { %1164 = vst [vmem:[%s1854_s25 + $0xf0] sm:$0xff] %v575_v12  ;;  %v815_v13 = vpop.f32.mrb[20].mxu1  ;;  %v577_v14 = vpop.f32.mrb[21].mxu0 }
 0x10e   : > { %1308 = vst [vmem:[%s1854_s25 + $0x570] sm:$0xff] %v815_v13  ;;  %1165 = vst [vmem:[%s1854_s25 + $0xf8] sm:$0xff] %v577_v14  ;;  %v817_v15 = vpop.f32.mrb[21].mxu1  ;;  %v579_v16 = vpop.f32.mrb[22].mxu0 }
 0x10f   : > { %1309 = vst [vmem:[%s1854_s25 + $0x578] sm:$0xff] %v817_v15  ;;  %1167 = vst [vmem:[%s1854_s25 + $0x108] sm:$0xff] %v579_v16  ;;  %v819_v17 = vpop.f32.mrb[22].mxu1  ;;  %v581_v18 = vpop.f32.mrb[23].mxu0 }
 0x110   : > { %1311 = vst [vmem:[%s1854_s25 + $0x588] sm:$0xff] %v819_v17  ;;  %1168 = vst [vmem:[%s1854_s25 + $0x110] sm:$0xff] %v581_v18  ;;  %v821_v19 = vpop.f32.mrb[23].mxu1 }
 0x111   : > { %1312 = vst [vmem:[%s1854_s25 + $0x590] sm:$0xff] %v821_v19 }
 0x114   : > { %v585_v20 = vpop.f32.mrb[24].mxu0 }
 0x115   : > { %1170 = vst [vmem:[%s1854_s25 + $0x120] sm:$0xff] %v585_v20  ;;  %v825_v21 = vpop.f32.mrb[24].mxu1  ;;  %v587_v22 = vpop.f32.mrb[25].mxu0 }
 0x116   : > { %1314 = vst [vmem:[%s1854_s25 + $0x5a0] sm:$0xff] %v825_v21  ;;  %1171 = vst [vmem:[%s1854_s25 + $0x128] sm:$0xff] %v587_v22  ;;  %v827_v23 = vpop.f32.mrb[25].mxu1  ;;  %v589_v24 = vpop.f32.mrb[26].mxu0 }
 0x117   : > { %1315 = vst [vmem:[%s1854_s25 + $0x5a8] sm:$0xff] %v827_v23  ;;  %1173 = vst [vmem:[%s1854_s25 + $0x138] sm:$0xff] %v589_v24  ;;  %v829_v25 = vpop.f32.mrb[26].mxu1  ;;  %v591_v26 = vpop.f32.mrb[27].mxu0 }
 0x118   : > { %1317 = vst [vmem:[%s1854_s25 + $0x5b8] sm:$0xff] %v829_v25  ;;  %1174 = vst [vmem:[%s1854_s25 + $0x140] sm:$0xff] %v591_v26  ;;  %v831_v27 = vpop.f32.mrb[27].mxu1 }
 0x119   : > { %1318 = vst [vmem:[%s1854_s25 + $0x5c0] sm:$0xff] %v831_v27 }
 0x11c   : > { %v595_v28 = vpop.f32.mrb[28].mxu0 }
 0x11d   : > { %1176 = vst [vmem:[%s1854_s25 + $0x150] sm:$0xff] %v595_v28  ;;  %v835_v29 = vpop.f32.mrb[28].mxu1  ;;  %v597_v30 = vpop.f32.mrb[29].mxu0 }
 0x11e   : > { %1320 = vst [vmem:[%s1854_s25 + $0x5d0] sm:$0xff] %v835_v29  ;;  %1177 = vst [vmem:[%s1854_s25 + $0x158] sm:$0xff] %v597_v30  ;;  %v837_v31 = vpop.f32.mrb[29].mxu1  ;;  %v599_v32 = vpop.f32.mrb[30].mxu0 }
 0x11f   : > { %1321 = vst [vmem:[%s1854_s25 + $0x5d8] sm:$0xff] %v837_v31  ;;  %1179 = vst [vmem:[%s1854_s25 + $0x168] sm:$0xff] %v599_v32  ;;  %v839_v33 = vpop.f32.mrb[30].mxu1  ;;  %v601_v34 = vpop.f32.mrb[31].mxu0 }
 0x120   : > { %1323 = vst [vmem:[%s1854_s25 + $0x5e8] sm:$0xff] %v839_v33  ;;  %1180 = vst [vmem:[%s1854_s25 + $0x170] sm:$0xff] %v601_v34  ;;  %v841_v35 = vpop.f32.mrb[31].mxu1 }
 0x121   : > { %1324 = vst [vmem:[%s1854_s25 + $0x5f0] sm:$0xff] %v841_v35 }
 0x124   : > { %v605_v36 = vpop.f32.mrb[32].mxu0 }
 0x125   : > { %1182 = vst [vmem:[%s1854_s25 + $0x180] sm:$0xff] %v605_v36  ;;  %v1531_v37 = vpop.f32.mrb[32].mxu1  ;;  %v607_v38 = vpop.f32.mrb[33].mxu0 }
 0x126   : > { %1142 = vst.msk [vmem:[%s1854_s25 + $0x40] sm:$0xff] %vm1135_vm1, %v1531_v37  ;;  %1183 = vst [vmem:[%s1854_s25 + $0x188] sm:$0xff] %v607_v38  ;;  %v878_v39 = vpop.f32.mrb[33].mxu1  ;;  %v609_v40 = vpop.f32.mrb[34].mxu0 }
 0x127   : > { %1136 = vst.msk [vmem:[%s1854_s25 + $0x10] sm:$0xff] %vm1135_vm1, %v878_v39  ;;  %1185 = vst [vmem:[%s1854_s25 + $0x198] sm:$0xff] %v609_v40  ;;  %v1532_v41 = vpop.f32.mrb[34].mxu1  ;;  %v611_v42 = vpop.f32.mrb[35].mxu0 }
 0x128   : > { %1145 = vst.msk [vmem:[%s1854_s25 + $0x58] sm:$0xff] %vm1135_vm1, %v1532_v41  ;;  %1186 = vst [vmem:[%s1854_s25 + $0x1a0] sm:$0xff] %v611_v42  ;;  %v881_v43 = vpop.f32.mrb[35].mxu1 }
 0x129   : > { %1139 = vst.msk [vmem:[%s1854_s25 + $0x28] sm:$0xff] %vm1135_vm1, %v881_v43 }
 0x12c   : > { %v615_v44 = vpop.f32.mrb[36].mxu0 }
 0x12d   : > { %1188 = vst [vmem:[%s1854_s25 + $0x1b0] sm:$0xff] %v615_v44  ;;  %v1535_v45 = vpop.f32.mrb[36].mxu1  ;;  %v617_v46 = vpop.f32.mrb[37].mxu0 }
 0x12e   : > { %1154 = vst.msk [vmem:[%s1854_s25 + $0xa0] sm:$0xff] %vm1135_vm1, %v1535_v45  ;;  %1189 = vst [vmem:[%s1854_s25 + $0x1b8] sm:$0xff] %v617_v46  ;;  %v894_v47 = vpop.f32.mrb[37].mxu1  ;;  %v619_v48 = vpop.f32.mrb[38].mxu0 }
 0x12f   : > { %1148 = vst.msk [vmem:[%s1854_s25 + $0x70] sm:$0xff] %vm1135_vm1, %v894_v47  ;;  %1191 = vst [vmem:[%s1854_s25 + $0x1c8] sm:$0xff] %v619_v48  ;;  %v1536_v49 = vpop.f32.mrb[38].mxu1  ;;  %v621_v50 = vpop.f32.mrb[39].mxu0 }
 0x130   : > { %1157 = vst.msk [vmem:[%s1854_s25 + $0xb8] sm:$0xff] %vm1135_vm1, %v1536_v49  ;;  %1192 = vst [vmem:[%s1854_s25 + $0x1d0] sm:$0xff] %v621_v50  ;;  %v897_v51 = vpop.f32.mrb[39].mxu1 }
 0x131   : > { %1151 = vst.msk [vmem:[%s1854_s25 + $0x88] sm:$0xff] %vm1135_vm1, %v897_v51 }
 0x134   : > { %v625_v52 = vpop.f32.mrb[40].mxu0 }
 0x135   : > { %1194 = vst [vmem:[%s1854_s25 + $0x1e0] sm:$0xff] %v625_v52  ;;  %v1539_v53 = vpop.f32.mrb[40].mxu1  ;;  %v627_v54 = vpop.f32.mrb[41].mxu0 }
 0x136   : > { %1166 = vst.msk [vmem:[%s1854_s25 + $0x100] sm:$0xff] %vm1135_vm1, %v1539_v53  ;;  %1195 = vst [vmem:[%s1854_s25 + $0x1e8] sm:$0xff] %v627_v54  ;;  %v910_v55 = vpop.f32.mrb[41].mxu1  ;;  %v629_v56 = vpop.f32.mrb[42].mxu0 }
 0x137   : > { %1160 = vst.msk [vmem:[%s1854_s25 + $0xd0] sm:$0xff] %vm1135_vm1, %v910_v55  ;;  %1197 = vst [vmem:[%s1854_s25 + $0x1f8] sm:$0xff] %v629_v56  ;;  %v1540_v57 = vpop.f32.mrb[42].mxu1  ;;  %v631_v58 = vpop.f32.mrb[43].mxu0 }
 0x138   : > { %1169 = vst.msk [vmem:[%s1854_s25 + $0x118] sm:$0xff] %vm1135_vm1, %v1540_v57  ;;  %1198 = vst [vmem:[%s1854_s25 + $0x200] sm:$0xff] %v631_v58  ;;  %v913_v59 = vpop.f32.mrb[43].mxu1 }
 0x139   : > { %1163 = vst.msk [vmem:[%s1854_s25 + $0xe8] sm:$0xff] %vm1135_vm1, %v913_v59 }
 0x13c   : > { %v635_v60 = vpop.f32.mrb[44].mxu0 }
 0x13d   : > { %1200 = vst [vmem:[%s1854_s25 + $0x210] sm:$0xff] %v635_v60  ;;  %v1543_v61 = vpop.f32.mrb[44].mxu1  ;;  %v637_v62 = vpop.f32.mrb[45].mxu0 }
 0x13e   : > { %1178 = vst.msk [vmem:[%s1854_s25 + $0x160] sm:$0xff] %vm1135_vm1, %v1543_v61  ;;  %1201 = vst [vmem:[%s1854_s25 + $0x218] sm:$0xff] %v637_v62  ;;  %v926_v63 = vpop.f32.mrb[45].mxu1  ;;  %v639_v0 = vpop.f32.mrb[46].mxu0 }
 0x13f   : > { %1172 = vst.msk [vmem:[%s1854_s25 + $0x130] sm:$0xff] %vm1135_vm1, %v926_v63  ;;  %1203 = vst [vmem:[%s1854_s25 + $0x228] sm:$0xff] %v639_v0  ;;  %v1544_v1 = vpop.f32.mrb[46].mxu1  ;;  %v641_v2 = vpop.f32.mrb[47].mxu0 }
 0x140   : > { %1181 = vst.msk [vmem:[%s1854_s25 + $0x178] sm:$0xff] %vm1135_vm1, %v1544_v1  ;;  %1204 = vst [vmem:[%s1854_s25 + $0x230] sm:$0xff] %v641_v2  ;;  %v929_v3 = vpop.f32.mrb[47].mxu1 }
 0x141   : > { %1175 = vst.msk [vmem:[%s1854_s25 + $0x148] sm:$0xff] %vm1135_vm1, %v929_v3 }
 0x144   : > { %v645_v4 = vpop.f32.mrb[48].mxu0 }
 0x145   : > { %1206 = vst [vmem:[%s1854_s25 + $0x240] sm:$0xff] %v645_v4  ;;  %v1547_v5 = vpop.f32.mrb[48].mxu1  ;;  %v647_v6 = vpop.f32.mrb[49].mxu0 }
 0x146   : > { %1190 = vst.msk [vmem:[%s1854_s25 + $0x1c0] sm:$0xff] %vm1135_vm1, %v1547_v5  ;;  %1207 = vst [vmem:[%s1854_s25 + $0x248] sm:$0xff] %v647_v6  ;;  %v942_v7 = vpop.f32.mrb[49].mxu1  ;;  %v649_v8 = vpop.f32.mrb[50].mxu0 }
 0x147   : > { %1184 = vst.msk [vmem:[%s1854_s25 + $0x190] sm:$0xff] %vm1135_vm1, %v942_v7  ;;  %1209 = vst [vmem:[%s1854_s25 + $0x258] sm:$0xff] %v649_v8  ;;  %v1548_v9 = vpop.f32.mrb[50].mxu1  ;;  %v651_v10 = vpop.f32.mrb[51].mxu0 }
 0x148   : > { %1193 = vst.msk [vmem:[%s1854_s25 + $0x1d8] sm:$0xff] %vm1135_vm1, %v1548_v9  ;;  %1210 = vst [vmem:[%s1854_s25 + $0x260] sm:$0xff] %v651_v10  ;;  %v945_v11 = vpop.f32.mrb[51].mxu1 }
 0x149   : > { %1187 = vst.msk [vmem:[%s1854_s25 + $0x1a8] sm:$0xff] %vm1135_vm1, %v945_v11 }
 0x14c   : > { %v655_v12 = vpop.f32.mrb[52].mxu0 }
 0x14d   : > { %1212 = vst [vmem:[%s1854_s25 + $0x270] sm:$0xff] %v655_v12  ;;  %v1551_v13 = vpop.f32.mrb[52].mxu1  ;;  %v657_v14 = vpop.f32.mrb[53].mxu0 }
 0x14e   : > { %1202 = vst.msk [vmem:[%s1854_s25 + $0x220] sm:$0xff] %vm1135_vm1, %v1551_v13  ;;  %1213 = vst [vmem:[%s1854_s25 + $0x278] sm:$0xff] %v657_v14  ;;  %v958_v15 = vpop.f32.mrb[53].mxu1  ;;  %v659_v16 = vpop.f32.mrb[54].mxu0 }
 0x14f   : > { %1196 = vst.msk [vmem:[%s1854_s25 + $0x1f0] sm:$0xff] %vm1135_vm1, %v958_v15  ;;  %1215 = vst [vmem:[%s1854_s25 + $0x288] sm:$0xff] %v659_v16  ;;  %v1552_v17 = vpop.f32.mrb[54].mxu1  ;;  %v661_v18 = vpop.f32.mrb[55].mxu0 }
 0x150   : > { %1205 = vst.msk [vmem:[%s1854_s25 + $0x238] sm:$0xff] %vm1135_vm1, %v1552_v17  ;;  %1216 = vst [vmem:[%s1854_s25 + $0x290] sm:$0xff] %v661_v18  ;;  %v961_v19 = vpop.f32.mrb[55].mxu1 }
 0x151   : > { %1199 = vst.msk [vmem:[%s1854_s25 + $0x208] sm:$0xff] %vm1135_vm1, %v961_v19 }
 0x154   : > { %v665_v20 = vpop.f32.mrb[56].mxu0 }
 0x155   : > { %1218 = vst [vmem:[%s1854_s25 + $0x2a0] sm:$0xff] %v665_v20  ;;  %v1555_v21 = vpop.f32.mrb[56].mxu1  ;;  %v667_v22 = vpop.f32.mrb[57].mxu0 }
 0x156   : > { %1214 = vst.msk [vmem:[%s1854_s25 + $0x280] sm:$0xff] %vm1135_vm1, %v1555_v21  ;;  %1219 = vst [vmem:[%s1854_s25 + $0x2a8] sm:$0xff] %v667_v22  ;;  %v974_v23 = vpop.f32.mrb[57].mxu1  ;;  %v669_v24 = vpop.f32.mrb[58].mxu0 }
 0x157   : > { %1208 = vst.msk [vmem:[%s1854_s25 + $0x250] sm:$0xff] %vm1135_vm1, %v974_v23  ;;  %1221 = vst [vmem:[%s1854_s25 + $0x2b8] sm:$0xff] %v669_v24  ;;  %v1556_v25 = vpop.f32.mrb[58].mxu1  ;;  %v671_v26 = vpop.f32.mrb[59].mxu0 }
 0x158   : > { %1217 = vst.msk [vmem:[%s1854_s25 + $0x298] sm:$0xff] %vm1135_vm1, %v1556_v25  ;;  %1222 = vst [vmem:[%s1854_s25 + $0x2c0] sm:$0xff] %v671_v26  ;;  %v977_v27 = vpop.f32.mrb[59].mxu1 }
 0x159   : > { %1211 = vst.msk [vmem:[%s1854_s25 + $0x268] sm:$0xff] %vm1135_vm1, %v977_v27 }
 0x15c   : > { %v675_v28 = vpop.f32.mrb[60].mxu0 }
 0x15d   : > { %1224 = vst [vmem:[%s1854_s25 + $0x2d0] sm:$0xff] %v675_v28  ;;  %v1559_v29 = vpop.f32.mrb[60].mxu1  ;;  %v677_v30 = vpop.f32.mrb[61].mxu0 }
 0x15e   : > { %1226 = vst.msk [vmem:[%s1854_s25 + $0x2e0] sm:$0xff] %vm1135_vm1, %v1559_v29  ;;  %1225 = vst [vmem:[%s1854_s25 + $0x2d8] sm:$0xff] %v677_v30  ;;  %v990_v31 = vpop.f32.mrb[61].mxu1  ;;  %v679_v32 = vpop.f32.mrb[62].mxu0 }
 0x15f   : > { %1220 = vst.msk [vmem:[%s1854_s25 + $0x2b0] sm:$0xff] %vm1135_vm1, %v990_v31  ;;  %1227 = vst [vmem:[%s1854_s25 + $0x2e8] sm:$0xff] %v679_v32  ;;  %v1560_v33 = vpop.f32.mrb[62].mxu1  ;;  %v681_v34 = vpop.f32.mrb[63].mxu0 }
 0x160   : > { %1229 = vst.msk [vmem:[%s1854_s25 + $0x2f8] sm:$0xff] %vm1135_vm1, %v1560_v33  ;;  %1228 = vst [vmem:[%s1854_s25 + $0x2f0] sm:$0xff] %v681_v34  ;;  %v993_v35 = vpop.f32.mrb[63].mxu1 }
 0x161   : > { %1223 = vst.msk [vmem:[%s1854_s25 + $0x2c8] sm:$0xff] %vm1135_vm1, %v993_v35 }
 0x164   : > { %v685_v36 = vpop.f32.mrb[64].mxu0 }
 0x165   : > { %1230 = vst [vmem:[%s1854_s25 + $0x300] sm:$0xff] %v685_v36  ;;  %v1563_v37 = vpop.f32.mrb[64].mxu1  ;;  %v687_v38 = vpop.f32.mrb[65].mxu0 }
 0x166   : > { %1238 = vst.msk [vmem:[%s1854_s25 + $0x340] sm:$0xff] %vm1135_vm1, %v1563_v37  ;;  %1231 = vst [vmem:[%s1854_s25 + $0x308] sm:$0xff] %v687_v38  ;;  %v1006_v39 = vpop.f32.mrb[65].mxu1  ;;  %v689_v40 = vpop.f32.mrb[66].mxu0 }
 0x167   : > { %1232 = vst.msk [vmem:[%s1854_s25 + $0x310] sm:$0xff] %vm1135_vm1, %v1006_v39  ;;  %1233 = vst [vmem:[%s1854_s25 + $0x318] sm:$0xff] %v689_v40  ;;  %v1564_v41 = vpop.f32.mrb[66].mxu1  ;;  %v691_v42 = vpop.f32.mrb[67].mxu0 }
 0x168   : > { %1241 = vst.msk [vmem:[%s1854_s25 + $0x358] sm:$0xff] %vm1135_vm1, %v1564_v41  ;;  %1234 = vst [vmem:[%s1854_s25 + $0x320] sm:$0xff] %v691_v42  ;;  %v1009_v43 = vpop.f32.mrb[67].mxu1 }
 0x169   : > { %1235 = vst.msk [vmem:[%s1854_s25 + $0x328] sm:$0xff] %vm1135_vm1, %v1009_v43 }
 0x16c   : > { %v695_v44 = vpop.f32.mrb[68].mxu0 }
 0x16d   : > { %1236 = vst [vmem:[%s1854_s25 + $0x330] sm:$0xff] %v695_v44  ;;  %v1567_v45 = vpop.f32.mrb[68].mxu1  ;;  %v697_v46 = vpop.f32.mrb[69].mxu0 }
 0x16e   : > { %1250 = vst.msk [vmem:[%s1854_s25 + $0x3a0] sm:$0xff] %vm1135_vm1, %v1567_v45  ;;  %1237 = vst [vmem:[%s1854_s25 + $0x338] sm:$0xff] %v697_v46  ;;  %v1022_v47 = vpop.f32.mrb[69].mxu1  ;;  %v699_v48 = vpop.f32.mrb[70].mxu0 }
 0x16f   : > { %1244 = vst.msk [vmem:[%s1854_s25 + $0x370] sm:$0xff] %vm1135_vm1, %v1022_v47  ;;  %1239 = vst [vmem:[%s1854_s25 + $0x348] sm:$0xff] %v699_v48  ;;  %v1568_v49 = vpop.f32.mrb[70].mxu1  ;;  %v701_v50 = vpop.f32.mrb[71].mxu0 }
 0x170   : > { %1253 = vst.msk [vmem:[%s1854_s25 + $0x3b8] sm:$0xff] %vm1135_vm1, %v1568_v49  ;;  %1240 = vst [vmem:[%s1854_s25 + $0x350] sm:$0xff] %v701_v50  ;;  %v1025_v51 = vpop.f32.mrb[71].mxu1 }
 0x171   : > { %1247 = vst.msk [vmem:[%s1854_s25 + $0x388] sm:$0xff] %vm1135_vm1, %v1025_v51 }
 0x174   : > { %v705_v52 = vpop.f32.mrb[72].mxu0 }
 0x175   : > { %1242 = vst [vmem:[%s1854_s25 + $0x360] sm:$0xff] %v705_v52  ;;  %v1571_v53 = vpop.f32.mrb[72].mxu1  ;;  %v707_v54 = vpop.f32.mrb[73].mxu0 }
 0x176   : > { %1262 = vst.msk [vmem:[%s1854_s25 + $0x400] sm:$0xff] %vm1135_vm1, %v1571_v53  ;;  %1243 = vst [vmem:[%s1854_s25 + $0x368] sm:$0xff] %v707_v54  ;;  %v1038_v55 = vpop.f32.mrb[73].mxu1  ;;  %v709_v56 = vpop.f32.mrb[74].mxu0 }
 0x177   : > { %1256 = vst.msk [vmem:[%s1854_s25 + $0x3d0] sm:$0xff] %vm1135_vm1, %v1038_v55  ;;  %1245 = vst [vmem:[%s1854_s25 + $0x378] sm:$0xff] %v709_v56  ;;  %v1572_v57 = vpop.f32.mrb[74].mxu1  ;;  %v711_v58 = vpop.f32.mrb[75].mxu0 }
 0x178   : > { %1265 = vst.msk [vmem:[%s1854_s25 + $0x418] sm:$0xff] %vm1135_vm1, %v1572_v57  ;;  %1246 = vst [vmem:[%s1854_s25 + $0x380] sm:$0xff] %v711_v58  ;;  %v1041_v59 = vpop.f32.mrb[75].mxu1 }
 0x179   : > { %1259 = vst.msk [vmem:[%s1854_s25 + $0x3e8] sm:$0xff] %vm1135_vm1, %v1041_v59 }
 0x17c   : > { %v715_v60 = vpop.f32.mrb[76].mxu0 }
 0x17d   : > { %1248 = vst [vmem:[%s1854_s25 + $0x390] sm:$0xff] %v715_v60  ;;  %v1575_v61 = vpop.f32.mrb[76].mxu1  ;;  %v717_v62 = vpop.f32.mrb[77].mxu0 }
 0x17e   : > { %1274 = vst.msk [vmem:[%s1854_s25 + $0x460] sm:$0xff] %vm1135_vm1, %v1575_v61  ;;  %1249 = vst [vmem:[%s1854_s25 + $0x398] sm:$0xff] %v717_v62  ;;  %v1054_v63 = vpop.f32.mrb[77].mxu1  ;;  %v719_v0 = vpop.f32.mrb[78].mxu0 }
 0x17f   : > { %1268 = vst.msk [vmem:[%s1854_s25 + $0x430] sm:$0xff] %vm1135_vm1, %v1054_v63  ;;  %1251 = vst [vmem:[%s1854_s25 + $0x3a8] sm:$0xff] %v719_v0  ;;  %v1576_v1 = vpop.f32.mrb[78].mxu1  ;;  %v721_v2 = vpop.f32.mrb[79].mxu0 }
 0x180   : > { %1277 = vst.msk [vmem:[%s1854_s25 + $0x478] sm:$0xff] %vm1135_vm1, %v1576_v1  ;;  %1252 = vst [vmem:[%s1854_s25 + $0x3b0] sm:$0xff] %v721_v2  ;;  %v1057_v3 = vpop.f32.mrb[79].mxu1 }
 0x181   : > { %1271 = vst.msk [vmem:[%s1854_s25 + $0x448] sm:$0xff] %vm1135_vm1, %v1057_v3 }
 0x184   : > { %v725_v4 = vpop.f32.mrb[80].mxu0 }
 0x185   : > { %1254 = vst [vmem:[%s1854_s25 + $0x3c0] sm:$0xff] %v725_v4  ;;  %v1579_v5 = vpop.f32.mrb[80].mxu1  ;;  %v727_v6 = vpop.f32.mrb[81].mxu0 }
 0x186   : > { %1286 = vst.msk [vmem:[%s1854_s25 + $0x4c0] sm:$0xff] %vm1135_vm1, %v1579_v5  ;;  %1255 = vst [vmem:[%s1854_s25 + $0x3c8] sm:$0xff] %v727_v6  ;;  %v1070_v7 = vpop.f32.mrb[81].mxu1  ;;  %v729_v8 = vpop.f32.mrb[82].mxu0 }
 0x187   : > { %1280 = vst.msk [vmem:[%s1854_s25 + $0x490] sm:$0xff] %vm1135_vm1, %v1070_v7  ;;  %1257 = vst [vmem:[%s1854_s25 + $0x3d8] sm:$0xff] %v729_v8  ;;  %v1580_v9 = vpop.f32.mrb[82].mxu1  ;;  %v731_v10 = vpop.f32.mrb[83].mxu0 }
 0x188   : > { %1289 = vst.msk [vmem:[%s1854_s25 + $0x4d8] sm:$0xff] %vm1135_vm1, %v1580_v9  ;;  %1258 = vst [vmem:[%s1854_s25 + $0x3e0] sm:$0xff] %v731_v10  ;;  %v1073_v11 = vpop.f32.mrb[83].mxu1 }
 0x189   : > { %1283 = vst.msk [vmem:[%s1854_s25 + $0x4a8] sm:$0xff] %vm1135_vm1, %v1073_v11 }
 0x18c   : > { %v735_v12 = vpop.f32.mrb[84].mxu0 }
 0x18d   : > { %1260 = vst [vmem:[%s1854_s25 + $0x3f0] sm:$0xff] %v735_v12  ;;  %v1583_v13 = vpop.f32.mrb[84].mxu1  ;;  %v737_v14 = vpop.f32.mrb[85].mxu0 }
 0x18e   : > { %1298 = vst.msk [vmem:[%s1854_s25 + $0x520] sm:$0xff] %vm1135_vm1, %v1583_v13  ;;  %1261 = vst [vmem:[%s1854_s25 + $0x3f8] sm:$0xff] %v737_v14  ;;  %v1086_v15 = vpop.f32.mrb[85].mxu1  ;;  %v739_v16 = vpop.f32.mrb[86].mxu0 }
 0x18f   : > { %1292 = vst.msk [vmem:[%s1854_s25 + $0x4f0] sm:$0xff] %vm1135_vm1, %v1086_v15  ;;  %1263 = vst [vmem:[%s1854_s25 + $0x408] sm:$0xff] %v739_v16  ;;  %v1584_v17 = vpop.f32.mrb[86].mxu1  ;;  %v741_v18 = vpop.f32.mrb[87].mxu0 }
 0x190   : > { %1301 = vst.msk [vmem:[%s1854_s25 + $0x538] sm:$0xff] %vm1135_vm1, %v1584_v17  ;;  %1264 = vst [vmem:[%s1854_s25 + $0x410] sm:$0xff] %v741_v18  ;;  %v1089_v19 = vpop.f32.mrb[87].mxu1 }
 0x191   : > { %1295 = vst.msk [vmem:[%s1854_s25 + $0x508] sm:$0xff] %vm1135_vm1, %v1089_v19 }
 0x194   : > { %v745_v20 = vpop.f32.mrb[88].mxu0 }
 0x195   : > { %1266 = vst [vmem:[%s1854_s25 + $0x420] sm:$0xff] %v745_v20  ;;  %v1587_v21 = vpop.f32.mrb[88].mxu1  ;;  %v747_v22 = vpop.f32.mrb[89].mxu0 }
 0x196   : > { %1310 = vst.msk [vmem:[%s1854_s25 + $0x580] sm:$0xff] %vm1135_vm1, %v1587_v21  ;;  %1267 = vst [vmem:[%s1854_s25 + $0x428] sm:$0xff] %v747_v22  ;;  %v1102_v23 = vpop.f32.mrb[89].mxu1  ;;  %v749_v24 = vpop.f32.mrb[90].mxu0 }
 0x197   : > { %1304 = vst.msk [vmem:[%s1854_s25 + $0x550] sm:$0xff] %vm1135_vm1, %v1102_v23  ;;  %1269 = vst [vmem:[%s1854_s25 + $0x438] sm:$0xff] %v749_v24  ;;  %v1588_v25 = vpop.f32.mrb[90].mxu1  ;;  %v751_v26 = vpop.f32.mrb[91].mxu0 }
 0x198   : > { %1313 = vst.msk [vmem:[%s1854_s25 + $0x598] sm:$0xff] %vm1135_vm1, %v1588_v25  ;;  %1270 = vst [vmem:[%s1854_s25 + $0x440] sm:$0xff] %v751_v26  ;;  %v1105_v27 = vpop.f32.mrb[91].mxu1 }
 0x199   : > { %1307 = vst.msk [vmem:[%s1854_s25 + $0x568] sm:$0xff] %vm1135_vm1, %v1105_v27 }
 0x19c   : > { %v755_v28 = vpop.f32.mrb[92].mxu0 }
 0x19d   : > { %1272 = vst [vmem:[%s1854_s25 + $0x450] sm:$0xff] %v755_v28  ;;  %v1591_v29 = vpop.f32.mrb[92].mxu1  ;;  %v757_v30 = vpop.f32.mrb[93].mxu0 }
 0x19e   : > { %1322 = vst.msk [vmem:[%s1854_s25 + $0x5e0] sm:$0xff] %vm1135_vm1, %v1591_v29  ;;  %1273 = vst [vmem:[%s1854_s25 + $0x458] sm:$0xff] %v757_v30  ;;  %v1118_v31 = vpop.f32.mrb[93].mxu1  ;;  %v759_v32 = vpop.f32.mrb[94].mxu0 }
 0x19f   : > { %1316 = vst.msk [vmem:[%s1854_s25 + $0x5b0] sm:$0xff] %vm1135_vm1, %v1118_v31  ;;  %1275 = vst [vmem:[%s1854_s25 + $0x468] sm:$0xff] %v759_v32  ;;  %v1592_v33 = vpop.f32.mrb[94].mxu1  ;;  %v761_v34 = vpop.f32.mrb[95].mxu0 }
 0x1a0   : > { %1325 = vst.msk [vmem:[%s1854_s25 + $0x5f8] sm:$0xff] %vm1135_vm1, %v1592_v33  ;;  %1276 = vst [vmem:[%s1854_s25 + $0x470] sm:$0xff] %v761_v34  ;;  %v1121_v35 = vpop.f32.mrb[95].mxu1 }
 0x1a1   : > { %1319 = vst.msk [vmem:[%s1854_s25 + $0x5c8] sm:$0xff] %vm1135_vm1, %v1121_v35 }
 0x1a2 PF: > { %s12_s9 = sadd.s32 1, %s1647_s9  }
 0x1a3   : > { %p9_p4 = scmp.ge.s32.totalorder %s12_s9, 4  }
 0x1a5   :  { %11 = sbr.rel (!%p9_p4) target bundleno = 1 (0x1), region = 58 }

// kernel: fwd.12
= control target key start
LH: loop header
LB: loop body
LE: loop exit
PB: predicated region body
PF: predicated region fallthrough
CT: control target
= control target key end

     0   :  { %s2054_s9 = smov 0   ;;  %s2539_s0 = inlined_call_operand.vmem [shape: bf16[10240,32], index: 0, kind: input, shape index: {}]   ;;  %s2540_s1 = inlined_call_operand.vmem [shape: bf16[32,256], index: 1, kind: input, shape index: {}]   ;;  %s2541_s2 = inlined_call_operand.vmem [shape: f32[10240,256], index: 2, kind: output, shape index: {}]  }
   0x1 LB: > { %s1802_s10 = sadd.s32 4294967295, %s2036_s9   ;;  %p1806_p0 = scmp.ge.s32.totalorder %s2036_s9, 1  ;;  %s2036_s9 = sphi %s2054_s9, %s12_s9  }
   0x2   : > { %p113_p1 = scmp.lt.s32.totalorder %s2036_s9, 11 }
   0x4   : > { %p114_p2 = pnand %p1806_p0, %p113_p1 }
   0x5   : > { %v1960_v0 = vld [vmem:[%s2540_s1 + $0x4] ss:$8 sps:$4 sm:$0xff] (!%p114_p2)   ;;  %s1807_s13 = sshll.u32 (!%p114_p2), %s1802_s10, 7  ;;  %v1962_v1 = vld [vmem:[%s2540_s1] ss:$8 sps:$4 sm:$0xff] (!%p114_p2)   ;;  %v2038_v2 = vmov (!%p114_p2), 0  }
   0x6   : > { %117 = sbr.rel (%p114_p2) target bundleno = 482 (0x1e2), region = 28  ;;  %847 = vmatprep.mubr.bf16.mxu0 (!%p114_p2), %v2038_v2  ;;  %1167 = vmatprep.mubr.bf16.mxu1 (!%p114_p2), %v2038_v2  ;;  %p137_p3 = scmp.lt.s32.totalorder (!%p114_p2), %s1807_s13, 1279  ;;  %v1963_v3 = vld [vmem:[%s2540_s1 + $0x14] ss:$8 sps:$4 sm:$0xff] (!%p114_p2)   ;;  %v1965_v4 = vld [vmem:[%s2540_s1 + $0x10] ss:$8 sps:$4 sm:$0xff] (!%p114_p2)  }
   0x7   : > { %815 = vmatprep.subr.bf16.mxu0 (!%p114_p2), %v1960_v0  ;;  %1947 = vmatprep.subr.bf16.mxu1 (!%p114_p2), %v1960_v0  ;;  %vm622_vm0 = vcmask (!%p114_p2), 261120  }
   0x8   : > { %816 = vmatpush1.bf16.msra.mxu0 (!%p114_p2), %v1962_v1  ;;  %1949 = vmatpush1.bf16.msra.mxu1 (!%p114_p2), %v1962_v1 }
   0x9   : > { %817 = vmatprep.subr.bf16.mxu0 (!%p114_p2), %v1963_v3  ;;  %1948 = vmatprep.subr.bf16.mxu1 (!%p114_p2), %v1963_v3 }
   0xc   : > { %818 = vmatpush1.bf16.msra.mxu0 (!%p114_p2), %v1965_v4  ;;  %1950 = vmatpush1.bf16.msra.mxu1 (!%p114_p2), %v1965_v4 }
   0xd   : > { %s2543_s13 = smov (!%p137_p3, %s1807_s13), 1279 }
   0xe   : > { %s1808_s20 = sshll.u32 %s2543_s13, 2  ;;  %s1946_s24 = sshll.u32 %s2543_s13, 4 }
   0xf   : > { %s2082_s23 = scalar_lea.vmem %s2539_s0, %s1808_s20  ;;  %s2248_s27 = scalar_lea.vmem %s2541_s2, %s1946_s24 }
  0x10   : > { %v1966_v5 = vld [vmem:[%s2082_s23] sm:$0xff]   ;;  %v1968_v7 = vld [vmem:[%s2082_s23 + $0x8] sm:$0xff]   ;;  %v1970_v9 = vld [vmem:[%s2082_s23 + $0x10] sm:$0xff]  }
  0x11   : > { %v1967_v6 = vld [vmem:[%s2082_s23 + $0x100] sm:$0xff]   ;;  %1880 = vmatmul.mubr.msk.bf16.vlgmr.msra.gmra.mrb[0].mxu0 %vm622_vm0, %v1966_v5  ;;  %v1969_v8 = vld [vmem:[%s2082_s23 + $0x108] sm:$0xff]   ;;  %v1971_v10 = vld [vmem:[%s2082_s23 + $0x110] sm:$0xff]  }
  0x12   : > { %1912 = vmatmul.mubr.msk.bf16.vlgmr.msra.gmra.mrb[0].mxu1 %vm622_vm0, %v1967_v6  ;;  %857 = vmatprep.mubr.bf16.mxu0 %v2038_v2  ;;  %v1972_v11 = vld [vmem:[%s2082_s23 + $0x18] sm:$0xff]   ;;  %v1974_v13 = vld [vmem:[%s2082_s23 + $0x20] sm:$0xff]   ;;  %v1976_v15 = vld [vmem:[%s2082_s23 + $0x28] sm:$0xff]  }
  0x13   : > { %1177 = vmatprep.mubr.bf16.mxu1 %v2038_v2  ;;  %v1973_v12 = vld [vmem:[%s2082_s23 + $0x118] sm:$0xff]   ;;  %v1975_v14 = vld [vmem:[%s2082_s23 + $0x120] sm:$0xff]   ;;  %v1977_v16 = vld [vmem:[%s2082_s23 + $0x128] sm:$0xff]  }
  0x14   : > { %v1978_v17 = vld [vmem:[%s2082_s23 + $0x30] sm:$0xff]   ;;  %v1980_v19 = vld [vmem:[%s2082_s23 + $0x38] sm:$0xff]   ;;  %v1982_v21 = vld [vmem:[%s2082_s23 + $0x40] sm:$0xff]  }
  0x15   : > { %v1979_v18 = vld [vmem:[%s2082_s23 + $0x130] sm:$0xff]   ;;  %v1981_v20 = vld [vmem:[%s2082_s23 + $0x138] sm:$0xff]   ;;  %v1983_v22 = vld [vmem:[%s2082_s23 + $0x140] sm:$0xff]  }
  0x16   : > { %v1984_v23 = vld [vmem:[%s2082_s23 + $0x48] sm:$0xff]   ;;  %v1986_v25 = vld [vmem:[%s2082_s23 + $0x50] sm:$0xff]   ;;  %v1988_v27 = vld [vmem:[%s2082_s23 + $0x58] sm:$0xff]  }
  0x17   : > { %v1985_v24 = vld [vmem:[%s2082_s23 + $0x148] sm:$0xff]   ;;  %v1987_v26 = vld [vmem:[%s2082_s23 + $0x150] sm:$0xff]   ;;  %v1989_v28 = vld [vmem:[%s2082_s23 + $0x158] sm:$0xff]  }
  0x18   : > { %v1990_v29 = vld [vmem:[%s2082_s23 + $0x60] sm:$0xff]   ;;  %v1992_v31 = vld [vmem:[%s2082_s23 + $0x68] sm:$0xff]   ;;  %v1994_v33 = vld [vmem:[%s2082_s23 + $0x70] sm:$0xff]  }
  0x19   : > { %1881 = vmatmul.mubr.msk.bf16.gmra.mrb[4].mxu0 %vm622_vm0, %v1968_v7  ;;  %v1991_v30 = vld [vmem:[%s2082_s23 + $0x160] sm:$0xff]   ;;  %v1993_v32 = vld [vmem:[%s2082_s23 + $0x168] sm:$0xff]   ;;  %v1995_v34 = vld [vmem:[%s2082_s23 + $0x170] sm:$0xff]  }
  0x1a   : > { %1913 = vmatmul.mubr.msk.bf16.gmra.mrb[4].mxu1 %vm622_vm0, %v1969_v8  ;;  %867 = vmatprep.mubr.bf16.mxu0 %v2038_v2  ;;  %v1996_v35 = vld [vmem:[%s2082_s23 + $0x78] sm:$0xff]   ;;  %v1998_v37 = vld [vmem:[%s2082_s23 + $0x80] sm:$0xff]   ;;  %v2000_v39 = vld [vmem:[%s2082_s23 + $0x88] sm:$0xff]  }
  0x1b   : > { %1187 = vmatprep.mubr.bf16.mxu1 %v2038_v2  ;;  %v1997_v36 = vld [vmem:[%s2082_s23 + $0x178] sm:$0xff]   ;;  %v1999_v38 = vld [vmem:[%s2082_s23 + $0x180] sm:$0xff]   ;;  %v2001_v40 = vld [vmem:[%s2082_s23 + $0x188] sm:$0xff]  }
  0x1c   : > { %v2002_v41 = vld [vmem:[%s2082_s23 + $0x90] sm:$0xff]   ;;  %v2004_v43 = vld [vmem:[%s2082_s23 + $0x98] sm:$0xff]   ;;  %v2006_v45 = vld [vmem:[%s2082_s23 + $0xa0] sm:$0xff]  }
  0x1d   : > { %v2003_v42 = vld [vmem:[%s2082_s23 + $0x190] sm:$0xff]   ;;  %v2005_v44 = vld [vmem:[%s2082_s23 + $0x198] sm:$0xff]   ;;  %v2007_v46 = vld [vmem:[%s2082_s23 + $0x1a0] sm:$0xff]  }
  0x1e   : > { %v2008_v47 = vld [vmem:[%s2082_s23 + $0xa8] sm:$0xff]   ;;  %v2010_v49 = vld [vmem:[%s2082_s23 + $0xb0] sm:$0xff]   ;;  %v2012_v51 = vld [vmem:[%s2082_s23 + $0xb8] sm:$0xff]  }
  0x1f   : > { %v2009_v48 = vld [vmem:[%s2082_s23 + $0x1a8] sm:$0xff]   ;;  %v2011_v50 = vld [vmem:[%s2082_s23 + $0x1b0] sm:$0xff]   ;;  %v2013_v52 = vld [vmem:[%s2082_s23 + $0x1b8] sm:$0xff]  }
  0x20   : > { %v2014_v53 = vld [vmem:[%s2082_s23 + $0xc0] sm:$0xff]   ;;  %v2016_v55 = vld [vmem:[%s2082_s23 + $0xc8] sm:$0xff]   ;;  %v2018_v57 = vld [vmem:[%s2082_s23 + $0xd0] sm:$0xff]  }
  0x21   : > { %1882 = vmatmul.mubr.msk.bf16.gmra.mrb[8].mxu0 %vm622_vm0, %v1970_v9  ;;  %v2015_v54 = vld [vmem:[%s2082_s23 + $0x1c0] sm:$0xff]   ;;  %v2017_v56 = vld [vmem:[%s2082_s23 + $0x1c8] sm:$0xff]   ;;  %v2019_v58 = vld [vmem:[%s2082_s23 + $0x1d0] sm:$0xff]  }
  0x22   : > { %1914 = vmatmul.mubr.msk.bf16.gmra.mrb[8].mxu1 %vm622_vm0, %v1971_v10  ;;  %877 = vmatprep.mubr.bf16.mxu0 %v2038_v2  ;;  %v2020_v63 = vld [vmem:[%s2082_s23 + $0xd8] sm:$0xff]   ;;  %v2022_v10 = vld [vmem:[%s2082_s23 + $0xe0] sm:$0xff]  }
  0x23   : > { %1197 = vmatprep.mubr.bf16.mxu1 %v2038_v2  ;;  %v2021_v0 = vld [vmem:[%s2082_s23 + $0x1d8] sm:$0xff]  }
  0x29   : > { %1883 = vmatmul.mubr.msk.bf16.gmra.mrb[12].mxu0 %vm622_vm0, %v1972_v11  ;;  %v2023_v11 = vld [vmem:[%s2082_s23 + $0x1e0] sm:$0xff]  }
  0x2a   : > { %1915 = vmatmul.mubr.msk.bf16.gmra.mrb[12].mxu1 %vm622_vm0, %v1973_v12  ;;  %887 = vmatprep.mubr.bf16.mxu0 %v2038_v2 }
  0x2b   : > { %1207 = vmatprep.mubr.bf16.mxu1 %v2038_v2 }
  0x31   : > { %1884 = vmatmul.mubr.msk.bf16.gmra.mrb[16].mxu0 %vm622_vm0, %v1974_v13 }
  0x32   : > { %1916 = vmatmul.mubr.msk.bf16.gmra.mrb[16].mxu1 %vm622_vm0, %v1975_v14  ;;  %897 = vmatprep.mubr.bf16.mxu0 %v2038_v2 }
  0x33   : > { %1217 = vmatprep.mubr.bf16.mxu1 %v2038_v2 }
  0x39   : > { %1885 = vmatmul.mubr.msk.bf16.gmra.mrb[20].mxu0 %vm622_vm0, %v1976_v15 }
  0x3a   : > { %1917 = vmatmul.mubr.msk.bf16.gmra.mrb[20].mxu1 %vm622_vm0, %v1977_v16  ;;  %907 = vmatprep.mubr.bf16.mxu0 %v2038_v2 }
  0x3b   : > { %1227 = vmatprep.mubr.bf16.mxu1 %v2038_v2 }
  0x41   : > { %1886 = vmatmul.mubr.msk.bf16.gmra.mrb[24].mxu0 %vm622_vm0, %v1978_v17 }
  0x42   : > { %1918 = vmatmul.mubr.msk.bf16.gmra.mrb[24].mxu1 %vm622_vm0, %v1979_v18  ;;  %917 = vmatprep.mubr.bf16.mxu0 %v2038_v2 }
  0x43   : > { %1237 = vmatprep.mubr.bf16.mxu1 %v2038_v2 }
  0x49   : > { %1887 = vmatmul.mubr.msk.bf16.gmra.mrb[28].mxu0 %vm622_vm0, %v1980_v19 }
  0x4a   : > { %1919 = vmatmul.mubr.msk.bf16.gmra.mrb[28].mxu1 %vm622_vm0, %v1981_v20  ;;  %927 = vmatprep.mubr.bf16.mxu0 %v2038_v2  ;;  %v2024_v20 = vld [vmem:[%s2082_s23 + $0xe8] sm:$0xff]  }
  0x4b   : > { %1247 = vmatprep.mubr.bf16.mxu1 %v2038_v2 }
  0x51   : > { %1888 = vmatmul.mubr.msk.bf16.gmra.mrb[32].mxu0 %vm622_vm0, %v1982_v21  ;;  %v2025_v21 = vld [vmem:[%s2082_s23 + $0x1e8] sm:$0xff]  }
  0x52   : > { %1920 = vmatmul.mubr.msk.bf16.gmra.mrb[32].mxu1 %vm622_vm0, %v1983_v22  ;;  %937 = vmatprep.mubr.bf16.mxu0 %v2038_v2 }
  0x53   : > { %1257 = vmatprep.mubr.bf16.mxu1 %v2038_v2 }
  0x59   : > { %1889 = vmatmul.mubr.msk.bf16.gmra.mrb[36].mxu0 %vm622_vm0, %v1984_v23 }
  0x5a   : > { %1921 = vmatmul.mubr.msk.bf16.gmra.mrb[36].mxu1 %vm622_vm0, %v1985_v24  ;;  %947 = vmatprep.mubr.bf16.mxu0 %v2038_v2 }
  0x5b   : > { %1267 = vmatprep.mubr.bf16.mxu1 %v2038_v2 }
  0x61   : > { %1890 = vmatmul.mubr.msk.bf16.gmra.mrb[40].mxu0 %vm622_vm0, %v1986_v25 }
  0x62   : > { %1922 = vmatmul.mubr.msk.bf16.gmra.mrb[40].mxu1 %vm622_vm0, %v1987_v26  ;;  %957 = vmatprep.mubr.bf16.mxu0 %v2038_v2 }
  0x63   : > { %1277 = vmatprep.mubr.bf16.mxu1 %v2038_v2 }
  0x69   : > { %1891 = vmatmul.mubr.msk.bf16.gmra.mrb[44].mxu0 %vm622_vm0, %v1988_v27 }
  0x6a   : > { %1923 = vmatmul.mubr.msk.bf16.gmra.mrb[44].mxu1 %vm622_vm0, %v1989_v28  ;;  %967 = vmatprep.mubr.bf16.mxu0 %v2038_v2 }
  0x6b   : > { %1287 = vmatprep.mubr.bf16.mxu1 %v2038_v2 }
  0x71   : > { %1892 = vmatmul.mubr.msk.bf16.gmra.mrb[48].mxu0 %vm622_vm0, %v1990_v29 }
  0x72   : > { %1924 = vmatmul.mubr.msk.bf16.gmra.mrb[48].mxu1 %vm622_vm0, %v1991_v30  ;;  %977 = vmatprep.mubr.bf16.mxu0 %v2038_v2  ;;  %v2026_v30 = vld [vmem:[%s2082_s23 + $0xf0] sm:$0xff]  }
  0x73   : > { %1297 = vmatprep.mubr.bf16.mxu1 %v2038_v2 }
  0x79   : > { %1893 = vmatmul.mubr.msk.bf16.gmra.mrb[52].mxu0 %vm622_vm0, %v1992_v31  ;;  %v2027_v31 = vld [vmem:[%s2082_s23 + $0x1f0] sm:$0xff]  }
  0x7a   : > { %1925 = vmatmul.mubr.msk.bf16.gmra.mrb[52].mxu1 %vm622_vm0, %v1993_v32  ;;  %987 = vmatprep.mubr.bf16.mxu0 %v2038_v2 }
  0x7b   : > { %1307 = vmatprep.mubr.bf16.mxu1 %v2038_v2 }
  0x81   : > { %1894 = vmatmul.mubr.msk.bf16.gmra.mrb[56].mxu0 %vm622_vm0, %v1994_v33 }
  0x82   : > { %1926 = vmatmul.mubr.msk.bf16.gmra.mrb[56].mxu1 %vm622_vm0, %v1995_v34  ;;  %997 = vmatprep.mubr.bf16.mxu0 %v2038_v2 }
  0x83   : > { %1317 = vmatprep.mubr.bf16.mxu1 %v2038_v2 }
  0x89   : > { %1895 = vmatmul.mubr.msk.bf16.gmra.mrb[60].mxu0 %vm622_vm0, %v1996_v35 }
  0x8a   : > { %1927 = vmatmul.mubr.msk.bf16.gmra.mrb[60].mxu1 %vm622_vm0, %v1997_v36  ;;  %1007 = vmatprep.mubr.bf16.mxu0 %v2038_v2 }
  0x8b   : > { %1327 = vmatprep.mubr.bf16.mxu1 %v2038_v2 }
  0x91   : > { %1896 = vmatmul.mubr.msk.bf16.gmra.mrb[64].mxu0 %vm622_vm0, %v1998_v37 }
  0x92   : > { %1928 = vmatmul.mubr.msk.bf16.gmra.mrb[64].mxu1 %vm622_vm0, %v1999_v38  ;;  %1017 = vmatprep.mubr.bf16.mxu0 %v2038_v2 }
  0x93   : > { %1337 = vmatprep.mubr.bf16.mxu1 %v2038_v2 }
  0x99   : > { %1897 = vmatmul.mubr.msk.bf16.gmra.mrb[68].mxu0 %vm622_vm0, %v2000_v39 }
  0x9a   : > { %1929 = vmatmul.mubr.msk.bf16.gmra.mrb[68].mxu1 %vm622_vm0, %v2001_v40  ;;  %1027 = vmatprep.mubr.bf16.mxu0 %v2038_v2  ;;  %v2028_v40 = vld [vmem:[%s2082_s23 + $0xf8] sm:$0xff]  }
  0x9b   : > { %1347 = vmatprep.mubr.bf16.mxu1 %v2038_v2 }
  0xa1   : > { %1898 = vmatmul.mubr.msk.bf16.gmra.mrb[72].mxu0 %vm622_vm0, %v2002_v41  ;;  %v2029_v41 = vld [vmem:[%s2082_s23 + $0x1f8] sm:$0xff]  }
  0xa2   : > { %1930 = vmatmul.mubr.msk.bf16.gmra.mrb[72].mxu1 %vm622_vm0, %v2003_v42  ;;  %1037 = vmatprep.mubr.bf16.mxu0 %v2038_v2 }
  0xa3   : > { %1357 = vmatprep.mubr.bf16.mxu1 %v2038_v2 }
  0xa9   : > { %1899 = vmatmul.mubr.msk.bf16.gmra.mrb[76].mxu0 %vm622_vm0, %v2004_v43 }
  0xaa   : > { %1931 = vmatmul.mubr.msk.bf16.gmra.mrb[76].mxu1 %vm622_vm0, %v2005_v44  ;;  %1047 = vmatprep.mubr.bf16.mxu0 %v2038_v2 }
  0xab   : > { %1367 = vmatprep.mubr.bf16.mxu1 %v2038_v2 }
  0xb1   : > { %1900 = vmatmul.mubr.msk.bf16.gmra.mrb[80].mxu0 %vm622_vm0, %v2006_v45 }
  0xb2   : > { %1932 = vmatmul.mubr.msk.bf16.gmra.mrb[80].mxu1 %vm622_vm0, %v2007_v46  ;;  %1057 = vmatprep.mubr.bf16.mxu0 %v2038_v2 }
  0xb3   : > { %1377 = vmatprep.mubr.bf16.mxu1 %v2038_v2 }
  0xb9   : > { %1901 = vmatmul.mubr.msk.bf16.gmra.mrb[84].mxu0 %vm622_vm0, %v2008_v47 }
  0xba   : > { %1933 = vmatmul.mubr.msk.bf16.gmra.mrb[84].mxu1 %vm622_vm0, %v2009_v48  ;;  %1067 = vmatprep.mubr.bf16.mxu0 %v2038_v2 }
  0xbb   : > { %1387 = vmatprep.mubr.bf16.mxu1 %v2038_v2 }
  0xc1   : > { %1902 = vmatmul.mubr.msk.bf16.gmra.mrb[88].mxu0 %vm622_vm0, %v2010_v49 }
  0xc2   : > { %1934 = vmatmul.mubr.msk.bf16.gmra.mrb[88].mxu1 %vm622_vm0, %v2011_v50  ;;  %1077 = vmatprep.mubr.bf16.mxu0 %v2038_v2 }
  0xc3   : > { %1397 = vmatprep.mubr.bf16.mxu1 %v2038_v2 }
  0xc9   : > { %1903 = vmatmul.mubr.msk.bf16.gmra.mrb[92].mxu0 %vm622_vm0, %v2012_v51 }
  0xca   : > { %1935 = vmatmul.mubr.msk.bf16.gmra.mrb[92].mxu1 %vm622_vm0, %v2013_v52  ;;  %1087 = vmatprep.mubr.bf16.mxu0 %v2038_v2 }
  0xcb   : > { %1407 = vmatprep.mubr.bf16.mxu1 %v2038_v2 }
  0xd1   : > { %1904 = vmatmul.mubr.msk.bf16.gmra.mrb[96].mxu0 %vm622_vm0, %v2014_v53 }
  0xd2   : > { %1936 = vmatmul.mubr.msk.bf16.gmra.mrb[96].mxu1 %vm622_vm0, %v2015_v54  ;;  %1097 = vmatprep.mubr.bf16.mxu0 %v2038_v2 }
  0xd3   : > { %1417 = vmatprep.mubr.bf16.mxu1 %v2038_v2 }
  0xd9   : > { %1905 = vmatmul.mubr.msk.bf16.gmra.mrb[100].mxu0 %vm622_vm0, %v2016_v55 }
  0xda   : > { %1937 = vmatmul.mubr.msk.bf16.gmra.mrb[100].mxu1 %vm622_vm0, %v2017_v56  ;;  %1107 = vmatprep.mubr.bf16.mxu0 %v2038_v2 }
  0xdb   : > { %1427 = vmatprep.mubr.bf16.mxu1 %v2038_v2 }
  0xe1   : > { %1906 = vmatmul.mubr.msk.bf16.gmra.mrb[104].mxu0 %vm622_vm0, %v2018_v57 }
  0xe2   : > { %1938 = vmatmul.mubr.msk.bf16.gmra.mrb[104].mxu1 %vm622_vm0, %v2019_v58  ;;  %1117 = vmatprep.mubr.bf16.mxu0 %v2038_v2 }
  0xe3   : > { %1437 = vmatprep.mubr.bf16.mxu1 %v2038_v2 }
  0xe4   : > { %v849_v59 = vpop.f32.mrb[0].mxu0 }
  0xe5   : > { %v1169_v60 = vpop.f32.mrb[0].mxu1  ;;  %1488 = vst [vmem:[%s2248_s27] sm:$0xff] %v849_v59  ;;  %v851_v61 = vpop.f32.mrb[1].mxu0 }
  0xe6   : > { %1616 = vst [vmem:[%s2248_s27 + $0x400] sm:$0xff] %v1169_v60  ;;  %v1171_v62 = vpop.f32.mrb[1].mxu1  ;;  %1489 = vst [vmem:[%s2248_s27 + $0x8] sm:$0xff] %v851_v61  ;;  %v853_v1 = vpop.f32.mrb[2].mxu0 }
  0xe7   : > { %1617 = vst [vmem:[%s2248_s27 + $0x408] sm:$0xff] %v1171_v62  ;;  %v1173_v3 = vpop.f32.mrb[2].mxu1  ;;  %1490 = vst [vmem:[%s2248_s27 + $0x10] sm:$0xff] %v853_v1  ;;  %v855_v4 = vpop.f32.mrb[3].mxu0 }
  0xe8   : > { %1618 = vst [vmem:[%s2248_s27 + $0x410] sm:$0xff] %v1173_v3  ;;  %v1175_v5 = vpop.f32.mrb[3].mxu1  ;;  %1491 = vst [vmem:[%s2248_s27 + $0x18] sm:$0xff] %v855_v4 }
  0xe9   : > { %1619 = vst [vmem:[%s2248_s27 + $0x418] sm:$0xff] %v1175_v5  ;;  %1907 = vmatmul.mubr.msk.bf16.gmra.mrb[108].mxu0 %vm622_vm0, %v2020_v63 }
  0xea   : > { %1939 = vmatmul.mubr.msk.bf16.gmra.mrb[108].mxu1 %vm622_vm0, %v2021_v0  ;;  %1127 = vmatprep.mubr.bf16.mxu0 %v2038_v2 }
  0xeb   : > { %1447 = vmatprep.mubr.bf16.mxu1 %v2038_v2 }
  0xec   : > { %v859_v6 = vpop.f32.mrb[4].mxu0 }
  0xed   : > { %v1179_v7 = vpop.f32.mrb[4].mxu1  ;;  %1492 = vst [vmem:[%s2248_s27 + $0x20] sm:$0xff] %v859_v6  ;;  %v861_v8 = vpop.f32.mrb[5].mxu0 }
  0xee   : > { %1620 = vst [vmem:[%s2248_s27 + $0x420] sm:$0xff] %v1179_v7  ;;  %v1181_v9 = vpop.f32.mrb[5].mxu1  ;;  %1493 = vst [vmem:[%s2248_s27 + $0x28] sm:$0xff] %v861_v8  ;;  %v863_v12 = vpop.f32.mrb[6].mxu0 }
  0xef   : > { %1621 = vst [vmem:[%s2248_s27 + $0x428] sm:$0xff] %v1181_v9  ;;  %v1183_v13 = vpop.f32.mrb[6].mxu1  ;;  %1494 = vst [vmem:[%s2248_s27 + $0x30] sm:$0xff] %v863_v12  ;;  %v865_v14 = vpop.f32.mrb[7].mxu0 }
  0xf0   : > { %1622 = vst [vmem:[%s2248_s27 + $0x430] sm:$0xff] %v1183_v13  ;;  %v1185_v15 = vpop.f32.mrb[7].mxu1  ;;  %1495 = vst [vmem:[%s2248_s27 + $0x38] sm:$0xff] %v865_v14 }
  0xf1   : > { %1623 = vst [vmem:[%s2248_s27 + $0x438] sm:$0xff] %v1185_v15  ;;  %1908 = vmatmul.mubr.msk.bf16.gmra.mrb[112].mxu0 %vm622_vm0, %v2022_v10 }
  0xf2   : > { %1940 = vmatmul.mubr.msk.bf16.gmra.mrb[112].mxu1 %vm622_vm0, %v2023_v11  ;;  %1137 = vmatprep.mubr.bf16.mxu0 %v2038_v2 }
  0xf3   : > { %1457 = vmatprep.mubr.bf16.mxu1 %v2038_v2 }
  0xf4   : > { %v869_v16 = vpop.f32.mrb[8].mxu0 }
  0xf5   : > { %v1189_v17 = vpop.f32.mrb[8].mxu1  ;;  %1496 = vst [vmem:[%s2248_s27 + $0x40] sm:$0xff] %v869_v16  ;;  %v871_v18 = vpop.f32.mrb[9].mxu0 }
  0xf6   : > { %1624 = vst [vmem:[%s2248_s27 + $0x440] sm:$0xff] %v1189_v17  ;;  %v1191_v19 = vpop.f32.mrb[9].mxu1  ;;  %1497 = vst [vmem:[%s2248_s27 + $0x48] sm:$0xff] %v871_v18  ;;  %v873_v22 = vpop.f32.mrb[10].mxu0 }
  0xf7   : > { %1625 = vst [vmem:[%s2248_s27 + $0x448] sm:$0xff] %v1191_v19  ;;  %v1193_v23 = vpop.f32.mrb[10].mxu1  ;;  %1498 = vst [vmem:[%s2248_s27 + $0x50] sm:$0xff] %v873_v22  ;;  %v875_v24 = vpop.f32.mrb[11].mxu0 }
  0xf8   : > { %1626 = vst [vmem:[%s2248_s27 + $0x450] sm:$0xff] %v1193_v23  ;;  %v1195_v25 = vpop.f32.mrb[11].mxu1  ;;  %1499 = vst [vmem:[%s2248_s27 + $0x58] sm:$0xff] %v875_v24 }
  0xf9   : > { %1627 = vst [vmem:[%s2248_s27 + $0x458] sm:$0xff] %v1195_v25  ;;  %1909 = vmatmul.mubr.msk.bf16.gmra.mrb[116].mxu0 %vm622_vm0, %v2024_v20 }
  0xfa   : > { %1941 = vmatmul.mubr.msk.bf16.gmra.mrb[116].mxu1 %vm622_vm0, %v2025_v21  ;;  %1147 = vmatprep.mubr.bf16.mxu0 %v2038_v2 }
  0xfb   : > { %1467 = vmatprep.mubr.bf16.mxu1 %v2038_v2 }
  0xfc   : > { %v879_v26 = vpop.f32.mrb[12].mxu0 }
  0xfd   : > { %v1199_v27 = vpop.f32.mrb[12].mxu1  ;;  %1500 = vst [vmem:[%s2248_s27 + $0x60] sm:$0xff] %v879_v26  ;;  %v881_v28 = vpop.f32.mrb[13].mxu0 }
  0xfe   : > { %1628 = vst [vmem:[%s2248_s27 + $0x460] sm:$0xff] %v1199_v27  ;;  %v1201_v29 = vpop.f32.mrb[13].mxu1  ;;  %1501 = vst [vmem:[%s2248_s27 + $0x68] sm:$0xff] %v881_v28  ;;  %v883_v32 = vpop.f32.mrb[14].mxu0 }
  0xff   : > { %1629 = vst [vmem:[%s2248_s27 + $0x468] sm:$0xff] %v1201_v29  ;;  %v1203_v33 = vpop.f32.mrb[14].mxu1  ;;  %1502 = vst [vmem:[%s2248_s27 + $0x70] sm:$0xff] %v883_v32  ;;  %v885_v34 = vpop.f32.mrb[15].mxu0 }
 0x100   : > { %1630 = vst [vmem:[%s2248_s27 + $0x470] sm:$0xff] %v1203_v33  ;;  %v1205_v35 = vpop.f32.mrb[15].mxu1  ;;  %1503 = vst [vmem:[%s2248_s27 + $0x78] sm:$0xff] %v885_v34 }
 0x101   : > { %1631 = vst [vmem:[%s2248_s27 + $0x478] sm:$0xff] %v1205_v35  ;;  %1910 = vmatmul.mubr.msk.bf16.gmra.mrb[120].mxu0 %vm622_vm0, %v2026_v30 }
 0x102   : > { %1942 = vmatmul.mubr.msk.bf16.gmra.mrb[120].mxu1 %vm622_vm0, %v2027_v31  ;;  %1157 = vmatprep.mubr.bf16.mxu0 %v2038_v2 }
 0x103   : > { %1477 = vmatprep.mubr.bf16.mxu1 %v2038_v2 }
 0x104   : > { %v889_v36 = vpop.f32.mrb[16].mxu0 }
 0x105   : > { %v1209_v37 = vpop.f32.mrb[16].mxu1  ;;  %1504 = vst [vmem:[%s2248_s27 + $0x80] sm:$0xff] %v889_v36  ;;  %v891_v38 = vpop.f32.mrb[17].mxu0 }
 0x106   : > { %1632 = vst [vmem:[%s2248_s27 + $0x480] sm:$0xff] %v1209_v37  ;;  %v1211_v39 = vpop.f32.mrb[17].mxu1  ;;  %1505 = vst [vmem:[%s2248_s27 + $0x88] sm:$0xff] %v891_v38  ;;  %v893_v42 = vpop.f32.mrb[18].mxu0 }
 0x107   : > { %1633 = vst [vmem:[%s2248_s27 + $0x488] sm:$0xff] %v1211_v39  ;;  %v1213_v43 = vpop.f32.mrb[18].mxu1  ;;  %1506 = vst [vmem:[%s2248_s27 + $0x90] sm:$0xff] %v893_v42  ;;  %v895_v2 = vpop.f32.mrb[19].mxu0 }
 0x108   : > { %1634 = vst [vmem:[%s2248_s27 + $0x490] sm:$0xff] %v1213_v43  ;;  %v1215_v44 = vpop.f32.mrb[19].mxu1  ;;  %1507 = vst [vmem:[%s2248_s27 + $0x98] sm:$0xff] %v895_v2 }
 0x109   : > { %1635 = vst [vmem:[%s2248_s27 + $0x498] sm:$0xff] %v1215_v44  ;;  %1911 = vmatmul.mubr.msk.bf16.gmra.mrb[124].mxu0 %vm622_vm0, %v2028_v40 }
 0x10a   : > { %1943 = vmatmul.mubr.msk.bf16.gmra.mrb[124].mxu1 %vm622_vm0, %v2029_v41 }
 0x10c   : > { %v899_v45 = vpop.f32.mrb[20].mxu0 }
 0x10d   : > { %v1219_v46 = vpop.f32.mrb[20].mxu1  ;;  %1508 = vst [vmem:[%s2248_s27 + $0xa0] sm:$0xff] %v899_v45  ;;  %v901_v47 = vpop.f32.mrb[21].mxu0 }
 0x10e   : > { %1636 = vst [vmem:[%s2248_s27 + $0x4a0] sm:$0xff] %v1219_v46  ;;  %v1221_v48 = vpop.f32.mrb[21].mxu1  ;;  %1509 = vst [vmem:[%s2248_s27 + $0xa8] sm:$0xff] %v901_v47  ;;  %v903_v49 = vpop.f32.mrb[22].mxu0 }
 0x10f   : > { %1637 = vst [vmem:[%s2248_s27 + $0x4a8] sm:$0xff] %v1221_v48  ;;  %v1223_v50 = vpop.f32.mrb[22].mxu1  ;;  %1510 = vst [vmem:[%s2248_s27 + $0xb0] sm:$0xff] %v903_v49  ;;  %v905_v51 = vpop.f32.mrb[23].mxu0 }
 0x110   : > { %1638 = vst [vmem:[%s2248_s27 + $0x4b0] sm:$0xff] %v1223_v50  ;;  %v1225_v52 = vpop.f32.mrb[23].mxu1  ;;  %1511 = vst [vmem:[%s2248_s27 + $0xb8] sm:$0xff] %v905_v51 }
 0x111   : > { %1639 = vst [vmem:[%s2248_s27 + $0x4b8] sm:$0xff] %v1225_v52 }
 0x114   : > { %v909_v53 = vpop.f32.mrb[24].mxu0 }
 0x115   : > { %v1229_v54 = vpop.f32.mrb[24].mxu1  ;;  %1512 = vst [vmem:[%s2248_s27 + $0xc0] sm:$0xff] %v909_v53  ;;  %v911_v55 = vpop.f32.mrb[25].mxu0 }
 0x116   : > { %1640 = vst [vmem:[%s2248_s27 + $0x4c0] sm:$0xff] %v1229_v54  ;;  %v1231_v56 = vpop.f32.mrb[25].mxu1  ;;  %1513 = vst [vmem:[%s2248_s27 + $0xc8] sm:$0xff] %v911_v55  ;;  %v913_v57 = vpop.f32.mrb[26].mxu0 }
 0x117   : > { %1641 = vst [vmem:[%s2248_s27 + $0x4c8] sm:$0xff] %v1231_v56  ;;  %v1233_v58 = vpop.f32.mrb[26].mxu1  ;;  %1514 = vst [vmem:[%s2248_s27 + $0xd0] sm:$0xff] %v913_v57  ;;  %v915_v59 = vpop.f32.mrb[27].mxu0 }
 0x118   : > { %1642 = vst [vmem:[%s2248_s27 + $0x4d0] sm:$0xff] %v1233_v58  ;;  %v1235_v60 = vpop.f32.mrb[27].mxu1  ;;  %1515 = vst [vmem:[%s2248_s27 + $0xd8] sm:$0xff] %v915_v59 }
 0x119   : > { %1643 = vst [vmem:[%s2248_s27 + $0x4d8] sm:$0xff] %v1235_v60 }
 0x11c   : > { %v919_v61 = vpop.f32.mrb[28].mxu0 }
 0x11d   : > { %v1239_v62 = vpop.f32.mrb[28].mxu1  ;;  %1516 = vst [vmem:[%s2248_s27 + $0xe0] sm:$0xff] %v919_v61  ;;  %v921_v63 = vpop.f32.mrb[29].mxu0 }
 0x11e   : > { %1644 = vst [vmem:[%s2248_s27 + $0x4e0] sm:$0xff] %v1239_v62  ;;  %v1241_v0 = vpop.f32.mrb[29].mxu1  ;;  %1517 = vst [vmem:[%s2248_s27 + $0xe8] sm:$0xff] %v921_v63  ;;  %v923_v1 = vpop.f32.mrb[30].mxu0 }
 0x11f   : > { %1645 = vst [vmem:[%s2248_s27 + $0x4e8] sm:$0xff] %v1241_v0  ;;  %v1243_v3 = vpop.f32.mrb[30].mxu1  ;;  %1518 = vst [vmem:[%s2248_s27 + $0xf0] sm:$0xff] %v923_v1  ;;  %v925_v4 = vpop.f32.mrb[31].mxu0 }
 0x120   : > { %1646 = vst [vmem:[%s2248_s27 + $0x4f0] sm:$0xff] %v1243_v3  ;;  %v1245_v5 = vpop.f32.mrb[31].mxu1  ;;  %1519 = vst [vmem:[%s2248_s27 + $0xf8] sm:$0xff] %v925_v4 }
 0x121   : > { %1647 = vst [vmem:[%s2248_s27 + $0x4f8] sm:$0xff] %v1245_v5 }
 0x124   : > { %v929_v6 = vpop.f32.mrb[32].mxu0 }
 0x125   : > { %v1249_v7 = vpop.f32.mrb[32].mxu1  ;;  %1520 = vst [vmem:[%s2248_s27 + $0x100] sm:$0xff] %v929_v6  ;;  %v931_v8 = vpop.f32.mrb[33].mxu0 }
 0x126   : > { %1648 = vst [vmem:[%s2248_s27 + $0x500] sm:$0xff] %v1249_v7  ;;  %v1251_v9 = vpop.f32.mrb[33].mxu1  ;;  %1521 = vst [vmem:[%s2248_s27 + $0x108] sm:$0xff] %v931_v8  ;;  %v933_v10 = vpop.f32.mrb[34].mxu0 }
 0x127   : > { %1649 = vst [vmem:[%s2248_s27 + $0x508] sm:$0xff] %v1251_v9  ;;  %v1253_v11 = vpop.f32.mrb[34].mxu1  ;;  %1522 = vst [vmem:[%s2248_s27 + $0x110] sm:$0xff] %v933_v10  ;;  %v935_v12 = vpop.f32.mrb[35].mxu0 }
 0x128   : > { %1650 = vst [vmem:[%s2248_s27 + $0x510] sm:$0xff] %v1253_v11  ;;  %v1255_v13 = vpop.f32.mrb[35].mxu1  ;;  %1523 = vst [vmem:[%s2248_s27 + $0x118] sm:$0xff] %v935_v12 }
 0x129   : > { %1651 = vst [vmem:[%s2248_s27 + $0x518] sm:$0xff] %v1255_v13 }
 0x12c   : > { %v939_v14 = vpop.f32.mrb[36].mxu0 }
 0x12d   : > { %v1259_v15 = vpop.f32.mrb[36].mxu1  ;;  %1524 = vst [vmem:[%s2248_s27 + $0x120] sm:$0xff] %v939_v14  ;;  %v941_v16 = vpop.f32.mrb[37].mxu0 }
 0x12e   : > { %1652 = vst [vmem:[%s2248_s27 + $0x520] sm:$0xff] %v1259_v15  ;;  %v1261_v17 = vpop.f32.mrb[37].mxu1  ;;  %1525 = vst [vmem:[%s2248_s27 + $0x128] sm:$0xff] %v941_v16  ;;  %v943_v18 = vpop.f32.mrb[38].mxu0 }
 0x12f   : > { %1653 = vst [vmem:[%s2248_s27 + $0x528] sm:$0xff] %v1261_v17  ;;  %v1263_v19 = vpop.f32.mrb[38].mxu1  ;;  %1526 = vst [vmem:[%s2248_s27 + $0x130] sm:$0xff] %v943_v18  ;;  %v945_v20 = vpop.f32.mrb[39].mxu0 }
 0x130   : > { %1654 = vst [vmem:[%s2248_s27 + $0x530] sm:$0xff] %v1263_v19  ;;  %v1265_v21 = vpop.f32.mrb[39].mxu1  ;;  %1527 = vst [vmem:[%s2248_s27 + $0x138] sm:$0xff] %v945_v20 }
 0x131   : > { %1655 = vst [vmem:[%s2248_s27 + $0x538] sm:$0xff] %v1265_v21 }
 0x134   : > { %v949_v22 = vpop.f32.mrb[40].mxu0 }
 0x135   : > { %v1269_v23 = vpop.f32.mrb[40].mxu1  ;;  %1528 = vst [vmem:[%s2248_s27 + $0x140] sm:$0xff] %v949_v22  ;;  %v951_v24 = vpop.f32.mrb[41].mxu0 }
 0x136   : > { %1656 = vst [vmem:[%s2248_s27 + $0x540] sm:$0xff] %v1269_v23  ;;  %v1271_v25 = vpop.f32.mrb[41].mxu1  ;;  %1529 = vst [vmem:[%s2248_s27 + $0x148] sm:$0xff] %v951_v24  ;;  %v953_v26 = vpop.f32.mrb[42].mxu0 }
 0x137   : > { %1657 = vst [vmem:[%s2248_s27 + $0x548] sm:$0xff] %v1271_v25  ;;  %v1273_v27 = vpop.f32.mrb[42].mxu1  ;;  %1530 = vst [vmem:[%s2248_s27 + $0x150] sm:$0xff] %v953_v26  ;;  %v955_v28 = vpop.f32.mrb[43].mxu0 }
 0x138   : > { %1658 = vst [vmem:[%s2248_s27 + $0x550] sm:$0xff] %v1273_v27  ;;  %v1275_v29 = vpop.f32.mrb[43].mxu1  ;;  %1531 = vst [vmem:[%s2248_s27 + $0x158] sm:$0xff] %v955_v28 }
 0x139   : > { %1659 = vst [vmem:[%s2248_s27 + $0x558] sm:$0xff] %v1275_v29 }
 0x13c   : > { %v959_v30 = vpop.f32.mrb[44].mxu0 }
 0x13d   : > { %v1279_v31 = vpop.f32.mrb[44].mxu1  ;;  %1532 = vst [vmem:[%s2248_s27 + $0x160] sm:$0xff] %v959_v30  ;;  %v961_v32 = vpop.f32.mrb[45].mxu0 }
 0x13e   : > { %1660 = vst [vmem:[%s2248_s27 + $0x560] sm:$0xff] %v1279_v31  ;;  %v1281_v33 = vpop.f32.mrb[45].mxu1  ;;  %1533 = vst [vmem:[%s2248_s27 + $0x168] sm:$0xff] %v961_v32  ;;  %v963_v34 = vpop.f32.mrb[46].mxu0 }
 0x13f   : > { %1661 = vst [vmem:[%s2248_s27 + $0x568] sm:$0xff] %v1281_v33  ;;  %v1283_v35 = vpop.f32.mrb[46].mxu1  ;;  %1534 = vst [vmem:[%s2248_s27 + $0x170] sm:$0xff] %v963_v34  ;;  %v965_v36 = vpop.f32.mrb[47].mxu0 }
 0x140   : > { %1662 = vst [vmem:[%s2248_s27 + $0x570] sm:$0xff] %v1283_v35  ;;  %v1285_v37 = vpop.f32.mrb[47].mxu1  ;;  %1535 = vst [vmem:[%s2248_s27 + $0x178] sm:$0xff] %v965_v36 }
 0x141   : > { %1663 = vst [vmem:[%s2248_s27 + $0x578] sm:$0xff] %v1285_v37 }
 0x144   : > { %v969_v38 = vpop.f32.mrb[48].mxu0 }
 0x145   : > { %v1289_v39 = vpop.f32.mrb[48].mxu1  ;;  %1536 = vst [vmem:[%s2248_s27 + $0x180] sm:$0xff] %v969_v38  ;;  %v971_v40 = vpop.f32.mrb[49].mxu0 }
 0x146   : > { %1664 = vst [vmem:[%s2248_s27 + $0x580] sm:$0xff] %v1289_v39  ;;  %v1291_v41 = vpop.f32.mrb[49].mxu1  ;;  %1537 = vst [vmem:[%s2248_s27 + $0x188] sm:$0xff] %v971_v40  ;;  %v973_v42 = vpop.f32.mrb[50].mxu0 }
 0x147   : > { %1665 = vst [vmem:[%s2248_s27 + $0x588] sm:$0xff] %v1291_v41  ;;  %v1293_v43 = vpop.f32.mrb[50].mxu1  ;;  %1538 = vst [vmem:[%s2248_s27 + $0x190] sm:$0xff] %v973_v42  ;;  %v975_v2 = vpop.f32.mrb[51].mxu0 }
 0x148   : > { %1666 = vst [vmem:[%s2248_s27 + $0x590] sm:$0xff] %v1293_v43  ;;  %v1295_v44 = vpop.f32.mrb[51].mxu1  ;;  %1539 = vst [vmem:[%s2248_s27 + $0x198] sm:$0xff] %v975_v2 }
 0x149   : > { %1667 = vst [vmem:[%s2248_s27 + $0x598] sm:$0xff] %v1295_v44 }
 0x14c   : > { %v979_v45 = vpop.f32.mrb[52].mxu0 }
 0x14d   : > { %v1299_v46 = vpop.f32.mrb[52].mxu1  ;;  %1540 = vst [vmem:[%s2248_s27 + $0x1a0] sm:$0xff] %v979_v45  ;;  %v981_v47 = vpop.f32.mrb[53].mxu0 }
 0x14e   : > { %1668 = vst [vmem:[%s2248_s27 + $0x5a0] sm:$0xff] %v1299_v46  ;;  %v1301_v48 = vpop.f32.mrb[53].mxu1  ;;  %1541 = vst [vmem:[%s2248_s27 + $0x1a8] sm:$0xff] %v981_v47  ;;  %v983_v49 = vpop.f32.mrb[54].mxu0 }
 0x14f   : > { %1669 = vst [vmem:[%s2248_s27 + $0x5a8] sm:$0xff] %v1301_v48  ;;  %v1303_v50 = vpop.f32.mrb[54].mxu1  ;;  %1542 = vst [vmem:[%s2248_s27 + $0x1b0] sm:$0xff] %v983_v49  ;;  %v985_v51 = vpop.f32.mrb[55].mxu0 }
 0x150   : > { %1670 = vst [vmem:[%s2248_s27 + $0x5b0] sm:$0xff] %v1303_v50  ;;  %v1305_v52 = vpop.f32.mrb[55].mxu1  ;;  %1543 = vst [vmem:[%s2248_s27 + $0x1b8] sm:$0xff] %v985_v51 }
 0x151   : > { %1671 = vst [vmem:[%s2248_s27 + $0x5b8] sm:$0xff] %v1305_v52 }
 0x154   : > { %v989_v53 = vpop.f32.mrb[56].mxu0 }
 0x155   : > { %v1309_v54 = vpop.f32.mrb[56].mxu1  ;;  %1544 = vst [vmem:[%s2248_s27 + $0x1c0] sm:$0xff] %v989_v53  ;;  %v991_v55 = vpop.f32.mrb[57].mxu0 }
 0x156   : > { %1672 = vst [vmem:[%s2248_s27 + $0x5c0] sm:$0xff] %v1309_v54  ;;  %v1311_v56 = vpop.f32.mrb[57].mxu1  ;;  %1545 = vst [vmem:[%s2248_s27 + $0x1c8] sm:$0xff] %v991_v55  ;;  %v993_v57 = vpop.f32.mrb[58].mxu0 }
 0x157   : > { %1673 = vst [vmem:[%s2248_s27 + $0x5c8] sm:$0xff] %v1311_v56  ;;  %v1313_v58 = vpop.f32.mrb[58].mxu1  ;;  %1546 = vst [vmem:[%s2248_s27 + $0x1d0] sm:$0xff] %v993_v57  ;;  %v995_v59 = vpop.f32.mrb[59].mxu0 }
 0x158   : > { %1674 = vst [vmem:[%s2248_s27 + $0x5d0] sm:$0xff] %v1313_v58  ;;  %v1315_v60 = vpop.f32.mrb[59].mxu1  ;;  %1547 = vst [vmem:[%s2248_s27 + $0x1d8] sm:$0xff] %v995_v59 }
 0x159   : > { %1675 = vst [vmem:[%s2248_s27 + $0x5d8] sm:$0xff] %v1315_v60 }
 0x15c   : > { %v999_v61 = vpop.f32.mrb[60].mxu0 }
 0x15d   : > { %v1319_v62 = vpop.f32.mrb[60].mxu1  ;;  %1548 = vst [vmem:[%s2248_s27 + $0x1e0] sm:$0xff] %v999_v61  ;;  %v1001_v63 = vpop.f32.mrb[61].mxu0 }
 0x15e   : > { %1676 = vst [vmem:[%s2248_s27 + $0x5e0] sm:$0xff] %v1319_v62  ;;  %v1321_v0 = vpop.f32.mrb[61].mxu1  ;;  %1549 = vst [vmem:[%s2248_s27 + $0x1e8] sm:$0xff] %v1001_v63  ;;  %v1003_v1 = vpop.f32.mrb[62].mxu0 }
 0x15f   : > { %1677 = vst [vmem:[%s2248_s27 + $0x5e8] sm:$0xff] %v1321_v0  ;;  %v1323_v3 = vpop.f32.mrb[62].mxu1  ;;  %1550 = vst [vmem:[%s2248_s27 + $0x1f0] sm:$0xff] %v1003_v1  ;;  %v1005_v4 = vpop.f32.mrb[63].mxu0 }
 0x160   : > { %1678 = vst [vmem:[%s2248_s27 + $0x5f0] sm:$0xff] %v1323_v3  ;;  %v1325_v5 = vpop.f32.mrb[63].mxu1  ;;  %1551 = vst [vmem:[%s2248_s27 + $0x1f8] sm:$0xff] %v1005_v4 }
 0x161   : > { %1679 = vst [vmem:[%s2248_s27 + $0x5f8] sm:$0xff] %v1325_v5 }
 0x164   : > { %v1009_v6 = vpop.f32.mrb[64].mxu0 }
 0x165   : > { %v1329_v7 = vpop.f32.mrb[64].mxu1  ;;  %1552 = vst [vmem:[%s2248_s27 + $0x200] sm:$0xff] %v1009_v6  ;;  %v1011_v8 = vpop.f32.mrb[65].mxu0 }
 0x166   : > { %1680 = vst [vmem:[%s2248_s27 + $0x600] sm:$0xff] %v1329_v7  ;;  %v1331_v9 = vpop.f32.mrb[65].mxu1  ;;  %1553 = vst [vmem:[%s2248_s27 + $0x208] sm:$0xff] %v1011_v8  ;;  %v1013_v10 = vpop.f32.mrb[66].mxu0 }
 0x167   : > { %1681 = vst [vmem:[%s2248_s27 + $0x608] sm:$0xff] %v1331_v9  ;;  %v1333_v11 = vpop.f32.mrb[66].mxu1  ;;  %1554 = vst [vmem:[%s2248_s27 + $0x210] sm:$0xff] %v1013_v10  ;;  %v1015_v12 = vpop.f32.mrb[67].mxu0 }
 0x168   : > { %1682 = vst [vmem:[%s2248_s27 + $0x610] sm:$0xff] %v1333_v11  ;;  %v1335_v13 = vpop.f32.mrb[67].mxu1  ;;  %1555 = vst [vmem:[%s2248_s27 + $0x218] sm:$0xff] %v1015_v12 }
 0x169   : > { %1683 = vst [vmem:[%s2248_s27 + $0x618] sm:$0xff] %v1335_v13 }
 0x16c   : > { %v1019_v14 = vpop.f32.mrb[68].mxu0 }
 0x16d   : > { %v1339_v15 = vpop.f32.mrb[68].mxu1  ;;  %1556 = vst [vmem:[%s2248_s27 + $0x220] sm:$0xff] %v1019_v14  ;;  %v1021_v16 = vpop.f32.mrb[69].mxu0 }
 0x16e   : > { %1684 = vst [vmem:[%s2248_s27 + $0x620] sm:$0xff] %v1339_v15  ;;  %v1341_v17 = vpop.f32.mrb[69].mxu1  ;;  %1557 = vst [vmem:[%s2248_s27 + $0x228] sm:$0xff] %v1021_v16  ;;  %v1023_v18 = vpop.f32.mrb[70].mxu0 }
 0x16f   : > { %1685 = vst [vmem:[%s2248_s27 + $0x628] sm:$0xff] %v1341_v17  ;;  %v1343_v19 = vpop.f32.mrb[70].mxu1  ;;  %1558 = vst [vmem:[%s2248_s27 + $0x230] sm:$0xff] %v1023_v18  ;;  %v1025_v20 = vpop.f32.mrb[71].mxu0 }
 0x170   : > { %1686 = vst [vmem:[%s2248_s27 + $0x630] sm:$0xff] %v1343_v19  ;;  %v1345_v21 = vpop.f32.mrb[71].mxu1  ;;  %1559 = vst [vmem:[%s2248_s27 + $0x238] sm:$0xff] %v1025_v20 }
 0x171   : > { %1687 = vst [vmem:[%s2248_s27 + $0x638] sm:$0xff] %v1345_v21 }
 0x174   : > { %v1029_v22 = vpop.f32.mrb[72].mxu0 }
 0x175   : > { %v1349_v23 = vpop.f32.mrb[72].mxu1  ;;  %1560 = vst [vmem:[%s2248_s27 + $0x240] sm:$0xff] %v1029_v22  ;;  %v1031_v24 = vpop.f32.mrb[73].mxu0 }
 0x176   : > { %1688 = vst [vmem:[%s2248_s27 + $0x640] sm:$0xff] %v1349_v23  ;;  %v1351_v25 = vpop.f32.mrb[73].mxu1  ;;  %1561 = vst [vmem:[%s2248_s27 + $0x248] sm:$0xff] %v1031_v24  ;;  %v1033_v26 = vpop.f32.mrb[74].mxu0 }
 0x177   : > { %1689 = vst [vmem:[%s2248_s27 + $0x648] sm:$0xff] %v1351_v25  ;;  %v1353_v27 = vpop.f32.mrb[74].mxu1  ;;  %1562 = vst [vmem:[%s2248_s27 + $0x250] sm:$0xff] %v1033_v26  ;;  %v1035_v28 = vpop.f32.mrb[75].mxu0 }
 0x178   : > { %1690 = vst [vmem:[%s2248_s27 + $0x650] sm:$0xff] %v1353_v27  ;;  %v1355_v29 = vpop.f32.mrb[75].mxu1  ;;  %1563 = vst [vmem:[%s2248_s27 + $0x258] sm:$0xff] %v1035_v28 }
 0x179   : > { %1691 = vst [vmem:[%s2248_s27 + $0x658] sm:$0xff] %v1355_v29 }
 0x17c   : > { %v1039_v30 = vpop.f32.mrb[76].mxu0 }
 0x17d   : > { %v1359_v31 = vpop.f32.mrb[76].mxu1  ;;  %1564 = vst [vmem:[%s2248_s27 + $0x260] sm:$0xff] %v1039_v30  ;;  %v1041_v32 = vpop.f32.mrb[77].mxu0 }
 0x17e   : > { %1692 = vst [vmem:[%s2248_s27 + $0x660] sm:$0xff] %v1359_v31  ;;  %v1361_v33 = vpop.f32.mrb[77].mxu1  ;;  %1565 = vst [vmem:[%s2248_s27 + $0x268] sm:$0xff] %v1041_v32  ;;  %v1043_v34 = vpop.f32.mrb[78].mxu0 }
 0x17f   : > { %1693 = vst [vmem:[%s2248_s27 + $0x668] sm:$0xff] %v1361_v33  ;;  %v1363_v35 = vpop.f32.mrb[78].mxu1  ;;  %1566 = vst [vmem:[%s2248_s27 + $0x270] sm:$0xff] %v1043_v34  ;;  %v1045_v36 = vpop.f32.mrb[79].mxu0 }
 0x180   : > { %1694 = vst [vmem:[%s2248_s27 + $0x670] sm:$0xff] %v1363_v35  ;;  %v1365_v37 = vpop.f32.mrb[79].mxu1  ;;  %1567 = vst [vmem:[%s2248_s27 + $0x278] sm:$0xff] %v1045_v36 }
 0x181   : > { %1695 = vst [vmem:[%s2248_s27 + $0x678] sm:$0xff] %v1365_v37 }
 0x184   : > { %v1049_v38 = vpop.f32.mrb[80].mxu0 }
 0x185   : > { %v1369_v39 = vpop.f32.mrb[80].mxu1  ;;  %1568 = vst [vmem:[%s2248_s27 + $0x280] sm:$0xff] %v1049_v38  ;;  %v1051_v40 = vpop.f32.mrb[81].mxu0 }
 0x186   : > { %1696 = vst [vmem:[%s2248_s27 + $0x680] sm:$0xff] %v1369_v39  ;;  %v1371_v41 = vpop.f32.mrb[81].mxu1  ;;  %1569 = vst [vmem:[%s2248_s27 + $0x288] sm:$0xff] %v1051_v40  ;;  %v1053_v42 = vpop.f32.mrb[82].mxu0 }
 0x187   : > { %1697 = vst [vmem:[%s2248_s27 + $0x688] sm:$0xff] %v1371_v41  ;;  %v1373_v43 = vpop.f32.mrb[82].mxu1  ;;  %1570 = vst [vmem:[%s2248_s27 + $0x290] sm:$0xff] %v1053_v42  ;;  %v1055_v2 = vpop.f32.mrb[83].mxu0 }
 0x188   : > { %1698 = vst [vmem:[%s2248_s27 + $0x690] sm:$0xff] %v1373_v43  ;;  %v1375_v44 = vpop.f32.mrb[83].mxu1  ;;  %1571 = vst [vmem:[%s2248_s27 + $0x298] sm:$0xff] %v1055_v2 }
 0x189   : > { %1699 = vst [vmem:[%s2248_s27 + $0x698] sm:$0xff] %v1375_v44 }
 0x18c   : > { %v1059_v45 = vpop.f32.mrb[84].mxu0 }
 0x18d   : > { %v1379_v46 = vpop.f32.mrb[84].mxu1  ;;  %1572 = vst [vmem:[%s2248_s27 + $0x2a0] sm:$0xff] %v1059_v45  ;;  %v1061_v47 = vpop.f32.mrb[85].mxu0 }
 0x18e   : > { %1700 = vst [vmem:[%s2248_s27 + $0x6a0] sm:$0xff] %v1379_v46  ;;  %v1381_v48 = vpop.f32.mrb[85].mxu1  ;;  %1573 = vst [vmem:[%s2248_s27 + $0x2a8] sm:$0xff] %v1061_v47  ;;  %v1063_v49 = vpop.f32.mrb[86].mxu0 }
 0x18f   : > { %1701 = vst [vmem:[%s2248_s27 + $0x6a8] sm:$0xff] %v1381_v48  ;;  %v1383_v50 = vpop.f32.mrb[86].mxu1  ;;  %1574 = vst [vmem:[%s2248_s27 + $0x2b0] sm:$0xff] %v1063_v49  ;;  %v1065_v51 = vpop.f32.mrb[87].mxu0 }
 0x190   : > { %1702 = vst [vmem:[%s2248_s27 + $0x6b0] sm:$0xff] %v1383_v50  ;;  %v1385_v52 = vpop.f32.mrb[87].mxu1  ;;  %1575 = vst [vmem:[%s2248_s27 + $0x2b8] sm:$0xff] %v1065_v51 }
 0x191   : > { %1703 = vst [vmem:[%s2248_s27 + $0x6b8] sm:$0xff] %v1385_v52 }
 0x194   : > { %v1069_v53 = vpop.f32.mrb[88].mxu0 }
 0x195   : > { %v1389_v54 = vpop.f32.mrb[88].mxu1  ;;  %1576 = vst [vmem:[%s2248_s27 + $0x2c0] sm:$0xff] %v1069_v53  ;;  %v1071_v55 = vpop.f32.mrb[89].mxu0 }
 0x196   : > { %1704 = vst [vmem:[%s2248_s27 + $0x6c0] sm:$0xff] %v1389_v54  ;;  %v1391_v56 = vpop.f32.mrb[89].mxu1  ;;  %1577 = vst [vmem:[%s2248_s27 + $0x2c8] sm:$0xff] %v1071_v55  ;;  %v1073_v57 = vpop.f32.mrb[90].mxu0 }
 0x197   : > { %1705 = vst [vmem:[%s2248_s27 + $0x6c8] sm:$0xff] %v1391_v56  ;;  %v1393_v58 = vpop.f32.mrb[90].mxu1  ;;  %1578 = vst [vmem:[%s2248_s27 + $0x2d0] sm:$0xff] %v1073_v57  ;;  %v1075_v59 = vpop.f32.mrb[91].mxu0 }
 0x198   : > { %1706 = vst [vmem:[%s2248_s27 + $0x6d0] sm:$0xff] %v1393_v58  ;;  %v1395_v60 = vpop.f32.mrb[91].mxu1  ;;  %1579 = vst [vmem:[%s2248_s27 + $0x2d8] sm:$0xff] %v1075_v59 }
 0x199   : > { %1707 = vst [vmem:[%s2248_s27 + $0x6d8] sm:$0xff] %v1395_v60 }
 0x19c   : > { %v1079_v61 = vpop.f32.mrb[92].mxu0 }
 0x19d   : > { %v1399_v62 = vpop.f32.mrb[92].mxu1  ;;  %1580 = vst [vmem:[%s2248_s27 + $0x2e0] sm:$0xff] %v1079_v61  ;;  %v1081_v63 = vpop.f32.mrb[93].mxu0 }
 0x19e   : > { %1708 = vst [vmem:[%s2248_s27 + $0x6e0] sm:$0xff] %v1399_v62  ;;  %v1401_v0 = vpop.f32.mrb[93].mxu1  ;;  %1581 = vst [vmem:[%s2248_s27 + $0x2e8] sm:$0xff] %v1081_v63  ;;  %v1083_v1 = vpop.f32.mrb[94].mxu0 }
 0x19f   : > { %1709 = vst [vmem:[%s2248_s27 + $0x6e8] sm:$0xff] %v1401_v0  ;;  %v1403_v3 = vpop.f32.mrb[94].mxu1  ;;  %1582 = vst [vmem:[%s2248_s27 + $0x2f0] sm:$0xff] %v1083_v1  ;;  %v1085_v4 = vpop.f32.mrb[95].mxu0 }
 0x1a0   : > { %1710 = vst [vmem:[%s2248_s27 + $0x6f0] sm:$0xff] %v1403_v3  ;;  %v1405_v5 = vpop.f32.mrb[95].mxu1  ;;  %1583 = vst [vmem:[%s2248_s27 + $0x2f8] sm:$0xff] %v1085_v4 }
 0x1a1   : > { %1711 = vst [vmem:[%s2248_s27 + $0x6f8] sm:$0xff] %v1405_v5 }
 0x1a4   : > { %v1089_v6 = vpop.f32.mrb[96].mxu0 }
 0x1a5   : > { %v1409_v7 = vpop.f32.mrb[96].mxu1  ;;  %1584 = vst [vmem:[%s2248_s27 + $0x300] sm:$0xff] %v1089_v6  ;;  %v1091_v8 = vpop.f32.mrb[97].mxu0 }
 0x1a6   : > { %1712 = vst [vmem:[%s2248_s27 + $0x700] sm:$0xff] %v1409_v7  ;;  %v1411_v9 = vpop.f32.mrb[97].mxu1  ;;  %1585 = vst [vmem:[%s2248_s27 + $0x308] sm:$0xff] %v1091_v8  ;;  %v1093_v10 = vpop.f32.mrb[98].mxu0 }
 0x1a7   : > { %1713 = vst [vmem:[%s2248_s27 + $0x708] sm:$0xff] %v1411_v9  ;;  %v1413_v11 = vpop.f32.mrb[98].mxu1  ;;  %1586 = vst [vmem:[%s2248_s27 + $0x310] sm:$0xff] %v1093_v10  ;;  %v1095_v12 = vpop.f32.mrb[99].mxu0 }
 0x1a8   : > { %1714 = vst [vmem:[%s2248_s27 + $0x710] sm:$0xff] %v1413_v11  ;;  %v1415_v13 = vpop.f32.mrb[99].mxu1  ;;  %1587 = vst [vmem:[%s2248_s27 + $0x318] sm:$0xff] %v1095_v12 }
 0x1a9   : > { %1715 = vst [vmem:[%s2248_s27 + $0x718] sm:$0xff] %v1415_v13 }
 0x1ac   : > { %v1099_v14 = vpop.f32.mrb[100].mxu0 }
 0x1ad   : > { %v1419_v15 = vpop.f32.mrb[100].mxu1  ;;  %1588 = vst [vmem:[%s2248_s27 + $0x320] sm:$0xff] %v1099_v14  ;;  %v1101_v16 = vpop.f32.mrb[101].mxu0 }
 0x1ae   : > { %1716 = vst [vmem:[%s2248_s27 + $0x720] sm:$0xff] %v1419_v15  ;;  %v1421_v17 = vpop.f32.mrb[101].mxu1  ;;  %1589 = vst [vmem:[%s2248_s27 + $0x328] sm:$0xff] %v1101_v16  ;;  %v1103_v18 = vpop.f32.mrb[102].mxu0 }
 0x1af   : > { %1717 = vst [vmem:[%s2248_s27 + $0x728] sm:$0xff] %v1421_v17  ;;  %v1423_v19 = vpop.f32.mrb[102].mxu1  ;;  %1590 = vst [vmem:[%s2248_s27 + $0x330] sm:$0xff] %v1103_v18  ;;  %v1105_v20 = vpop.f32.mrb[103].mxu0 }
 0x1b0   : > { %1718 = vst [vmem:[%s2248_s27 + $0x730] sm:$0xff] %v1423_v19  ;;  %v1425_v21 = vpop.f32.mrb[103].mxu1  ;;  %1591 = vst [vmem:[%s2248_s27 + $0x338] sm:$0xff] %v1105_v20 }
 0x1b1   : > { %1719 = vst [vmem:[%s2248_s27 + $0x738] sm:$0xff] %v1425_v21 }
 0x1b4   : > { %v1109_v22 = vpop.f32.mrb[104].mxu0 }
 0x1b5   : > { %v1429_v23 = vpop.f32.mrb[104].mxu1  ;;  %1592 = vst [vmem:[%s2248_s27 + $0x340] sm:$0xff] %v1109_v22  ;;  %v1111_v24 = vpop.f32.mrb[105].mxu0 }
 0x1b6   : > { %1720 = vst [vmem:[%s2248_s27 + $0x740] sm:$0xff] %v1429_v23  ;;  %v1431_v25 = vpop.f32.mrb[105].mxu1  ;;  %1593 = vst [vmem:[%s2248_s27 + $0x348] sm:$0xff] %v1111_v24  ;;  %v1113_v26 = vpop.f32.mrb[106].mxu0 }
 0x1b7   : > { %1721 = vst [vmem:[%s2248_s27 + $0x748] sm:$0xff] %v1431_v25  ;;  %v1433_v27 = vpop.f32.mrb[106].mxu1  ;;  %1594 = vst [vmem:[%s2248_s27 + $0x350] sm:$0xff] %v1113_v26  ;;  %v1115_v28 = vpop.f32.mrb[107].mxu0 }
 0x1b8   : > { %1722 = vst [vmem:[%s2248_s27 + $0x750] sm:$0xff] %v1433_v27  ;;  %v1435_v29 = vpop.f32.mrb[107].mxu1  ;;  %1595 = vst [vmem:[%s2248_s27 + $0x358] sm:$0xff] %v1115_v28 }
 0x1b9   : > { %1723 = vst [vmem:[%s2248_s27 + $0x758] sm:$0xff] %v1435_v29 }
 0x1bc   : > { %v1119_v30 = vpop.f32.mrb[108].mxu0 }
 0x1bd   : > { %v1439_v31 = vpop.f32.mrb[108].mxu1  ;;  %1596 = vst [vmem:[%s2248_s27 + $0x360] sm:$0xff] %v1119_v30  ;;  %v1121_v32 = vpop.f32.mrb[109].mxu0 }
 0x1be   : > { %1724 = vst [vmem:[%s2248_s27 + $0x760] sm:$0xff] %v1439_v31  ;;  %v1441_v33 = vpop.f32.mrb[109].mxu1  ;;  %1597 = vst [vmem:[%s2248_s27 + $0x368] sm:$0xff] %v1121_v32  ;;  %v1123_v34 = vpop.f32.mrb[110].mxu0 }
 0x1bf   : > { %1725 = vst [vmem:[%s2248_s27 + $0x768] sm:$0xff] %v1441_v33  ;;  %v1443_v35 = vpop.f32.mrb[110].mxu1  ;;  %1598 = vst [vmem:[%s2248_s27 + $0x370] sm:$0xff] %v1123_v34  ;;  %v1125_v36 = vpop.f32.mrb[111].mxu0 }
 0x1c0   : > { %1726 = vst [vmem:[%s2248_s27 + $0x770] sm:$0xff] %v1443_v35  ;;  %v1445_v37 = vpop.f32.mrb[111].mxu1  ;;  %1599 = vst [vmem:[%s2248_s27 + $0x378] sm:$0xff] %v1125_v36 }
 0x1c1   : > { %1727 = vst [vmem:[%s2248_s27 + $0x778] sm:$0xff] %v1445_v37 }
 0x1c4   : > { %v1129_v38 = vpop.f32.mrb[112].mxu0 }
 0x1c5   : > { %v1449_v39 = vpop.f32.mrb[112].mxu1  ;;  %1600 = vst [vmem:[%s2248_s27 + $0x380] sm:$0xff] %v1129_v38  ;;  %v1131_v40 = vpop.f32.mrb[113].mxu0 }
 0x1c6   : > { %1728 = vst [vmem:[%s2248_s27 + $0x780] sm:$0xff] %v1449_v39  ;;  %v1451_v41 = vpop.f32.mrb[113].mxu1  ;;  %1601 = vst [vmem:[%s2248_s27 + $0x388] sm:$0xff] %v1131_v40  ;;  %v1133_v42 = vpop.f32.mrb[114].mxu0 }
 0x1c7   : > { %1729 = vst [vmem:[%s2248_s27 + $0x788] sm:$0xff] %v1451_v41  ;;  %v1453_v43 = vpop.f32.mrb[114].mxu1  ;;  %1602 = vst [vmem:[%s2248_s27 + $0x390] sm:$0xff] %v1133_v42  ;;  %v1135_v2 = vpop.f32.mrb[115].mxu0 }
 0x1c8   : > { %1730 = vst [vmem:[%s2248_s27 + $0x790] sm:$0xff] %v1453_v43  ;;  %v1455_v44 = vpop.f32.mrb[115].mxu1  ;;  %1603 = vst [vmem:[%s2248_s27 + $0x398] sm:$0xff] %v1135_v2 }
 0x1c9   : > { %1731 = vst [vmem:[%s2248_s27 + $0x798] sm:$0xff] %v1455_v44 }
 0x1cc   : > { %v1139_v45 = vpop.f32.mrb[116].mxu0 }
 0x1cd   : > { %v1459_v46 = vpop.f32.mrb[116].mxu1  ;;  %1604 = vst [vmem:[%s2248_s27 + $0x3a0] sm:$0xff] %v1139_v45  ;;  %v1141_v47 = vpop.f32.mrb[117].mxu0 }
 0x1ce   : > { %1732 = vst [vmem:[%s2248_s27 + $0x7a0] sm:$0xff] %v1459_v46  ;;  %v1461_v48 = vpop.f32.mrb[117].mxu1  ;;  %1605 = vst [vmem:[%s2248_s27 + $0x3a8] sm:$0xff] %v1141_v47  ;;  %v1143_v49 = vpop.f32.mrb[118].mxu0 }
 0x1cf   : > { %1733 = vst [vmem:[%s2248_s27 + $0x7a8] sm:$0xff] %v1461_v48  ;;  %v1463_v50 = vpop.f32.mrb[118].mxu1  ;;  %1606 = vst [vmem:[%s2248_s27 + $0x3b0] sm:$0xff] %v1143_v49  ;;  %v1145_v51 = vpop.f32.mrb[119].mxu0 }
 0x1d0   : > { %1734 = vst [vmem:[%s2248_s27 + $0x7b0] sm:$0xff] %v1463_v50  ;;  %v1465_v52 = vpop.f32.mrb[119].mxu1  ;;  %1607 = vst [vmem:[%s2248_s27 + $0x3b8] sm:$0xff] %v1145_v51 }
 0x1d1   : > { %1735 = vst [vmem:[%s2248_s27 + $0x7b8] sm:$0xff] %v1465_v52 }
 0x1d4   : > { %v1149_v53 = vpop.f32.mrb[120].mxu0 }
 0x1d5   : > { %v1469_v54 = vpop.f32.mrb[120].mxu1  ;;  %1608 = vst [vmem:[%s2248_s27 + $0x3c0] sm:$0xff] %v1149_v53  ;;  %v1151_v55 = vpop.f32.mrb[121].mxu0 }
 0x1d6   : > { %1736 = vst [vmem:[%s2248_s27 + $0x7c0] sm:$0xff] %v1469_v54  ;;  %v1471_v56 = vpop.f32.mrb[121].mxu1  ;;  %1609 = vst [vmem:[%s2248_s27 + $0x3c8] sm:$0xff] %v1151_v55  ;;  %v1153_v57 = vpop.f32.mrb[122].mxu0 }
 0x1d7   : > { %1737 = vst [vmem:[%s2248_s27 + $0x7c8] sm:$0xff] %v1471_v56  ;;  %v1473_v58 = vpop.f32.mrb[122].mxu1  ;;  %1610 = vst [vmem:[%s2248_s27 + $0x3d0] sm:$0xff] %v1153_v57  ;;  %v1155_v59 = vpop.f32.mrb[123].mxu0 }
 0x1d8   : > { %1738 = vst [vmem:[%s2248_s27 + $0x7d0] sm:$0xff] %v1473_v58  ;;  %v1475_v60 = vpop.f32.mrb[123].mxu1  ;;  %1611 = vst [vmem:[%s2248_s27 + $0x3d8] sm:$0xff] %v1155_v59 }
 0x1d9   : > { %1739 = vst [vmem:[%s2248_s27 + $0x7d8] sm:$0xff] %v1475_v60 }
 0x1dc   : > { %v1159_v61 = vpop.f32.mrb[124].mxu0 }
 0x1dd   : > { %v1479_v62 = vpop.f32.mrb[124].mxu1  ;;  %1612 = vst [vmem:[%s2248_s27 + $0x3e0] sm:$0xff] %v1159_v61  ;;  %v1161_v63 = vpop.f32.mrb[125].mxu0 }
 0x1de   : > { %1740 = vst [vmem:[%s2248_s27 + $0x7e0] sm:$0xff] %v1479_v62  ;;  %v1481_v0 = vpop.f32.mrb[125].mxu1  ;;  %1613 = vst [vmem:[%s2248_s27 + $0x3e8] sm:$0xff] %v1161_v63  ;;  %v1163_v1 = vpop.f32.mrb[126].mxu0 }
 0x1df   : > { %1741 = vst [vmem:[%s2248_s27 + $0x7e8] sm:$0xff] %v1481_v0  ;;  %v1483_v3 = vpop.f32.mrb[126].mxu1  ;;  %1614 = vst [vmem:[%s2248_s27 + $0x3f0] sm:$0xff] %v1163_v1  ;;  %v1165_v4 = vpop.f32.mrb[127].mxu0 }
 0x1e0   : > { %1742 = vst [vmem:[%s2248_s27 + $0x7f0] sm:$0xff] %v1483_v3  ;;  %v1485_v5 = vpop.f32.mrb[127].mxu1  ;;  %1615 = vst [vmem:[%s2248_s27 + $0x3f8] sm:$0xff] %v1165_v4 }
 0x1e1   : > { %1743 = vst [vmem:[%s2248_s27 + $0x7f8] sm:$0xff] %v1485_v5 }
 0x1e2 PF: > { %s12_s9 = sadd.s32 1, %s2036_s9  }
 0x1e3   : > { %p9_p4 = scmp.ge.s32.totalorder %s12_s9, 12  }
 0x1e5   :  { %11 = sbr.rel (!%p9_p4) target bundleno = 1 (0x1), region = 58 }

// kernel: fwd.13
= control target key start
LH: loop header
LB: loop body
LE: loop exit
PB: predicated region body
PF: predicated region fallthrough
CT: control target
= control target key end

     0   :  { %s2497_s12 = smov 0   ;;  %s3141_s0 = inlined_call_operand.vmem [shape: bf16[20480,160], index: 0, kind: input, shape index: {}]   ;;  %s3142_s1 = inlined_call_operand.vmem [shape: bf16[160,128], index: 1, kind: input, shape index: {}]   ;;  %s3143_s2 = inlined_call_operand.vmem [shape: f32[1,128], index: 2, kind: input, shape index: {}]   ;;  %s3144_s3 = inlined_call_operand.vmem [shape: f32[20480,2], index: 3, kind: output, shape index: {}]  }
   0x1 LB: > { %s2020_s13 = sadd.s32 4294967295, %s2474_s12   ;;  %p2024_p0 = scmp.ge.s32.totalorder %s2474_s12, 1  ;;  %s2474_s12 = sphi %s2497_s12, %s13_s12  }
   0x2   : > { %p139_p1 = scmp.lt.s32.totalorder %s2474_s12, 21 }
   0x4   : > { %p140_p2 = pnand %p2024_p0, %p139_p1 }
   0x5   : > { %v2265_v0 = vld [vmem:[%s3142_s1] sm:$0xff] (!%p140_p2)   ;;  %v2476_v1 = vmov (!%p140_p2), 0   ;;  %s2025_s16 = sshll.u32 (!%p140_p2), %s2020_s13, 7  ;;  %v2266_v2 = vld [vmem:[%s3142_s1 + $0x8] sm:$0xff] (!%p140_p2)   ;;  %v2267_v3 = vld [vmem:[%s3142_s1 + $0x10] sm:$0xff] (!%p140_p2)   ;;  %vm969_vm0 = vcmask (!%p140_p2), 261120  }
   0x6   : > { %143 = sbr.rel (%p140_p2) target bundleno = 513 (0x201), region = 32  ;;  %1162 = vmatprep.subr.bf16.mxu0 (!%p140_p2), %v2476_v1  ;;  %2236 = vmatprep.subr.bf16.mxu1 (!%p140_p2), %v2476_v1  ;;  %p165_p3 = scmp.lt.s32.totalorder (!%p140_p2), %s2025_s16, 2559  ;;  %v2268_v4 = vld [vmem:[%s3142_s1 + $0x18] sm:$0xff] (!%p140_p2)   ;;  %v2269_v7 = vld [vmem:[%s3142_s1 + $0x20] sm:$0xff] (!%p140_p2)   ;;  %v2270_v8 = vld [vmem:[%s3142_s1 + $0x28] sm:$0xff] (!%p140_p2)   ;;  %vm1835_vm1 = vcmask (!%p140_p2), 15360  }
   0x7   : > { %1163 = vmatpush1.bf16.msra.mxu0 (!%p140_p2), %v2265_v0  ;;  %2246 = vmatpush1.bf16.msra.mxu1 (!%p140_p2), %v2265_v0  ;;  %v2271_v9 = vld [vmem:[%s3142_s1 + $0x30] sm:$0xff] (!%p140_p2)   ;;  %v2272_v10 = vld [vmem:[%s3142_s1 + $0x38] sm:$0xff] (!%p140_p2)   ;;  %v2273_v11 = vld [vmem:[%s3142_s1 + $0x40] sm:$0xff] (!%p140_p2)  }
   0x8   : > { %1164 = vmatprep.subr.bf16.mxu0 (!%p140_p2), %v2476_v1  ;;  %2237 = vmatprep.subr.bf16.mxu1 (!%p140_p2), %v2476_v1  ;;  %v2274_v12 = vld [vmem:[%s3142_s1 + $0x48] sm:$0xff] (!%p140_p2)  }
   0xb   : > { %1165 = vmatpush1.bf16.msra.mxu0 (!%p140_p2), %v2266_v2  ;;  %2247 = vmatpush1.bf16.msra.mxu1 (!%p140_p2), %v2266_v2 }
   0xc   : > { %1166 = vmatprep.subr.bf16.mxu0 (!%p140_p2), %v2476_v1  ;;  %2238 = vmatprep.subr.bf16.mxu1 (!%p140_p2), %v2476_v1 }
   0xd   : > { %s3146_s16 = smov (!%p165_p3, %s2025_s16), 2559 }
   0xe   : > { %s2235_s21 = sshll.u32 %s3146_s16, 3 }
   0xf   : > { %s2522_s24 = scalar_lea.vmem %s3141_s0, %s2235_s21  ;;  %1167 = vmatpush1.bf16.msra.mxu0 %v2267_v3  ;;  %2248 = vmatpush1.bf16.msra.mxu1 %v2267_v3  ;;  %s2725_s18 = scalar_lea.vmem %s3144_s3, %s2235_s21 }
  0x10   : > { %1168 = vmatprep.subr.bf16.mxu0 %v2476_v1  ;;  %2239 = vmatprep.subr.bf16.mxu1 %v2476_v1  ;;  %v2277_v5 = vld [vmem:[%s2522_s24 + $0x4] ss:$8 sps:$4 sm:$0xff]   ;;  %v2275_v13 = vld [vmem:[%s2522_s24] ss:$8 sps:$4 sm:$0xff]   ;;  %v2281_v15 = vld [vmem:[%s2522_s24 + $0x14] ss:$8 sps:$4 sm:$0xff]  }
  0x11   : > { %v2280_v6 = vld [vmem:[%s2522_s24 + $0x204] ss:$8 sps:$4 sm:$0xff]   ;;  %2169 = vmatprep.mubr.msk.bf16.mxu0 %vm969_vm0, %v2277_v5  ;;  %v2278_v14 = vld [vmem:[%s2522_s24 + $0x200] ss:$8 sps:$4 sm:$0xff]   ;;  %v2283_v16 = vld [vmem:[%s2522_s24 + $0x214] ss:$8 sps:$4 sm:$0xff]  }
  0x12   : > { %2201 = vmatprep.mubr.msk.bf16.mxu1 %vm969_vm0, %v2280_v6  ;;  %v2285_v17 = vld [vmem:[%s2522_s24 + $0x10] ss:$8 sps:$4 sm:$0xff]   ;;  %v2287_v19 = vld [vmem:[%s2522_s24 + $0x24] ss:$8 sps:$4 sm:$0xff]   ;;  %v2291_v21 = vld [vmem:[%s2522_s24 + $0x20] ss:$8 sps:$4 sm:$0xff]  }
  0x13   : > { %1169 = vmatpush1.bf16.msra.mxu0 %v2268_v4  ;;  %2249 = vmatpush1.bf16.msra.mxu1 %v2268_v4  ;;  %v2286_v18 = vld [vmem:[%s2522_s24 + $0x210] ss:$8 sps:$4 sm:$0xff]   ;;  %v2289_v20 = vld [vmem:[%s2522_s24 + $0x224] ss:$8 sps:$4 sm:$0xff]   ;;  %v2292_v22 = vld [vmem:[%s2522_s24 + $0x220] ss:$8 sps:$4 sm:$0xff]  }
  0x14   : > { %1170 = vmatprep.subr.bf16.mxu0 %v2476_v1  ;;  %2240 = vmatprep.subr.bf16.mxu1 %v2476_v1  ;;  %v2293_v23 = vld [vmem:[%s2522_s24 + $0x34] ss:$8 sps:$4 sm:$0xff]   ;;  %v2297_v25 = vld [vmem:[%s2522_s24 + $0x30] ss:$8 sps:$4 sm:$0xff]   ;;  %v2299_v27 = vld [vmem:[%s2522_s24 + $0x44] ss:$8 sps:$4 sm:$0xff]  }
  0x15   : > { %v2295_v24 = vld [vmem:[%s2522_s24 + $0x234] ss:$8 sps:$4 sm:$0xff]   ;;  %v2298_v26 = vld [vmem:[%s2522_s24 + $0x230] ss:$8 sps:$4 sm:$0xff]   ;;  %v2301_v28 = vld [vmem:[%s2522_s24 + $0x244] ss:$8 sps:$4 sm:$0xff]  }
  0x16   : > { %v2303_v29 = vld [vmem:[%s2522_s24 + $0x40] ss:$8 sps:$4 sm:$0xff]   ;;  %v2305_v31 = vld [vmem:[%s2522_s24 + $0x54] ss:$8 sps:$4 sm:$0xff]   ;;  %v2309_v33 = vld [vmem:[%s2522_s24 + $0x50] ss:$8 sps:$4 sm:$0xff]  }
  0x17   : > { %1171 = vmatpush1.bf16.msra.mxu0 %v2269_v7  ;;  %2250 = vmatpush1.bf16.msra.mxu1 %v2269_v7  ;;  %v2304_v30 = vld [vmem:[%s2522_s24 + $0x240] ss:$8 sps:$4 sm:$0xff]   ;;  %v2307_v32 = vld [vmem:[%s2522_s24 + $0x254] ss:$8 sps:$4 sm:$0xff]   ;;  %v2310_v34 = vld [vmem:[%s2522_s24 + $0x250] ss:$8 sps:$4 sm:$0xff]  }
  0x18   : > { %1172 = vmatprep.subr.bf16.mxu0 %v2476_v1  ;;  %2241 = vmatprep.subr.bf16.mxu1 %v2476_v1  ;;  %v2311_v35 = vld [vmem:[%s2522_s24 + $0x64] ss:$8 sps:$4 sm:$0xff]   ;;  %v2315_v37 = vld [vmem:[%s2522_s24 + $0x60] ss:$8 sps:$4 sm:$0xff]   ;;  %v2317_v39 = vld [vmem:[%s2522_s24 + $0x74] ss:$8 sps:$4 sm:$0xff]  }
  0x19   : > { %v2313_v36 = vld [vmem:[%s2522_s24 + $0x264] ss:$8 sps:$4 sm:$0xff]   ;;  %v2316_v38 = vld [vmem:[%s2522_s24 + $0x260] ss:$8 sps:$4 sm:$0xff]   ;;  %v2319_v40 = vld [vmem:[%s2522_s24 + $0x274] ss:$8 sps:$4 sm:$0xff]  }
  0x1a   : > { %v2321_v41 = vld [vmem:[%s2522_s24 + $0x70] ss:$8 sps:$4 sm:$0xff]   ;;  %v2323_v43 = vld [vmem:[%s2522_s24 + $0x84] ss:$8 sps:$4 sm:$0xff]   ;;  %v2327_v45 = vld [vmem:[%s2522_s24 + $0x80] ss:$8 sps:$4 sm:$0xff]  }
  0x1b   : > { %1173 = vmatpush1.bf16.msra.mxu0 %v2270_v8  ;;  %2251 = vmatpush1.bf16.msra.mxu1 %v2270_v8  ;;  %v2322_v42 = vld [vmem:[%s2522_s24 + $0x270] ss:$8 sps:$4 sm:$0xff]   ;;  %v2325_v44 = vld [vmem:[%s2522_s24 + $0x284] ss:$8 sps:$4 sm:$0xff]   ;;  %v2328_v46 = vld [vmem:[%s2522_s24 + $0x280] ss:$8 sps:$4 sm:$0xff]  }
  0x1c   : > { %1174 = vmatprep.subr.bf16.mxu0 %v2476_v1  ;;  %2242 = vmatprep.subr.bf16.mxu1 %v2476_v1  ;;  %v2329_v47 = vld [vmem:[%s2522_s24 + $0x94] ss:$8 sps:$4 sm:$0xff]   ;;  %v2333_v49 = vld [vmem:[%s2522_s24 + $0x90] ss:$8 sps:$4 sm:$0xff]   ;;  %v2335_v51 = vld [vmem:[%s2522_s24 + $0xa4] ss:$8 sps:$4 sm:$0xff]  }
  0x1d   : > { %v2331_v48 = vld [vmem:[%s2522_s24 + $0x294] ss:$8 sps:$4 sm:$0xff]   ;;  %v2334_v50 = vld [vmem:[%s2522_s24 + $0x290] ss:$8 sps:$4 sm:$0xff]   ;;  %v2337_v52 = vld [vmem:[%s2522_s24 + $0x2a4] ss:$8 sps:$4 sm:$0xff]  }
  0x1e   : > { %v2339_v53 = vld [vmem:[%s2522_s24 + $0xa0] ss:$8 sps:$4 sm:$0xff]   ;;  %v2341_v55 = vld [vmem:[%s2522_s24 + $0xb4] ss:$8 sps:$4 sm:$0xff]   ;;  %v2345_v57 = vld [vmem:[%s2522_s24 + $0xb0] ss:$8 sps:$4 sm:$0xff]  }
  0x1f   : > { %1175 = vmatpush1.bf16.msra.mxu0 %v2271_v9  ;;  %2252 = vmatpush1.bf16.msra.mxu1 %v2271_v9  ;;  %v2340_v54 = vld [vmem:[%s2522_s24 + $0x2a0] ss:$8 sps:$4 sm:$0xff]   ;;  %v2343_v56 = vld [vmem:[%s2522_s24 + $0x2b4] ss:$8 sps:$4 sm:$0xff]   ;;  %v2346_v58 = vld [vmem:[%s2522_s24 + $0x2b0] ss:$8 sps:$4 sm:$0xff]  }
  0x20   : > { %1176 = vmatprep.subr.bf16.mxu0 %v2476_v1  ;;  %2243 = vmatprep.subr.bf16.mxu1 %v2476_v1  ;;  %v2347_v59 = vld [vmem:[%s2522_s24 + $0xc4] ss:$8 sps:$4 sm:$0xff]   ;;  %v2351_v61 = vld [vmem:[%s2522_s24 + $0xc0] ss:$8 sps:$4 sm:$0xff]   ;;  %v2353_v63 = vld [vmem:[%s2522_s24 + $0xd4] ss:$8 sps:$4 sm:$0xff]  }
  0x21   : > { %v2349_v60 = vld [vmem:[%s2522_s24 + $0x2c4] ss:$8 sps:$4 sm:$0xff]   ;;  %v2352_v62 = vld [vmem:[%s2522_s24 + $0x2c0] ss:$8 sps:$4 sm:$0xff]   ;;  %v2355_v0 = vld [vmem:[%s2522_s24 + $0x2d4] ss:$8 sps:$4 sm:$0xff]  }
  0x22   : > { %v2358_v2 = vld [vmem:[%s2522_s24 + $0x2d0] ss:$8 sps:$4 sm:$0xff]   ;;  %v2359_v3 = vld [vmem:[%s2522_s24 + $0xe4] ss:$8 sps:$4 sm:$0xff]   ;;  %v2363_v5 = vld [vmem:[%s2522_s24 + $0xe0] ss:$8 sps:$4 sm:$0xff]  }
  0x23   : > { %1177 = vmatpush1.bf16.msra.mxu0 %v2272_v10  ;;  %2253 = vmatpush1.bf16.msra.mxu1 %v2272_v10  ;;  %v2361_v4 = vld [vmem:[%s2522_s24 + $0x2e4] ss:$8 sps:$4 sm:$0xff]   ;;  %v2364_v6 = vld [vmem:[%s2522_s24 + $0x2e0] ss:$8 sps:$4 sm:$0xff]   ;;  %v2365_v7 = vld [vmem:[%s2522_s24 + $0xf4] ss:$8 sps:$4 sm:$0xff]  }
  0x24   : > { %1178 = vmatprep.subr.bf16.mxu0 %v2476_v1  ;;  %2244 = vmatprep.subr.bf16.mxu1 %v2476_v1  ;;  %v2367_v8 = vld [vmem:[%s2522_s24 + $0x2f4] ss:$8 sps:$4 sm:$0xff]   ;;  %v2369_v9 = vld [vmem:[%s2522_s24 + $0xf0] ss:$8 sps:$4 sm:$0xff]  }
  0x25   : > { %v2370_v10 = vld [vmem:[%s2522_s24 + $0x2f0] ss:$8 sps:$4 sm:$0xff]  }
  0x27   : > { %1179 = vmatpush1.bf16.msra.mxu0 %v2273_v11  ;;  %2254 = vmatpush1.bf16.msra.mxu1 %v2273_v11  ;;  %v2371_v11 = vld [vmem:[%s2522_s24 + $0x104] ss:$8 sps:$4 sm:$0xff]  }
  0x28   : > { %1180 = vmatprep.subr.bf16.mxu0 %v2476_v1  ;;  %2245 = vmatprep.subr.bf16.mxu1 %v2476_v1  ;;  %v2357_v1 = vld [vmem:[%s2522_s24 + $0xd0] ss:$8 sps:$4 sm:$0xff]  }
  0x2b   : > { %1181 = vmatpush1.bf16.msra.mxu0 %v2274_v12  ;;  %2255 = vmatpush1.bf16.msra.mxu1 %v2274_v12  ;;  %v2373_v12 = vld [vmem:[%s2522_s24 + $0x304] ss:$8 sps:$4 sm:$0xff]  }
  0x2e   : > { %1195 = vmatmul.mubr.bf16.vlgmr.msra.gmra.mrb[0].mxu0 %v2275_v13  ;;  %1451 = vmatmul.mubr.bf16.vlgmr.msra.gmra.mrb[0].mxu1 %v2278_v14  ;;  %v2375_v13 = vld [vmem:[%s2522_s24 + $0x100] ss:$8 sps:$4 sm:$0xff]  }
  0x2f   : > { %2170 = vmatprep.mubr.msk.bf16.mxu0 %vm969_vm0, %v2281_v15  ;;  %2202 = vmatprep.mubr.msk.bf16.mxu1 %vm969_vm0, %v2283_v16  ;;  %v2376_v14 = vld [vmem:[%s2522_s24 + $0x300] ss:$8 sps:$4 sm:$0xff]   ;;  %v2377_v15 = vld [vmem:[%s2522_s24 + $0x114] ss:$8 sps:$4 sm:$0xff]  }
  0x30   : > { %v2379_v16 = vld [vmem:[%s2522_s24 + $0x314] ss:$8 sps:$4 sm:$0xff]  }
  0x36   : > { %1203 = vmatmul.mubr.bf16.gmra.mrb[4].mxu0 %v2285_v17  ;;  %1459 = vmatmul.mubr.bf16.gmra.mrb[4].mxu1 %v2286_v18  ;;  %v2381_v17 = vld [vmem:[%s2522_s24 + $0x110] ss:$8 sps:$4 sm:$0xff]  }
  0x37   : > { %2171 = vmatprep.mubr.msk.bf16.mxu0 %vm969_vm0, %v2287_v19  ;;  %2203 = vmatprep.mubr.msk.bf16.mxu1 %vm969_vm0, %v2289_v20  ;;  %v2382_v18 = vld [vmem:[%s2522_s24 + $0x310] ss:$8 sps:$4 sm:$0xff]   ;;  %v2383_v19 = vld [vmem:[%s2522_s24 + $0x124] ss:$8 sps:$4 sm:$0xff]  }
  0x38   : > { %v2385_v20 = vld [vmem:[%s2522_s24 + $0x324] ss:$8 sps:$4 sm:$0xff]  }
  0x3e   : > { %1211 = vmatmul.mubr.bf16.gmra.mrb[8].mxu0 %v2291_v21  ;;  %1467 = vmatmul.mubr.bf16.gmra.mrb[8].mxu1 %v2292_v22  ;;  %v2387_v21 = vld [vmem:[%s2522_s24 + $0x120] ss:$8 sps:$4 sm:$0xff]  }
  0x3f   : > { %2172 = vmatprep.mubr.msk.bf16.mxu0 %vm969_vm0, %v2293_v23  ;;  %2204 = vmatprep.mubr.msk.bf16.mxu1 %vm969_vm0, %v2295_v24  ;;  %v2388_v22 = vld [vmem:[%s2522_s24 + $0x320] ss:$8 sps:$4 sm:$0xff]   ;;  %v2389_v23 = vld [vmem:[%s2522_s24 + $0x134] ss:$8 sps:$4 sm:$0xff]  }
  0x40   : > { %v2391_v24 = vld [vmem:[%s2522_s24 + $0x334] ss:$8 sps:$4 sm:$0xff]  }
  0x46   : > { %1219 = vmatmul.mubr.bf16.gmra.mrb[12].mxu0 %v2297_v25  ;;  %1475 = vmatmul.mubr.bf16.gmra.mrb[12].mxu1 %v2298_v26  ;;  %v2393_v25 = vld [vmem:[%s2522_s24 + $0x130] ss:$8 sps:$4 sm:$0xff]  }
  0x47   : > { %2173 = vmatprep.mubr.msk.bf16.mxu0 %vm969_vm0, %v2299_v27  ;;  %2205 = vmatprep.mubr.msk.bf16.mxu1 %vm969_vm0, %v2301_v28  ;;  %v2394_v26 = vld [vmem:[%s2522_s24 + $0x330] ss:$8 sps:$4 sm:$0xff]   ;;  %v2395_v27 = vld [vmem:[%s2522_s24 + $0x144] ss:$8 sps:$4 sm:$0xff]  }
  0x48   : > { %v2397_v28 = vld [vmem:[%s2522_s24 + $0x344] ss:$8 sps:$4 sm:$0xff]  }
  0x4e   : > { %1227 = vmatmul.mubr.bf16.gmra.mrb[16].mxu0 %v2303_v29  ;;  %1483 = vmatmul.mubr.bf16.gmra.mrb[16].mxu1 %v2304_v30  ;;  %v2399_v29 = vld [vmem:[%s2522_s24 + $0x140] ss:$8 sps:$4 sm:$0xff]  }
  0x4f   : > { %2174 = vmatprep.mubr.msk.bf16.mxu0 %vm969_vm0, %v2305_v31  ;;  %2206 = vmatprep.mubr.msk.bf16.mxu1 %vm969_vm0, %v2307_v32  ;;  %v2400_v30 = vld [vmem:[%s2522_s24 + $0x340] ss:$8 sps:$4 sm:$0xff]   ;;  %v2401_v31 = vld [vmem:[%s2522_s24 + $0x154] ss:$8 sps:$4 sm:$0xff]  }
  0x50   : > { %v2403_v32 = vld [vmem:[%s2522_s24 + $0x354] ss:$8 sps:$4 sm:$0xff]  }
  0x56   : > { %1235 = vmatmul.mubr.bf16.gmra.mrb[20].mxu0 %v2309_v33  ;;  %1491 = vmatmul.mubr.bf16.gmra.mrb[20].mxu1 %v2310_v34  ;;  %v2405_v33 = vld [vmem:[%s2522_s24 + $0x150] ss:$8 sps:$4 sm:$0xff]  }
  0x57   : > { %2175 = vmatprep.mubr.msk.bf16.mxu0 %vm969_vm0, %v2311_v35  ;;  %2207 = vmatprep.mubr.msk.bf16.mxu1 %vm969_vm0, %v2313_v36  ;;  %v2406_v34 = vld [vmem:[%s2522_s24 + $0x350] ss:$8 sps:$4 sm:$0xff]   ;;  %v2407_v35 = vld [vmem:[%s2522_s24 + $0x164] ss:$8 sps:$4 sm:$0xff]  }
  0x58   : > { %v2409_v36 = vld [vmem:[%s2522_s24 + $0x364] ss:$8 sps:$4 sm:$0xff]  }
  0x5e   : > { %1243 = vmatmul.mubr.bf16.gmra.mrb[24].mxu0 %v2315_v37  ;;  %1499 = vmatmul.mubr.bf16.gmra.mrb[24].mxu1 %v2316_v38  ;;  %v2411_v37 = vld [vmem:[%s2522_s24 + $0x160] ss:$8 sps:$4 sm:$0xff]  }
  0x5f   : > { %2176 = vmatprep.mubr.msk.bf16.mxu0 %vm969_vm0, %v2317_v39  ;;  %2208 = vmatprep.mubr.msk.bf16.mxu1 %vm969_vm0, %v2319_v40  ;;  %v2412_v38 = vld [vmem:[%s2522_s24 + $0x360] ss:$8 sps:$4 sm:$0xff]   ;;  %v2413_v39 = vld [vmem:[%s2522_s24 + $0x174] ss:$8 sps:$4 sm:$0xff]  }
  0x60   : > { %v2415_v40 = vld [vmem:[%s2522_s24 + $0x374] ss:$8 sps:$4 sm:$0xff]  }
  0x66   : > { %1251 = vmatmul.mubr.bf16.gmra.mrb[28].mxu0 %v2321_v41  ;;  %1507 = vmatmul.mubr.bf16.gmra.mrb[28].mxu1 %v2322_v42  ;;  %v2417_v41 = vld [vmem:[%s2522_s24 + $0x170] ss:$8 sps:$4 sm:$0xff]  }
  0x67   : > { %2177 = vmatprep.mubr.msk.bf16.mxu0 %vm969_vm0, %v2323_v43  ;;  %2209 = vmatprep.mubr.msk.bf16.mxu1 %vm969_vm0, %v2325_v44  ;;  %v2418_v42 = vld [vmem:[%s2522_s24 + $0x370] ss:$8 sps:$4 sm:$0xff]   ;;  %v2419_v43 = vld [vmem:[%s2522_s24 + $0x184] ss:$8 sps:$4 sm:$0xff]  }
  0x68   : > { %v2421_v44 = vld [vmem:[%s2522_s24 + $0x384] ss:$8 sps:$4 sm:$0xff]  }
  0x6e   : > { %1259 = vmatmul.mubr.bf16.gmra.mrb[32].mxu0 %v2327_v45  ;;  %1515 = vmatmul.mubr.bf16.gmra.mrb[32].mxu1 %v2328_v46  ;;  %v2423_v45 = vld [vmem:[%s2522_s24 + $0x180] ss:$8 sps:$4 sm:$0xff]  }
  0x6f   : > { %2178 = vmatprep.mubr.msk.bf16.mxu0 %vm969_vm0, %v2329_v47  ;;  %2210 = vmatprep.mubr.msk.bf16.mxu1 %vm969_vm0, %v2331_v48  ;;  %v2424_v46 = vld [vmem:[%s2522_s24 + $0x380] ss:$8 sps:$4 sm:$0xff]   ;;  %v2425_v47 = vld [vmem:[%s2522_s24 + $0x194] ss:$8 sps:$4 sm:$0xff]  }
  0x70   : > { %v2427_v48 = vld [vmem:[%s2522_s24 + $0x394] ss:$8 sps:$4 sm:$0xff]  }
  0x76   : > { %1267 = vmatmul.mubr.bf16.gmra.mrb[36].mxu0 %v2333_v49  ;;  %1523 = vmatmul.mubr.bf16.gmra.mrb[36].mxu1 %v2334_v50  ;;  %v2429_v49 = vld [vmem:[%s2522_s24 + $0x190] ss:$8 sps:$4 sm:$0xff]  }
  0x77   : > { %2179 = vmatprep.mubr.msk.bf16.mxu0 %vm969_vm0, %v2335_v51  ;;  %2211 = vmatprep.mubr.msk.bf16.mxu1 %vm969_vm0, %v2337_v52  ;;  %v2430_v50 = vld [vmem:[%s2522_s24 + $0x390] ss:$8 sps:$4 sm:$0xff]   ;;  %v2431_v51 = vld [vmem:[%s2522_s24 + $0x1a4] ss:$8 sps:$4 sm:$0xff]  }
  0x78   : > { %v2433_v52 = vld [vmem:[%s2522_s24 + $0x3a4] ss:$8 sps:$4 sm:$0xff]  }
  0x7e   : > { %1275 = vmatmul.mubr.bf16.gmra.mrb[40].mxu0 %v2339_v53  ;;  %1531 = vmatmul.mubr.bf16.gmra.mrb[40].mxu1 %v2340_v54  ;;  %v2435_v53 = vld [vmem:[%s2522_s24 + $0x1a0] ss:$8 sps:$4 sm:$0xff]  }
  0x7f   : > { %2180 = vmatprep.mubr.msk.bf16.mxu0 %vm969_vm0, %v2341_v55  ;;  %2212 = vmatprep.mubr.msk.bf16.mxu1 %vm969_vm0, %v2343_v56  ;;  %v2436_v54 = vld [vmem:[%s2522_s24 + $0x3a0] ss:$8 sps:$4 sm:$0xff]   ;;  %v2437_v55 = vld [vmem:[%s2522_s24 + $0x1b4] ss:$8 sps:$4 sm:$0xff]  }
  0x80   : > { %v2439_v56 = vld [vmem:[%s2522_s24 + $0x3b4] ss:$8 sps:$4 sm:$0xff]  }
  0x86   : > { %1283 = vmatmul.mubr.bf16.gmra.mrb[44].mxu0 %v2345_v57  ;;  %1539 = vmatmul.mubr.bf16.gmra.mrb[44].mxu1 %v2346_v58  ;;  %v2712_v57 = vld [vmem:[%s3143_s2] ss:$0 sm:$0xff] }
  0x87   : > { %2181 = vmatprep.mubr.msk.bf16.mxu0 %vm969_vm0, %v2347_v59  ;;  %2213 = vmatprep.mubr.msk.bf16.mxu1 %vm969_vm0, %v2349_v60 }
  0x8e   : > { %1291 = vmatmul.mubr.bf16.gmra.mrb[48].mxu0 %v2351_v61  ;;  %1547 = vmatmul.mubr.bf16.gmra.mrb[48].mxu1 %v2352_v62 }
  0x8f   : > { %2182 = vmatprep.mubr.msk.bf16.mxu0 %vm969_vm0, %v2353_v63  ;;  %2214 = vmatprep.mubr.msk.bf16.mxu1 %vm969_vm0, %v2355_v0  ;;  %v2441_v0 = vld [vmem:[%s2522_s24 + $0x1b0] ss:$8 sps:$4 sm:$0xff]  }
  0x96   : > { %1299 = vmatmul.mubr.bf16.gmra.mrb[52].mxu0 %v2357_v1  ;;  %1555 = vmatmul.mubr.bf16.gmra.mrb[52].mxu1 %v2358_v2  ;;  %v2442_v1 = vld [vmem:[%s2522_s24 + $0x3b0] ss:$8 sps:$4 sm:$0xff]  }
  0x97   : > { %2183 = vmatprep.mubr.msk.bf16.mxu0 %vm969_vm0, %v2359_v3  ;;  %2215 = vmatprep.mubr.msk.bf16.mxu1 %vm969_vm0, %v2361_v4  ;;  %v2443_v4 = vld [vmem:[%s2522_s24 + $0x1c4] ss:$8 sps:$4 sm:$0xff]  }
  0x9e   : > { %1307 = vmatmul.mubr.bf16.gmra.mrb[56].mxu0 %v2363_v5  ;;  %1563 = vmatmul.mubr.bf16.gmra.mrb[56].mxu1 %v2364_v6  ;;  %v2445_v5 = vld [vmem:[%s2522_s24 + $0x3c4] ss:$8 sps:$4 sm:$0xff]  }
  0x9f   : > { %2184 = vmatprep.mubr.msk.bf16.mxu0 %vm969_vm0, %v2365_v7  ;;  %2216 = vmatprep.mubr.msk.bf16.mxu1 %vm969_vm0, %v2367_v8 }
  0xa6   : > { %1315 = vmatmul.mubr.bf16.gmra.mrb[60].mxu0 %v2369_v9  ;;  %1571 = vmatmul.mubr.bf16.gmra.mrb[60].mxu1 %v2370_v10 }
  0xa7   : > { %2185 = vmatprep.mubr.msk.bf16.mxu0 %vm969_vm0, %v2371_v11  ;;  %2217 = vmatprep.mubr.msk.bf16.mxu1 %vm969_vm0, %v2373_v12 }
  0xae   : > { %1323 = vmatmul.mubr.bf16.gmra.mrb[64].mxu0 %v2375_v13  ;;  %1579 = vmatmul.mubr.bf16.gmra.mrb[64].mxu1 %v2376_v14 }
  0xaf   : > { %2186 = vmatprep.mubr.msk.bf16.mxu0 %vm969_vm0, %v2377_v15  ;;  %2218 = vmatprep.mubr.msk.bf16.mxu1 %vm969_vm0, %v2379_v16 }
  0xb6   : > { %1331 = vmatmul.mubr.bf16.gmra.mrb[68].mxu0 %v2381_v17  ;;  %1587 = vmatmul.mubr.bf16.gmra.mrb[68].mxu1 %v2382_v18 }
  0xb7   : > { %2187 = vmatprep.mubr.msk.bf16.mxu0 %vm969_vm0, %v2383_v19  ;;  %2219 = vmatprep.mubr.msk.bf16.mxu1 %vm969_vm0, %v2385_v20  ;;  %v2447_v20 = vld [vmem:[%s2522_s24 + $0x1c0] ss:$8 sps:$4 sm:$0xff]  }
  0xbe   : > { %1339 = vmatmul.mubr.bf16.gmra.mrb[72].mxu0 %v2387_v21  ;;  %1595 = vmatmul.mubr.bf16.gmra.mrb[72].mxu1 %v2388_v22  ;;  %v2448_v21 = vld [vmem:[%s2522_s24 + $0x3c0] ss:$8 sps:$4 sm:$0xff]  }
  0xbf   : > { %2188 = vmatprep.mubr.msk.bf16.mxu0 %vm969_vm0, %v2389_v23  ;;  %2220 = vmatprep.mubr.msk.bf16.mxu1 %vm969_vm0, %v2391_v24  ;;  %v2449_v24 = vld [vmem:[%s2522_s24 + $0x1d4] ss:$8 sps:$4 sm:$0xff]  }
  0xc6   : > { %1347 = vmatmul.mubr.bf16.gmra.mrb[76].mxu0 %v2393_v25  ;;  %1603 = vmatmul.mubr.bf16.gmra.mrb[76].mxu1 %v2394_v26  ;;  %v2451_v25 = vld [vmem:[%s2522_s24 + $0x3d4] ss:$8 sps:$4 sm:$0xff]  }
  0xc7   : > { %2189 = vmatprep.mubr.msk.bf16.mxu0 %vm969_vm0, %v2395_v27  ;;  %2221 = vmatprep.mubr.msk.bf16.mxu1 %vm969_vm0, %v2397_v28 }
  0xce   : > { %1355 = vmatmul.mubr.bf16.gmra.mrb[80].mxu0 %v2399_v29  ;;  %1611 = vmatmul.mubr.bf16.gmra.mrb[80].mxu1 %v2400_v30 }
  0xcf   : > { %2190 = vmatprep.mubr.msk.bf16.mxu0 %vm969_vm0, %v2401_v31  ;;  %2222 = vmatprep.mubr.msk.bf16.mxu1 %vm969_vm0, %v2403_v32 }
  0xd6   : > { %1363 = vmatmul.mubr.bf16.gmra.mrb[84].mxu0 %v2405_v33  ;;  %1619 = vmatmul.mubr.bf16.gmra.mrb[84].mxu1 %v2406_v34 }
  0xd7   : > { %2191 = vmatprep.mubr.msk.bf16.mxu0 %vm969_vm0, %v2407_v35  ;;  %2223 = vmatprep.mubr.msk.bf16.mxu1 %vm969_vm0, %v2409_v36 }
  0xde   : > { %1371 = vmatmul.mubr.bf16.gmra.mrb[88].mxu0 %v2411_v37  ;;  %1627 = vmatmul.mubr.bf16.gmra.mrb[88].mxu1 %v2412_v38 }
  0xdf   : > { %2192 = vmatprep.mubr.msk.bf16.mxu0 %vm969_vm0, %v2413_v39  ;;  %2224 = vmatprep.mubr.msk.bf16.mxu1 %vm969_vm0, %v2415_v40  ;;  %v2453_v40 = vld [vmem:[%s2522_s24 + $0x1d0] ss:$8 sps:$4 sm:$0xff]  }
  0xe6   : > { %1379 = vmatmul.mubr.bf16.gmra.mrb[92].mxu0 %v2417_v41  ;;  %1635 = vmatmul.mubr.bf16.gmra.mrb[92].mxu1 %v2418_v42  ;;  %v2454_v41 = vld [vmem:[%s2522_s24 + $0x3d0] ss:$8 sps:$4 sm:$0xff]  }
  0xe7   : > { %2193 = vmatprep.mubr.msk.bf16.mxu0 %vm969_vm0, %v2419_v43  ;;  %2225 = vmatprep.mubr.msk.bf16.mxu1 %vm969_vm0, %v2421_v44  ;;  %v2455_v44 = vld [vmem:[%s2522_s24 + $0x1e4] ss:$8 sps:$4 sm:$0xff]  }
  0xee   : > { %1387 = vmatmul.mubr.bf16.gmra.mrb[96].mxu0 %v2423_v45  ;;  %1643 = vmatmul.mubr.bf16.gmra.mrb[96].mxu1 %v2424_v46  ;;  %v2457_v45 = vld [vmem:[%s2522_s24 + $0x3e4] ss:$8 sps:$4 sm:$0xff]  }
  0xef   : > { %2194 = vmatprep.mubr.msk.bf16.mxu0 %vm969_vm0, %v2425_v47  ;;  %2226 = vmatprep.mubr.msk.bf16.mxu1 %vm969_vm0, %v2427_v48 }
  0xf6   : > { %1395 = vmatmul.mubr.bf16.gmra.mrb[100].mxu0 %v2429_v49  ;;  %1651 = vmatmul.mubr.bf16.gmra.mrb[100].mxu1 %v2430_v50 }
  0xf7   : > { %2195 = vmatprep.mubr.msk.bf16.mxu0 %vm969_vm0, %v2431_v51  ;;  %2227 = vmatprep.mubr.msk.bf16.mxu1 %vm969_vm0, %v2433_v52 }
  0xfe   : > { %1403 = vmatmul.mubr.bf16.gmra.mrb[104].mxu0 %v2435_v53  ;;  %1659 = vmatmul.mubr.bf16.gmra.mrb[104].mxu1 %v2436_v54 }
  0xff   : > { %2196 = vmatprep.mubr.msk.bf16.mxu0 %vm969_vm0, %v2437_v55  ;;  %2228 = vmatprep.mubr.msk.bf16.mxu1 %vm969_vm0, %v2439_v56 }
 0x101   : > { %v1196_v58 = vpop.f32.mrb[0].mxu0  ;;  %v1452_v59 = vpop.f32.mrb[0].mxu1 }
 0x102   : > { %v1197_v60 = vadd.f32 %v2712_v57, %v1196_v58  ;;  %v1453_v61 = vadd.f32 %v2712_v57, %v1452_v59  ;;  %v1198_v62 = vpop.f32.mrb[1].mxu0  ;;  %v1454_v63 = vpop.f32.mrb[1].mxu1 }
 0x103   : > { %v1199_v2 = vpop.f32.mrb[2].mxu0  ;;  %v1455_v3 = vpop.f32.mrb[2].mxu1  ;;  %v2460_v62 = vld [vmem:[%s2522_s24 + $0x3e0] ss:$8 sps:$4 sm:$0xff]  }
 0x104   : > { %v1707_v6 = vmax.f32 %v1197_v60, 0.0  ;;  %v1771_v7 = vmax.f32 %v1453_v61, 0.0  ;;  %v1200_v8 = vadd.f32 %v2712_v57, %v1199_v2  ;;  %v1456_v9 = vadd.f32 %v2712_v57, %v1455_v3  ;;  %v1201_v10 = vpop.f32.mrb[3].mxu0  ;;  %v1457_v11 = vpop.f32.mrb[3].mxu1  ;;  %v2459_v61 = vld [vmem:[%s2522_s24 + $0x1e0] ss:$8 sps:$4 sm:$0xff]  }
 0x105   : > { %v2463_v2 = vld [vmem:[%s2522_s24 + $0x3f4] ss:$8 sps:$4 sm:$0xff]  }
 0x106   : > { %1836 = vst.msk [vmem:[%s2725_s18] sm:$0xff] %vm1835_vm1, %v1707_v6  ;;  %1900 = vst.msk [vmem:[%s2725_s18 + $0x200] sm:$0xff] %vm1835_vm1, %v1771_v7  ;;  %v1708_v12 = vmax.f32 %v1200_v8, 0.0  ;;  %v1772_v13 = vmax.f32 %v1456_v9, 0.0  ;;  %1411 = vmatmul.mubr.bf16.gmra.mrb[108].mxu0 %v2441_v0  ;;  %1667 = vmatmul.mubr.bf16.gmra.mrb[108].mxu1 %v2442_v1  ;;  %v2461_v1 = vld [vmem:[%s2522_s24 + $0x1f4] ss:$8 sps:$4 sm:$0xff]  }
 0x107   : > { %2197 = vmatprep.mubr.msk.bf16.mxu0 %vm969_vm0, %v2443_v4  ;;  %2229 = vmatprep.mubr.msk.bf16.mxu1 %vm969_vm0, %v2445_v5 }
 0x108   : > { %1837 = vst.msk [vmem:[%s2725_s18 + $0x8] sm:$0xff] %vm1835_vm1, %v1708_v12  ;;  %1901 = vst.msk [vmem:[%s2725_s18 + $0x208] sm:$0xff] %vm1835_vm1, %v1772_v13 }
 0x109   : > { %v1204_v14 = vpop.f32.mrb[4].mxu0  ;;  %v1460_v15 = vpop.f32.mrb[4].mxu1 }
 0x10a   : > { %v1205_v16 = vadd.f32 %v2712_v57, %v1204_v14  ;;  %v1461_v17 = vadd.f32 %v2712_v57, %v1460_v15  ;;  %v1206_v18 = vpop.f32.mrb[5].mxu0  ;;  %v1462_v19 = vpop.f32.mrb[5].mxu1 }
 0x10b   : > { %v1207_v22 = vpop.f32.mrb[6].mxu0  ;;  %v1463_v23 = vpop.f32.mrb[6].mxu1  ;;  %v2466_v18 = vld [vmem:[%s2522_s24 + $0x3f0] ss:$8 sps:$4 sm:$0xff]  }
 0x10c   : > { %v1709_v26 = vmax.f32 %v1205_v16, 0.0  ;;  %v1773_v27 = vmax.f32 %v1461_v17, 0.0  ;;  %v1208_v28 = vadd.f32 %v2712_v57, %v1207_v22  ;;  %v1464_v29 = vadd.f32 %v2712_v57, %v1463_v23  ;;  %v1209_v30 = vpop.f32.mrb[7].mxu0  ;;  %v1465_v31 = vpop.f32.mrb[7].mxu1  ;;  %v2465_v17 = vld [vmem:[%s2522_s24 + $0x1f0] ss:$8 sps:$4 sm:$0xff]  }
 0x10e   : > { %1838 = vst.msk [vmem:[%s2725_s18 + $0x10] sm:$0xff] %vm1835_vm1, %v1709_v26  ;;  %1902 = vst.msk [vmem:[%s2725_s18 + $0x210] sm:$0xff] %vm1835_vm1, %v1773_v27  ;;  %v1710_v32 = vmax.f32 %v1208_v28, 0.0  ;;  %v1774_v33 = vmax.f32 %v1464_v29, 0.0  ;;  %1419 = vmatmul.mubr.bf16.gmra.mrb[112].mxu0 %v2447_v20  ;;  %1675 = vmatmul.mubr.bf16.gmra.mrb[112].mxu1 %v2448_v21 }
 0x10f   : > { %2198 = vmatprep.mubr.msk.bf16.mxu0 %vm969_vm0, %v2449_v24  ;;  %2230 = vmatprep.mubr.msk.bf16.mxu1 %vm969_vm0, %v2451_v25 }
 0x110   : > { %1839 = vst.msk [vmem:[%s2725_s18 + $0x18] sm:$0xff] %vm1835_vm1, %v1710_v32  ;;  %1903 = vst.msk [vmem:[%s2725_s18 + $0x218] sm:$0xff] %vm1835_vm1, %v1774_v33 }
 0x111   : > { %v1212_v34 = vpop.f32.mrb[8].mxu0  ;;  %v1468_v35 = vpop.f32.mrb[8].mxu1 }
 0x112   : > { %v1213_v36 = vadd.f32 %v2712_v57, %v1212_v34  ;;  %v1469_v37 = vadd.f32 %v2712_v57, %v1468_v35  ;;  %v1214_v38 = vpop.f32.mrb[9].mxu0  ;;  %v1470_v39 = vpop.f32.mrb[9].mxu1 }
 0x113   : > { %v1215_v42 = vpop.f32.mrb[10].mxu0  ;;  %v1471_v43 = vpop.f32.mrb[10].mxu1 }
 0x114   : > { %v1711_v46 = vmax.f32 %v1213_v36, 0.0  ;;  %v1775_v47 = vmax.f32 %v1469_v37, 0.0  ;;  %v1216_v48 = vadd.f32 %v2712_v57, %v1215_v42  ;;  %v1472_v49 = vadd.f32 %v2712_v57, %v1471_v43  ;;  %v1217_v50 = vpop.f32.mrb[11].mxu0  ;;  %v1473_v51 = vpop.f32.mrb[11].mxu1 }
 0x116   : > { %1840 = vst.msk [vmem:[%s2725_s18 + $0x20] sm:$0xff] %vm1835_vm1, %v1711_v46  ;;  %1904 = vst.msk [vmem:[%s2725_s18 + $0x220] sm:$0xff] %vm1835_vm1, %v1775_v47  ;;  %v1712_v52 = vmax.f32 %v1216_v48, 0.0  ;;  %v1776_v53 = vmax.f32 %v1472_v49, 0.0  ;;  %1427 = vmatmul.mubr.bf16.gmra.mrb[116].mxu0 %v2453_v40  ;;  %1683 = vmatmul.mubr.bf16.gmra.mrb[116].mxu1 %v2454_v41 }
 0x117   : > { %2199 = vmatprep.mubr.msk.bf16.mxu0 %vm969_vm0, %v2455_v44  ;;  %2231 = vmatprep.mubr.msk.bf16.mxu1 %vm969_vm0, %v2457_v45 }
 0x118   : > { %1841 = vst.msk [vmem:[%s2725_s18 + $0x28] sm:$0xff] %vm1835_vm1, %v1712_v52  ;;  %1905 = vst.msk [vmem:[%s2725_s18 + $0x228] sm:$0xff] %vm1835_vm1, %v1776_v53 }
 0x119   : > { %v1220_v54 = vpop.f32.mrb[12].mxu0  ;;  %v1476_v55 = vpop.f32.mrb[12].mxu1 }
 0x11a   : > { %v1221_v56 = vadd.f32 %v2712_v57, %v1220_v54  ;;  %v1477_v58 = vadd.f32 %v2712_v57, %v1476_v55  ;;  %v1222_v59 = vpop.f32.mrb[13].mxu0  ;;  %v1478_v60 = vpop.f32.mrb[13].mxu1 }
 0x11b   : > { %v1223_v63 = vpop.f32.mrb[14].mxu0  ;;  %v1479_v0 = vpop.f32.mrb[14].mxu1 }
 0x11c   : > { %v1713_v3 = vmax.f32 %v1221_v56, 0.0  ;;  %v1777_v4 = vmax.f32 %v1477_v58, 0.0  ;;  %v1224_v5 = vadd.f32 %v2712_v57, %v1223_v63  ;;  %v1480_v6 = vadd.f32 %v2712_v57, %v1479_v0  ;;  %v1225_v7 = vpop.f32.mrb[15].mxu0  ;;  %v1481_v8 = vpop.f32.mrb[15].mxu1 }
 0x11e   : > { %1842 = vst.msk [vmem:[%s2725_s18 + $0x30] sm:$0xff] %vm1835_vm1, %v1713_v3  ;;  %1906 = vst.msk [vmem:[%s2725_s18 + $0x230] sm:$0xff] %vm1835_vm1, %v1777_v4  ;;  %v1714_v9 = vmax.f32 %v1224_v5, 0.0  ;;  %v1778_v10 = vmax.f32 %v1480_v6, 0.0  ;;  %1435 = vmatmul.mubr.bf16.gmra.mrb[120].mxu0 %v2459_v61  ;;  %1691 = vmatmul.mubr.bf16.gmra.mrb[120].mxu1 %v2460_v62 }
 0x11f   : > { %2200 = vmatprep.mubr.msk.bf16.mxu0 %vm969_vm0, %v2461_v1  ;;  %2232 = vmatprep.mubr.msk.bf16.mxu1 %vm969_vm0, %v2463_v2 }
 0x120   : > { %1843 = vst.msk [vmem:[%s2725_s18 + $0x38] sm:$0xff] %vm1835_vm1, %v1714_v9  ;;  %1907 = vst.msk [vmem:[%s2725_s18 + $0x238] sm:$0xff] %vm1835_vm1, %v1778_v10 }
 0x121   : > { %v1228_v11 = vpop.f32.mrb[16].mxu0  ;;  %v1484_v12 = vpop.f32.mrb[16].mxu1 }
 0x122   : > { %v1229_v13 = vadd.f32 %v2712_v57, %v1228_v11  ;;  %v1485_v14 = vadd.f32 %v2712_v57, %v1484_v12  ;;  %v1230_v15 = vpop.f32.mrb[17].mxu0  ;;  %v1486_v16 = vpop.f32.mrb[17].mxu1 }
 0x123   : > { %v1231_v19 = vpop.f32.mrb[18].mxu0  ;;  %v1487_v20 = vpop.f32.mrb[18].mxu1 }
 0x124   : > { %v1715_v21 = vmax.f32 %v1229_v13, 0.0  ;;  %v1779_v22 = vmax.f32 %v1485_v14, 0.0  ;;  %v1232_v23 = vadd.f32 %v2712_v57, %v1231_v19  ;;  %v1488_v24 = vadd.f32 %v2712_v57, %v1487_v20  ;;  %v1233_v25 = vpop.f32.mrb[19].mxu0  ;;  %v1489_v26 = vpop.f32.mrb[19].mxu1 }
 0x126   : > { %1844 = vst.msk [vmem:[%s2725_s18 + $0x40] sm:$0xff] %vm1835_vm1, %v1715_v21  ;;  %1908 = vst.msk [vmem:[%s2725_s18 + $0x240] sm:$0xff] %vm1835_vm1, %v1779_v22  ;;  %v1716_v27 = vmax.f32 %v1232_v23, 0.0  ;;  %v1780_v28 = vmax.f32 %v1488_v24, 0.0  ;;  %1443 = vmatmul.mubr.bf16.gmra.mrb[124].mxu0 %v2465_v17  ;;  %1699 = vmatmul.mubr.bf16.gmra.mrb[124].mxu1 %v2466_v18 }
 0x128   : > { %1845 = vst.msk [vmem:[%s2725_s18 + $0x48] sm:$0xff] %vm1835_vm1, %v1716_v27  ;;  %1909 = vst.msk [vmem:[%s2725_s18 + $0x248] sm:$0xff] %vm1835_vm1, %v1780_v28 }
 0x129   : > { %v1236_v29 = vpop.f32.mrb[20].mxu0  ;;  %v1492_v30 = vpop.f32.mrb[20].mxu1 }
 0x12a   : > { %v1237_v31 = vadd.f32 %v2712_v57, %v1236_v29  ;;  %v1493_v32 = vadd.f32 %v2712_v57, %v1492_v30  ;;  %v1238_v33 = vpop.f32.mrb[21].mxu0  ;;  %v1494_v34 = vpop.f32.mrb[21].mxu1 }
 0x12b   : > { %v1239_v35 = vpop.f32.mrb[22].mxu0  ;;  %v1495_v36 = vpop.f32.mrb[22].mxu1 }
 0x12c   : > { %v1717_v37 = vmax.f32 %v1237_v31, 0.0  ;;  %v1781_v38 = vmax.f32 %v1493_v32, 0.0  ;;  %v1240_v39 = vadd.f32 %v2712_v57, %v1239_v35  ;;  %v1496_v40 = vadd.f32 %v2712_v57, %v1495_v36  ;;  %v1241_v41 = vpop.f32.mrb[23].mxu0  ;;  %v1497_v42 = vpop.f32.mrb[23].mxu1 }
 0x12e   : > { %1846 = vst.msk [vmem:[%s2725_s18 + $0x50] sm:$0xff] %vm1835_vm1, %v1717_v37  ;;  %1910 = vst.msk [vmem:[%s2725_s18 + $0x250] sm:$0xff] %vm1835_vm1, %v1781_v38  ;;  %v1718_v43 = vmax.f32 %v1240_v39, 0.0  ;;  %v1782_v44 = vmax.f32 %v1496_v40, 0.0 }
 0x130   : > { %1847 = vst.msk [vmem:[%s2725_s18 + $0x58] sm:$0xff] %vm1835_vm1, %v1718_v43  ;;  %1911 = vst.msk [vmem:[%s2725_s18 + $0x258] sm:$0xff] %vm1835_vm1, %v1782_v44 }
 0x131   : > { %v1244_v45 = vpop.f32.mrb[24].mxu0  ;;  %v1500_v46 = vpop.f32.mrb[24].mxu1 }
 0x132   : > { %v1245_v47 = vadd.f32 %v2712_v57, %v1244_v45  ;;  %v1501_v48 = vadd.f32 %v2712_v57, %v1500_v46  ;;  %v1246_v49 = vpop.f32.mrb[25].mxu0  ;;  %v1502_v50 = vpop.f32.mrb[25].mxu1 }
 0x133   : > { %v1247_v51 = vpop.f32.mrb[26].mxu0  ;;  %v1503_v52 = vpop.f32.mrb[26].mxu1 }
 0x134   : > { %v1719_v53 = vmax.f32 %v1245_v47, 0.0  ;;  %v1783_v54 = vmax.f32 %v1501_v48, 0.0  ;;  %v1248_v55 = vadd.f32 %v2712_v57, %v1247_v51  ;;  %v1504_v56 = vadd.f32 %v2712_v57, %v1503_v52  ;;  %v1249_v58 = vpop.f32.mrb[27].mxu0  ;;  %v1505_v59 = vpop.f32.mrb[27].mxu1 }
 0x136   : > { %1848 = vst.msk [vmem:[%s2725_s18 + $0x60] sm:$0xff] %vm1835_vm1, %v1719_v53  ;;  %1912 = vst.msk [vmem:[%s2725_s18 + $0x260] sm:$0xff] %vm1835_vm1, %v1783_v54  ;;  %v1720_v60 = vmax.f32 %v1248_v55, 0.0  ;;  %v1784_v61 = vmax.f32 %v1504_v56, 0.0 }
 0x138   : > { %1849 = vst.msk [vmem:[%s2725_s18 + $0x68] sm:$0xff] %vm1835_vm1, %v1720_v60  ;;  %1913 = vst.msk [vmem:[%s2725_s18 + $0x268] sm:$0xff] %vm1835_vm1, %v1784_v61 }
 0x139   : > { %v1252_v62 = vpop.f32.mrb[28].mxu0  ;;  %v1508_v63 = vpop.f32.mrb[28].mxu1 }
 0x13a   : > { %v1253_v0 = vadd.f32 %v2712_v57, %v1252_v62  ;;  %v1509_v1 = vadd.f32 %v2712_v57, %v1508_v63  ;;  %v1254_v2 = vpop.f32.mrb[29].mxu0  ;;  %v1510_v3 = vpop.f32.mrb[29].mxu1 }
 0x13b   : > { %v1255_v4 = vpop.f32.mrb[30].mxu0  ;;  %v1511_v5 = vpop.f32.mrb[30].mxu1 }
 0x13c   : > { %v1721_v6 = vmax.f32 %v1253_v0, 0.0  ;;  %v1785_v7 = vmax.f32 %v1509_v1, 0.0  ;;  %v1256_v8 = vadd.f32 %v2712_v57, %v1255_v4  ;;  %v1512_v9 = vadd.f32 %v2712_v57, %v1511_v5  ;;  %v1257_v10 = vpop.f32.mrb[31].mxu0  ;;  %v1513_v11 = vpop.f32.mrb[31].mxu1 }
 0x13e   : > { %1850 = vst.msk [vmem:[%s2725_s18 + $0x70] sm:$0xff] %vm1835_vm1, %v1721_v6  ;;  %1914 = vst.msk [vmem:[%s2725_s18 + $0x270] sm:$0xff] %vm1835_vm1, %v1785_v7  ;;  %v1722_v12 = vmax.f32 %v1256_v8, 0.0  ;;  %v1786_v13 = vmax.f32 %v1512_v9, 0.0 }
 0x140   : > { %1851 = vst.msk [vmem:[%s2725_s18 + $0x78] sm:$0xff] %vm1835_vm1, %v1722_v12  ;;  %1915 = vst.msk [vmem:[%s2725_s18 + $0x278] sm:$0xff] %vm1835_vm1, %v1786_v13 }
 0x141   : > { %v1260_v14 = vpop.f32.mrb[32].mxu0  ;;  %v1516_v15 = vpop.f32.mrb[32].mxu1 }
 0x142   : > { %v1261_v16 = vadd.f32 %v2712_v57, %v1260_v14  ;;  %v1517_v17 = vadd.f32 %v2712_v57, %v1516_v15  ;;  %v1262_v18 = vpop.f32.mrb[33].mxu0  ;;  %v1518_v19 = vpop.f32.mrb[33].mxu1 }
 0x143   : > { %v1263_v20 = vpop.f32.mrb[34].mxu0  ;;  %v1519_v21 = vpop.f32.mrb[34].mxu1 }
 0x144   : > { %v1723_v22 = vmax.f32 %v1261_v16, 0.0  ;;  %v1787_v23 = vmax.f32 %v1517_v17, 0.0  ;;  %v1264_v24 = vadd.f32 %v2712_v57, %v1263_v20  ;;  %v1520_v25 = vadd.f32 %v2712_v57, %v1519_v21  ;;  %v1265_v26 = vpop.f32.mrb[35].mxu0  ;;  %v1521_v27 = vpop.f32.mrb[35].mxu1 }
 0x146   : > { %1852 = vst.msk [vmem:[%s2725_s18 + $0x80] sm:$0xff] %vm1835_vm1, %v1723_v22  ;;  %1916 = vst.msk [vmem:[%s2725_s18 + $0x280] sm:$0xff] %vm1835_vm1, %v1787_v23  ;;  %v1724_v28 = vmax.f32 %v1264_v24, 0.0  ;;  %v1788_v29 = vmax.f32 %v1520_v25, 0.0 }
 0x148   : > { %1853 = vst.msk [vmem:[%s2725_s18 + $0x88] sm:$0xff] %vm1835_vm1, %v1724_v28  ;;  %1917 = vst.msk [vmem:[%s2725_s18 + $0x288] sm:$0xff] %vm1835_vm1, %v1788_v29 }
 0x149   : > { %v1268_v30 = vpop.f32.mrb[36].mxu0  ;;  %v1524_v31 = vpop.f32.mrb[36].mxu1 }
 0x14a   : > { %v1269_v32 = vadd.f32 %v2712_v57, %v1268_v30  ;;  %v1525_v33 = vadd.f32 %v2712_v57, %v1524_v31  ;;  %v1270_v34 = vpop.f32.mrb[37].mxu0  ;;  %v1526_v35 = vpop.f32.mrb[37].mxu1 }
 0x14b   : > { %v1271_v36 = vpop.f32.mrb[38].mxu0  ;;  %v1527_v37 = vpop.f32.mrb[38].mxu1 }
 0x14c   : > { %v1725_v38 = vmax.f32 %v1269_v32, 0.0  ;;  %v1789_v39 = vmax.f32 %v1525_v33, 0.0  ;;  %v1272_v40 = vadd.f32 %v2712_v57, %v1271_v36  ;;  %v1528_v41 = vadd.f32 %v2712_v57, %v1527_v37  ;;  %v1273_v42 = vpop.f32.mrb[39].mxu0  ;;  %v1529_v43 = vpop.f32.mrb[39].mxu1 }
 0x14e   : > { %1854 = vst.msk [vmem:[%s2725_s18 + $0x90] sm:$0xff] %vm1835_vm1, %v1725_v38  ;;  %1918 = vst.msk [vmem:[%s2725_s18 + $0x290] sm:$0xff] %vm1835_vm1, %v1789_v39  ;;  %v1726_v44 = vmax.f32 %v1272_v40, 0.0  ;;  %v1790_v45 = vmax.f32 %v1528_v41, 0.0 }
 0x150   : > { %1855 = vst.msk [vmem:[%s2725_s18 + $0x98] sm:$0xff] %vm1835_vm1, %v1726_v44  ;;  %1919 = vst.msk [vmem:[%s2725_s18 + $0x298] sm:$0xff] %vm1835_vm1, %v1790_v45 }
 0x151   : > { %v1276_v46 = vpop.f32.mrb[40].mxu0  ;;  %v1532_v47 = vpop.f32.mrb[40].mxu1 }
 0x152   : > { %v1277_v48 = vadd.f32 %v2712_v57, %v1276_v46  ;;  %v1533_v49 = vadd.f32 %v2712_v57, %v1532_v47  ;;  %v1278_v50 = vpop.f32.mrb[41].mxu0  ;;  %v1534_v51 = vpop.f32.mrb[41].mxu1 }
 0x153   : > { %v1279_v52 = vpop.f32.mrb[42].mxu0  ;;  %v1535_v53 = vpop.f32.mrb[42].mxu1 }
 0x154   : > { %v1727_v54 = vmax.f32 %v1277_v48, 0.0  ;;  %v1791_v55 = vmax.f32 %v1533_v49, 0.0  ;;  %v1280_v56 = vadd.f32 %v2712_v57, %v1279_v52  ;;  %v1536_v58 = vadd.f32 %v2712_v57, %v1535_v53  ;;  %v1281_v59 = vpop.f32.mrb[43].mxu0  ;;  %v1537_v60 = vpop.f32.mrb[43].mxu1 }
 0x156   : > { %1856 = vst.msk [vmem:[%s2725_s18 + $0xa0] sm:$0xff] %vm1835_vm1, %v1727_v54  ;;  %1920 = vst.msk [vmem:[%s2725_s18 + $0x2a0] sm:$0xff] %vm1835_vm1, %v1791_v55  ;;  %v1728_v61 = vmax.f32 %v1280_v56, 0.0  ;;  %v1792_v62 = vmax.f32 %v1536_v58, 0.0 }
 0x158   : > { %1857 = vst.msk [vmem:[%s2725_s18 + $0xa8] sm:$0xff] %vm1835_vm1, %v1728_v61  ;;  %1921 = vst.msk [vmem:[%s2725_s18 + $0x2a8] sm:$0xff] %vm1835_vm1, %v1792_v62 }
 0x159   : > { %v1284_v63 = vpop.f32.mrb[44].mxu0  ;;  %v1540_v0 = vpop.f32.mrb[44].mxu1 }
 0x15a   : > { %v1285_v1 = vadd.f32 %v2712_v57, %v1284_v63  ;;  %v1541_v2 = vadd.f32 %v2712_v57, %v1540_v0  ;;  %v1286_v3 = vpop.f32.mrb[45].mxu0  ;;  %v1542_v4 = vpop.f32.mrb[45].mxu1 }
 0x15b   : > { %v1287_v5 = vpop.f32.mrb[46].mxu0  ;;  %v1543_v6 = vpop.f32.mrb[46].mxu1 }
 0x15c   : > { %v1729_v7 = vmax.f32 %v1285_v1, 0.0  ;;  %v1793_v8 = vmax.f32 %v1541_v2, 0.0  ;;  %v1288_v9 = vadd.f32 %v2712_v57, %v1287_v5  ;;  %v1544_v10 = vadd.f32 %v2712_v57, %v1543_v6  ;;  %v1289_v11 = vpop.f32.mrb[47].mxu0  ;;  %v1545_v12 = vpop.f32.mrb[47].mxu1 }
 0x15e   : > { %1858 = vst.msk [vmem:[%s2725_s18 + $0xb0] sm:$0xff] %vm1835_vm1, %v1729_v7  ;;  %1922 = vst.msk [vmem:[%s2725_s18 + $0x2b0] sm:$0xff] %vm1835_vm1, %v1793_v8  ;;  %v1730_v13 = vmax.f32 %v1288_v9, 0.0  ;;  %v1794_v14 = vmax.f32 %v1544_v10, 0.0 }
 0x160   : > { %1859 = vst.msk [vmem:[%s2725_s18 + $0xb8] sm:$0xff] %vm1835_vm1, %v1730_v13  ;;  %1923 = vst.msk [vmem:[%s2725_s18 + $0x2b8] sm:$0xff] %vm1835_vm1, %v1794_v14 }
 0x161   : > { %v1292_v15 = vpop.f32.mrb[48].mxu0  ;;  %v1548_v16 = vpop.f32.mrb[48].mxu1 }
 0x162   : > { %v1293_v17 = vadd.f32 %v2712_v57, %v1292_v15  ;;  %v1549_v18 = vadd.f32 %v2712_v57, %v1548_v16  ;;  %v1294_v19 = vpop.f32.mrb[49].mxu0  ;;  %v1550_v20 = vpop.f32.mrb[49].mxu1 }
 0x163   : > { %v1295_v21 = vpop.f32.mrb[50].mxu0  ;;  %v1551_v22 = vpop.f32.mrb[50].mxu1 }
 0x164   : > { %v1731_v23 = vmax.f32 %v1293_v17, 0.0  ;;  %v1795_v24 = vmax.f32 %v1549_v18, 0.0  ;;  %v1296_v25 = vadd.f32 %v2712_v57, %v1295_v21  ;;  %v1552_v26 = vadd.f32 %v2712_v57, %v1551_v22  ;;  %v1297_v27 = vpop.f32.mrb[51].mxu0  ;;  %v1553_v28 = vpop.f32.mrb[51].mxu1 }
 0x166   : > { %1860 = vst.msk [vmem:[%s2725_s18 + $0xc0] sm:$0xff] %vm1835_vm1, %v1731_v23  ;;  %1924 = vst.msk [vmem:[%s2725_s18 + $0x2c0] sm:$0xff] %vm1835_vm1, %v1795_v24  ;;  %v1732_v29 = vmax.f32 %v1296_v25, 0.0  ;;  %v1796_v30 = vmax.f32 %v1552_v26, 0.0 }
 0x168   : > { %1861 = vst.msk [vmem:[%s2725_s18 + $0xc8] sm:$0xff] %vm1835_vm1, %v1732_v29  ;;  %1925 = vst.msk [vmem:[%s2725_s18 + $0x2c8] sm:$0xff] %vm1835_vm1, %v1796_v30 }
 0x169   : > { %v1300_v31 = vpop.f32.mrb[52].mxu0  ;;  %v1556_v32 = vpop.f32.mrb[52].mxu1 }
 0x16a   : > { %v1301_v33 = vadd.f32 %v2712_v57, %v1300_v31  ;;  %v1557_v34 = vadd.f32 %v2712_v57, %v1556_v32  ;;  %v1302_v35 = vpop.f32.mrb[53].mxu0  ;;  %v1558_v36 = vpop.f32.mrb[53].mxu1 }
 0x16b   : > { %v1303_v37 = vpop.f32.mrb[54].mxu0  ;;  %v1559_v38 = vpop.f32.mrb[54].mxu1 }
 0x16c   : > { %v1733_v39 = vmax.f32 %v1301_v33, 0.0  ;;  %v1797_v40 = vmax.f32 %v1557_v34, 0.0  ;;  %v1304_v41 = vadd.f32 %v2712_v57, %v1303_v37  ;;  %v1560_v42 = vadd.f32 %v2712_v57, %v1559_v38  ;;  %v1305_v43 = vpop.f32.mrb[55].mxu0  ;;  %v1561_v44 = vpop.f32.mrb[55].mxu1 }
 0x16e   : > { %1862 = vst.msk [vmem:[%s2725_s18 + $0xd0] sm:$0xff] %vm1835_vm1, %v1733_v39  ;;  %1926 = vst.msk [vmem:[%s2725_s18 + $0x2d0] sm:$0xff] %vm1835_vm1, %v1797_v40  ;;  %v1734_v45 = vmax.f32 %v1304_v41, 0.0  ;;  %v1798_v46 = vmax.f32 %v1560_v42, 0.0 }
 0x170   : > { %1863 = vst.msk [vmem:[%s2725_s18 + $0xd8] sm:$0xff] %vm1835_vm1, %v1734_v45  ;;  %1927 = vst.msk [vmem:[%s2725_s18 + $0x2d8] sm:$0xff] %vm1835_vm1, %v1798_v46 }
 0x171   : > { %v1308_v47 = vpop.f32.mrb[56].mxu0  ;;  %v1564_v48 = vpop.f32.mrb[56].mxu1 }
 0x172   : > { %v1309_v49 = vadd.f32 %v2712_v57, %v1308_v47  ;;  %v1565_v50 = vadd.f32 %v2712_v57, %v1564_v48  ;;  %v1310_v51 = vpop.f32.mrb[57].mxu0  ;;  %v1566_v52 = vpop.f32.mrb[57].mxu1 }
 0x173   : > { %v1311_v53 = vpop.f32.mrb[58].mxu0  ;;  %v1567_v54 = vpop.f32.mrb[58].mxu1 }
 0x174   : > { %v1735_v55 = vmax.f32 %v1309_v49, 0.0  ;;  %v1799_v56 = vmax.f32 %v1565_v50, 0.0  ;;  %v1312_v58 = vadd.f32 %v2712_v57, %v1311_v53  ;;  %v1568_v59 = vadd.f32 %v2712_v57, %v1567_v54  ;;  %v1313_v60 = vpop.f32.mrb[59].mxu0  ;;  %v1569_v61 = vpop.f32.mrb[59].mxu1 }
 0x176   : > { %1864 = vst.msk [vmem:[%s2725_s18 + $0xe0] sm:$0xff] %vm1835_vm1, %v1735_v55  ;;  %1928 = vst.msk [vmem:[%s2725_s18 + $0x2e0] sm:$0xff] %vm1835_vm1, %v1799_v56  ;;  %v1736_v62 = vmax.f32 %v1312_v58, 0.0  ;;  %v1800_v63 = vmax.f32 %v1568_v59, 0.0 }
 0x178   : > { %1865 = vst.msk [vmem:[%s2725_s18 + $0xe8] sm:$0xff] %vm1835_vm1, %v1736_v62  ;;  %1929 = vst.msk [vmem:[%s2725_s18 + $0x2e8] sm:$0xff] %vm1835_vm1, %v1800_v63 }
 0x179   : > { %v1316_v0 = vpop.f32.mrb[60].mxu0  ;;  %v1572_v1 = vpop.f32.mrb[60].mxu1 }
 0x17a   : > { %v1317_v2 = vadd.f32 %v2712_v57, %v1316_v0  ;;  %v1573_v3 = vadd.f32 %v2712_v57, %v1572_v1  ;;  %v1318_v4 = vpop.f32.mrb[61].mxu0  ;;  %v1574_v5 = vpop.f32.mrb[61].mxu1 }
 0x17b   : > { %v1319_v6 = vpop.f32.mrb[62].mxu0  ;;  %v1575_v7 = vpop.f32.mrb[62].mxu1 }
 0x17c   : > { %v1737_v8 = vmax.f32 %v1317_v2, 0.0  ;;  %v1801_v9 = vmax.f32 %v1573_v3, 0.0  ;;  %v1320_v10 = vadd.f32 %v2712_v57, %v1319_v6  ;;  %v1576_v11 = vadd.f32 %v2712_v57, %v1575_v7  ;;  %v1321_v12 = vpop.f32.mrb[63].mxu0  ;;  %v1577_v13 = vpop.f32.mrb[63].mxu1 }
 0x17e   : > { %1866 = vst.msk [vmem:[%s2725_s18 + $0xf0] sm:$0xff] %vm1835_vm1, %v1737_v8  ;;  %1930 = vst.msk [vmem:[%s2725_s18 + $0x2f0] sm:$0xff] %vm1835_vm1, %v1801_v9  ;;  %v1738_v14 = vmax.f32 %v1320_v10, 0.0  ;;  %v1802_v15 = vmax.f32 %v1576_v11, 0.0 }
 0x180   : > { %1867 = vst.msk [vmem:[%s2725_s18 + $0xf8] sm:$0xff] %vm1835_vm1, %v1738_v14  ;;  %1931 = vst.msk [vmem:[%s2725_s18 + $0x2f8] sm:$0xff] %vm1835_vm1, %v1802_v15 }
 0x181   : > { %v1324_v16 = vpop.f32.mrb[64].mxu0  ;;  %v1580_v17 = vpop.f32.mrb[64].mxu1 }
 0x182   : > { %v1325_v18 = vadd.f32 %v2712_v57, %v1324_v16  ;;  %v1581_v19 = vadd.f32 %v2712_v57, %v1580_v17  ;;  %v1326_v20 = vpop.f32.mrb[65].mxu0  ;;  %v1582_v21 = vpop.f32.mrb[65].mxu1 }
 0x183   : > { %v1327_v22 = vpop.f32.mrb[66].mxu0  ;;  %v1583_v23 = vpop.f32.mrb[66].mxu1 }
 0x184   : > { %v1739_v24 = vmax.f32 %v1325_v18, 0.0  ;;  %v1803_v25 = vmax.f32 %v1581_v19, 0.0  ;;  %v1328_v26 = vadd.f32 %v2712_v57, %v1327_v22  ;;  %v1584_v27 = vadd.f32 %v2712_v57, %v1583_v23  ;;  %v1329_v28 = vpop.f32.mrb[67].mxu0  ;;  %v1585_v29 = vpop.f32.mrb[67].mxu1 }
 0x186   : > { %1868 = vst.msk [vmem:[%s2725_s18 + $0x100] sm:$0xff] %vm1835_vm1, %v1739_v24  ;;  %1932 = vst.msk [vmem:[%s2725_s18 + $0x300] sm:$0xff] %vm1835_vm1, %v1803_v25  ;;  %v1740_v30 = vmax.f32 %v1328_v26, 0.0  ;;  %v1804_v31 = vmax.f32 %v1584_v27, 0.0 }
 0x188   : > { %1869 = vst.msk [vmem:[%s2725_s18 + $0x108] sm:$0xff] %vm1835_vm1, %v1740_v30  ;;  %1933 = vst.msk [vmem:[%s2725_s18 + $0x308] sm:$0xff] %vm1835_vm1, %v1804_v31 }
 0x189   : > { %v1332_v32 = vpop.f32.mrb[68].mxu0  ;;  %v1588_v33 = vpop.f32.mrb[68].mxu1 }
 0x18a   : > { %v1333_v34 = vadd.f32 %v2712_v57, %v1332_v32  ;;  %v1589_v35 = vadd.f32 %v2712_v57, %v1588_v33  ;;  %v1334_v36 = vpop.f32.mrb[69].mxu0  ;;  %v1590_v37 = vpop.f32.mrb[69].mxu1 }
 0x18b   : > { %v1335_v38 = vpop.f32.mrb[70].mxu0  ;;  %v1591_v39 = vpop.f32.mrb[70].mxu1 }
 0x18c   : > { %v1741_v40 = vmax.f32 %v1333_v34, 0.0  ;;  %v1805_v41 = vmax.f32 %v1589_v35, 0.0  ;;  %v1336_v42 = vadd.f32 %v2712_v57, %v1335_v38  ;;  %v1592_v43 = vadd.f32 %v2712_v57, %v1591_v39  ;;  %v1337_v44 = vpop.f32.mrb[71].mxu0  ;;  %v1593_v45 = vpop.f32.mrb[71].mxu1 }
 0x18e   : > { %1870 = vst.msk [vmem:[%s2725_s18 + $0x110] sm:$0xff] %vm1835_vm1, %v1741_v40  ;;  %1934 = vst.msk [vmem:[%s2725_s18 + $0x310] sm:$0xff] %vm1835_vm1, %v1805_v41  ;;  %v1742_v46 = vmax.f32 %v1336_v42, 0.0  ;;  %v1806_v47 = vmax.f32 %v1592_v43, 0.0 }
 0x190   : > { %1871 = vst.msk [vmem:[%s2725_s18 + $0x118] sm:$0xff] %vm1835_vm1, %v1742_v46  ;;  %1935 = vst.msk [vmem:[%s2725_s18 + $0x318] sm:$0xff] %vm1835_vm1, %v1806_v47 }
 0x191   : > { %v1340_v48 = vpop.f32.mrb[72].mxu0  ;;  %v1596_v49 = vpop.f32.mrb[72].mxu1 }
 0x192   : > { %v1341_v50 = vadd.f32 %v2712_v57, %v1340_v48  ;;  %v1597_v51 = vadd.f32 %v2712_v57, %v1596_v49  ;;  %v1342_v52 = vpop.f32.mrb[73].mxu0  ;;  %v1598_v53 = vpop.f32.mrb[73].mxu1 }
 0x193   : > { %v1343_v54 = vpop.f32.mrb[74].mxu0  ;;  %v1599_v55 = vpop.f32.mrb[74].mxu1 }
 0x194   : > { %v1743_v56 = vmax.f32 %v1341_v50, 0.0  ;;  %v1807_v58 = vmax.f32 %v1597_v51, 0.0  ;;  %v1344_v59 = vadd.f32 %v2712_v57, %v1343_v54  ;;  %v1600_v60 = vadd.f32 %v2712_v57, %v1599_v55  ;;  %v1345_v61 = vpop.f32.mrb[75].mxu0  ;;  %v1601_v62 = vpop.f32.mrb[75].mxu1 }
 0x196   : > { %1872 = vst.msk [vmem:[%s2725_s18 + $0x120] sm:$0xff] %vm1835_vm1, %v1743_v56  ;;  %1936 = vst.msk [vmem:[%s2725_s18 + $0x320] sm:$0xff] %vm1835_vm1, %v1807_v58  ;;  %v1744_v63 = vmax.f32 %v1344_v59, 0.0  ;;  %v1808_v0 = vmax.f32 %v1600_v60, 0.0 }
 0x198   : > { %1873 = vst.msk [vmem:[%s2725_s18 + $0x128] sm:$0xff] %vm1835_vm1, %v1744_v63  ;;  %1937 = vst.msk [vmem:[%s2725_s18 + $0x328] sm:$0xff] %vm1835_vm1, %v1808_v0 }
 0x199   : > { %v1348_v1 = vpop.f32.mrb[76].mxu0  ;;  %v1604_v2 = vpop.f32.mrb[76].mxu1 }
 0x19a   : > { %v1349_v3 = vadd.f32 %v2712_v57, %v1348_v1  ;;  %v1605_v4 = vadd.f32 %v2712_v57, %v1604_v2  ;;  %v1350_v5 = vpop.f32.mrb[77].mxu0  ;;  %v1606_v6 = vpop.f32.mrb[77].mxu1 }
 0x19b   : > { %v1351_v7 = vpop.f32.mrb[78].mxu0  ;;  %v1607_v8 = vpop.f32.mrb[78].mxu1 }
 0x19c   : > { %v1745_v9 = vmax.f32 %v1349_v3, 0.0  ;;  %v1809_v10 = vmax.f32 %v1605_v4, 0.0  ;;  %v1352_v11 = vadd.f32 %v2712_v57, %v1351_v7  ;;  %v1608_v12 = vadd.f32 %v2712_v57, %v1607_v8  ;;  %v1353_v13 = vpop.f32.mrb[79].mxu0  ;;  %v1609_v14 = vpop.f32.mrb[79].mxu1 }
 0x19d   : > { %v3031_v13 = vld [vmem:[%s3143_s2] ss:$0 sm:$0xff] }
 0x19e   : > { %1874 = vst.msk [vmem:[%s2725_s18 + $0x130] sm:$0xff] %vm1835_vm1, %v1745_v9  ;;  %1938 = vst.msk [vmem:[%s2725_s18 + $0x330] sm:$0xff] %vm1835_vm1, %v1809_v10  ;;  %v1746_v15 = vmax.f32 %v1352_v11, 0.0  ;;  %v1810_v16 = vmax.f32 %v1608_v12, 0.0 }
 0x1a0   : > { %1875 = vst.msk [vmem:[%s2725_s18 + $0x138] sm:$0xff] %vm1835_vm1, %v1746_v15  ;;  %1939 = vst.msk [vmem:[%s2725_s18 + $0x338] sm:$0xff] %vm1835_vm1, %v1810_v16 }
 0x1a1   : > { %v1356_v17 = vpop.f32.mrb[80].mxu0  ;;  %v1612_v18 = vpop.f32.mrb[80].mxu1 }
 0x1a2   : > { %v1357_v19 = vadd.f32 %v2712_v57, %v1356_v17  ;;  %v1613_v20 = vadd.f32 %v2712_v57, %v1612_v18  ;;  %v1358_v21 = vpop.f32.mrb[81].mxu0  ;;  %v1614_v22 = vpop.f32.mrb[81].mxu1 }
 0x1a3   : > { %v1359_v23 = vpop.f32.mrb[82].mxu0  ;;  %v1615_v24 = vpop.f32.mrb[82].mxu1 }
 0x1a4   : > { %v1747_v25 = vmax.f32 %v1357_v19, 0.0  ;;  %v1811_v26 = vmax.f32 %v1613_v20, 0.0  ;;  %v1360_v27 = vadd.f32 %v2712_v57, %v1359_v23  ;;  %v1616_v28 = vadd.f32 %v2712_v57, %v1615_v24  ;;  %v1361_v29 = vpop.f32.mrb[83].mxu0  ;;  %v1617_v30 = vpop.f32.mrb[83].mxu1 }
 0x1a6   : > { %1876 = vst.msk [vmem:[%s2725_s18 + $0x140] sm:$0xff] %vm1835_vm1, %v1747_v25  ;;  %1940 = vst.msk [vmem:[%s2725_s18 + $0x340] sm:$0xff] %vm1835_vm1, %v1811_v26  ;;  %v1748_v31 = vmax.f32 %v1360_v27, 0.0  ;;  %v1812_v32 = vmax.f32 %v1616_v28, 0.0 }
 0x1a8   : > { %1877 = vst.msk [vmem:[%s2725_s18 + $0x148] sm:$0xff] %vm1835_vm1, %v1748_v31  ;;  %1941 = vst.msk [vmem:[%s2725_s18 + $0x348] sm:$0xff] %vm1835_vm1, %v1812_v32 }
 0x1a9   : > { %v1364_v33 = vpop.f32.mrb[84].mxu0  ;;  %v1620_v34 = vpop.f32.mrb[84].mxu1 }
 0x1aa   : > { %v1365_v35 = vadd.f32 %v2712_v57, %v1364_v33  ;;  %v1621_v36 = vadd.f32 %v2712_v57, %v1620_v34  ;;  %v1366_v37 = vpop.f32.mrb[85].mxu0  ;;  %v1622_v38 = vpop.f32.mrb[85].mxu1 }
 0x1ab   : > { %v1367_v39 = vpop.f32.mrb[86].mxu0  ;;  %v1623_v40 = vpop.f32.mrb[86].mxu1 }
 0x1ac   : > { %v1749_v41 = vmax.f32 %v1365_v35, 0.0  ;;  %v1813_v42 = vmax.f32 %v1621_v36, 0.0  ;;  %v1368_v43 = vadd.f32 %v2712_v57, %v1367_v39  ;;  %v1624_v44 = vadd.f32 %v2712_v57, %v1623_v40  ;;  %v1369_v45 = vpop.f32.mrb[87].mxu0  ;;  %v1625_v46 = vpop.f32.mrb[87].mxu1 }
 0x1ae   : > { %1878 = vst.msk [vmem:[%s2725_s18 + $0x150] sm:$0xff] %vm1835_vm1, %v1749_v41  ;;  %1942 = vst.msk [vmem:[%s2725_s18 + $0x350] sm:$0xff] %vm1835_vm1, %v1813_v42  ;;  %v1750_v47 = vmax.f32 %v1368_v43, 0.0  ;;  %v1814_v48 = vmax.f32 %v1624_v44, 0.0 }
 0x1b0   : > { %1879 = vst.msk [vmem:[%s2725_s18 + $0x158] sm:$0xff] %vm1835_vm1, %v1750_v47  ;;  %1943 = vst.msk [vmem:[%s2725_s18 + $0x358] sm:$0xff] %vm1835_vm1, %v1814_v48 }
 0x1b1   : > { %v1372_v49 = vpop.f32.mrb[88].mxu0  ;;  %v1628_v50 = vpop.f32.mrb[88].mxu1 }
 0x1b2   : > { %v1373_v51 = vadd.f32 %v2712_v57, %v1372_v49  ;;  %v1629_v52 = vadd.f32 %v2712_v57, %v1628_v50  ;;  %v1374_v53 = vpop.f32.mrb[89].mxu0  ;;  %v1630_v54 = vpop.f32.mrb[89].mxu1 }
 0x1b3   : > { %v1375_v55 = vpop.f32.mrb[90].mxu0  ;;  %v1631_v56 = vpop.f32.mrb[90].mxu1 }
 0x1b4   : > { %v1751_v58 = vmax.f32 %v1373_v51, 0.0  ;;  %v1815_v59 = vmax.f32 %v1629_v52, 0.0  ;;  %v1376_v60 = vadd.f32 %v2712_v57, %v1375_v55  ;;  %v1632_v61 = vadd.f32 %v2712_v57, %v1631_v56  ;;  %v1377_v62 = vpop.f32.mrb[91].mxu0  ;;  %v1633_v63 = vpop.f32.mrb[91].mxu1 }
 0x1b6   : > { %1880 = vst.msk [vmem:[%s2725_s18 + $0x160] sm:$0xff] %vm1835_vm1, %v1751_v58  ;;  %1944 = vst.msk [vmem:[%s2725_s18 + $0x360] sm:$0xff] %vm1835_vm1, %v1815_v59  ;;  %v1752_v0 = vmax.f32 %v1376_v60, 0.0  ;;  %v1816_v1 = vmax.f32 %v1632_v61, 0.0 }
 0x1b8   : > { %1881 = vst.msk [vmem:[%s2725_s18 + $0x168] sm:$0xff] %vm1835_vm1, %v1752_v0  ;;  %1945 = vst.msk [vmem:[%s2725_s18 + $0x368] sm:$0xff] %vm1835_vm1, %v1816_v1 }
 0x1b9   : > { %v1380_v2 = vpop.f32.mrb[92].mxu0  ;;  %v1636_v3 = vpop.f32.mrb[92].mxu1 }
 0x1ba   : > { %v1381_v4 = vadd.f32 %v2712_v57, %v1380_v2  ;;  %v1637_v5 = vadd.f32 %v2712_v57, %v1636_v3  ;;  %v1382_v6 = vpop.f32.mrb[93].mxu0  ;;  %v1638_v7 = vpop.f32.mrb[93].mxu1 }
 0x1bb   : > { %v1383_v8 = vpop.f32.mrb[94].mxu0  ;;  %v1639_v9 = vpop.f32.mrb[94].mxu1 }
 0x1bc   : > { %v1753_v10 = vmax.f32 %v1381_v4, 0.0  ;;  %v1817_v11 = vmax.f32 %v1637_v5, 0.0  ;;  %v1384_v12 = vadd.f32 %v2712_v57, %v1383_v8  ;;  %v1640_v14 = vadd.f32 %v3031_v13, %v1639_v9  ;;  %v1385_v15 = vpop.f32.mrb[95].mxu0  ;;  %v1641_v16 = vpop.f32.mrb[95].mxu1 }
 0x1be   : > { %1882 = vst.msk [vmem:[%s2725_s18 + $0x170] sm:$0xff] %vm1835_vm1, %v1753_v10  ;;  %1946 = vst.msk [vmem:[%s2725_s18 + $0x370] sm:$0xff] %vm1835_vm1, %v1817_v11  ;;  %v1754_v17 = vmax.f32 %v1384_v12, 0.0  ;;  %v1818_v18 = vmax.f32 %v1640_v14, 0.0 }
 0x1c0   : > { %1883 = vst.msk [vmem:[%s2725_s18 + $0x178] sm:$0xff] %vm1835_vm1, %v1754_v17  ;;  %1947 = vst.msk [vmem:[%s2725_s18 + $0x378] sm:$0xff] %vm1835_vm1, %v1818_v18 }
 0x1c1   : > { %v1388_v57 = vpop.f32.mrb[96].mxu0  ;;  %v1644_v19 = vpop.f32.mrb[96].mxu1 }
 0x1c2   : > { %v1389_v20 = vadd.f32 %v3031_v13, %v1388_v57  ;;  %v1645_v21 = vadd.f32 %v3031_v13, %v1644_v19  ;;  %v1390_v22 = vpop.f32.mrb[97].mxu0  ;;  %v1646_v23 = vpop.f32.mrb[97].mxu1 }
 0x1c3   : > { %v1391_v24 = vpop.f32.mrb[98].mxu0  ;;  %v1647_v25 = vpop.f32.mrb[98].mxu1 }
 0x1c4   : > { %v1755_v26 = vmax.f32 %v1389_v20, 0.0  ;;  %v1819_v27 = vmax.f32 %v1645_v21, 0.0  ;;  %v1392_v28 = vadd.f32 %v3031_v13, %v1391_v24  ;;  %v1648_v29 = vadd.f32 %v3031_v13, %v1647_v25  ;;  %v1393_v30 = vpop.f32.mrb[99].mxu0  ;;  %v1649_v31 = vpop.f32.mrb[99].mxu1 }
 0x1c6   : > { %1884 = vst.msk [vmem:[%s2725_s18 + $0x180] sm:$0xff] %vm1835_vm1, %v1755_v26  ;;  %1948 = vst.msk [vmem:[%s2725_s18 + $0x380] sm:$0xff] %vm1835_vm1, %v1819_v27  ;;  %v1756_v32 = vmax.f32 %v1392_v28, 0.0  ;;  %v1820_v33 = vmax.f32 %v1648_v29, 0.0 }
 0x1c8   : > { %1885 = vst.msk [vmem:[%s2725_s18 + $0x188] sm:$0xff] %vm1835_vm1, %v1756_v32  ;;  %1949 = vst.msk [vmem:[%s2725_s18 + $0x388] sm:$0xff] %vm1835_vm1, %v1820_v33 }
 0x1c9   : > { %v1396_v34 = vpop.f32.mrb[100].mxu0  ;;  %v1652_v35 = vpop.f32.mrb[100].mxu1 }
 0x1ca   : > { %v1397_v36 = vadd.f32 %v3031_v13, %v1396_v34  ;;  %v1653_v37 = vadd.f32 %v3031_v13, %v1652_v35  ;;  %v1398_v38 = vpop.f32.mrb[101].mxu0  ;;  %v1654_v39 = vpop.f32.mrb[101].mxu1 }
 0x1cb   : > { %v1399_v40 = vpop.f32.mrb[102].mxu0  ;;  %v1655_v41 = vpop.f32.mrb[102].mxu1 }
 0x1cc   : > { %v1757_v42 = vmax.f32 %v1397_v36, 0.0  ;;  %v1821_v43 = vmax.f32 %v1653_v37, 0.0  ;;  %v1400_v44 = vadd.f32 %v3031_v13, %v1399_v40  ;;  %v1656_v45 = vadd.f32 %v3031_v13, %v1655_v41  ;;  %v1401_v46 = vpop.f32.mrb[103].mxu0  ;;  %v1657_v47 = vpop.f32.mrb[103].mxu1 }
 0x1ce   : > { %1886 = vst.msk [vmem:[%s2725_s18 + $0x190] sm:$0xff] %vm1835_vm1, %v1757_v42  ;;  %1950 = vst.msk [vmem:[%s2725_s18 + $0x390] sm:$0xff] %vm1835_vm1, %v1821_v43  ;;  %v1758_v48 = vmax.f32 %v1400_v44, 0.0  ;;  %v1822_v49 = vmax.f32 %v1656_v45, 0.0 }
 0x1d0   : > { %1887 = vst.msk [vmem:[%s2725_s18 + $0x198] sm:$0xff] %vm1835_vm1, %v1758_v48  ;;  %1951 = vst.msk [vmem:[%s2725_s18 + $0x398] sm:$0xff] %vm1835_vm1, %v1822_v49 }
 0x1d1   : > { %v1404_v50 = vpop.f32.mrb[104].mxu0  ;;  %v1660_v51 = vpop.f32.mrb[104].mxu1 }
 0x1d2   : > { %v1405_v52 = vadd.f32 %v3031_v13, %v1404_v50  ;;  %v1661_v53 = vadd.f32 %v3031_v13, %v1660_v51  ;;  %v1406_v54 = vpop.f32.mrb[105].mxu0  ;;  %v1662_v55 = vpop.f32.mrb[105].mxu1 }
 0x1d3   : > { %v1407_v56 = vpop.f32.mrb[106].mxu0  ;;  %v1663_v58 = vpop.f32.mrb[106].mxu1 }
 0x1d4   : > { %v1759_v59 = vmax.f32 %v1405_v52, 0.0  ;;  %v1823_v60 = vmax.f32 %v1661_v53, 0.0  ;;  %v1408_v61 = vadd.f32 %v3031_v13, %v1407_v56  ;;  %v1664_v62 = vadd.f32 %v3031_v13, %v1663_v58  ;;  %v1409_v63 = vpop.f32.mrb[107].mxu0  ;;  %v1665_v0 = vpop.f32.mrb[107].mxu1 }
 0x1d6   : > { %1888 = vst.msk [vmem:[%s2725_s18 + $0x1a0] sm:$0xff] %vm1835_vm1, %v1759_v59  ;;  %1952 = vst.msk [vmem:[%s2725_s18 + $0x3a0] sm:$0xff] %vm1835_vm1, %v1823_v60  ;;  %v1760_v1 = vmax.f32 %v1408_v61, 0.0  ;;  %v1824_v2 = vmax.f32 %v1664_v62, 0.0 }
 0x1d8   : > { %1889 = vst.msk [vmem:[%s2725_s18 + $0x1a8] sm:$0xff] %vm1835_vm1, %v1760_v1  ;;  %1953 = vst.msk [vmem:[%s2725_s18 + $0x3a8] sm:$0xff] %vm1835_vm1, %v1824_v2 }
 0x1d9   : > { %v1412_v3 = vpop.f32.mrb[108].mxu0  ;;  %v1668_v4 = vpop.f32.mrb[108].mxu1 }
 0x1da   : > { %v1413_v5 = vadd.f32 %v3031_v13, %v1412_v3  ;;  %v1669_v6 = vadd.f32 %v3031_v13, %v1668_v4  ;;  %v1414_v7 = vpop.f32.mrb[109].mxu0  ;;  %v1670_v8 = vpop.f32.mrb[109].mxu1 }
 0x1db   : > { %v1415_v9 = vpop.f32.mrb[110].mxu0  ;;  %v1671_v10 = vpop.f32.mrb[110].mxu1 }
 0x1dc   : > { %v1761_v11 = vmax.f32 %v1413_v5, 0.0  ;;  %v1825_v12 = vmax.f32 %v1669_v6, 0.0  ;;  %v1416_v14 = vadd.f32 %v3031_v13, %v1415_v9  ;;  %v1672_v15 = vadd.f32 %v3031_v13, %v1671_v10  ;;  %v1417_v16 = vpop.f32.mrb[111].mxu0  ;;  %v1673_v17 = vpop.f32.mrb[111].mxu1 }
 0x1de   : > { %1890 = vst.msk [vmem:[%s2725_s18 + $0x1b0] sm:$0xff] %vm1835_vm1, %v1761_v11  ;;  %1954 = vst.msk [vmem:[%s2725_s18 + $0x3b0] sm:$0xff] %vm1835_vm1, %v1825_v12  ;;  %v1762_v18 = vmax.f32 %v1416_v14, 0.0  ;;  %v1826_v57 = vmax.f32 %v1672_v15, 0.0 }
 0x1e0   : > { %1891 = vst.msk [vmem:[%s2725_s18 + $0x1b8] sm:$0xff] %vm1835_vm1, %v1762_v18  ;;  %1955 = vst.msk [vmem:[%s2725_s18 + $0x3b8] sm:$0xff] %vm1835_vm1, %v1826_v57 }
 0x1e1   : > { %v1420_v19 = vpop.f32.mrb[112].mxu0  ;;  %v1676_v20 = vpop.f32.mrb[112].mxu1 }
 0x1e2   : > { %v1421_v21 = vadd.f32 %v3031_v13, %v1420_v19  ;;  %v1677_v22 = vadd.f32 %v3031_v13, %v1676_v20  ;;  %v1422_v23 = vpop.f32.mrb[113].mxu0  ;;  %v1678_v24 = vpop.f32.mrb[113].mxu1 }
 0x1e3   : > { %v1423_v25 = vpop.f32.mrb[114].mxu0  ;;  %v1679_v26 = vpop.f32.mrb[114].mxu1 }
 0x1e4   : > { %v1763_v27 = vmax.f32 %v1421_v21, 0.0  ;;  %v1827_v28 = vmax.f32 %v1677_v22, 0.0  ;;  %v1424_v29 = vadd.f32 %v3031_v13, %v1423_v25  ;;  %v1680_v30 = vadd.f32 %v3031_v13, %v1679_v26  ;;  %v1425_v31 = vpop.f32.mrb[115].mxu0  ;;  %v1681_v32 = vpop.f32.mrb[115].mxu1 }
 0x1e6   : > { %1892 = vst.msk [vmem:[%s2725_s18 + $0x1c0] sm:$0xff] %vm1835_vm1, %v1763_v27  ;;  %1956 = vst.msk [vmem:[%s2725_s18 + $0x3c0] sm:$0xff] %vm1835_vm1, %v1827_v28  ;;  %v1764_v33 = vmax.f32 %v1424_v29, 0.0  ;;  %v1828_v34 = vmax.f32 %v1680_v30, 0.0 }
 0x1e8   : > { %1893 = vst.msk [vmem:[%s2725_s18 + $0x1c8] sm:$0xff] %vm1835_vm1, %v1764_v33  ;;  %1957 = vst.msk [vmem:[%s2725_s18 + $0x3c8] sm:$0xff] %vm1835_vm1, %v1828_v34 }
 0x1e9   : > { %v1428_v35 = vpop.f32.mrb[116].mxu0  ;;  %v1684_v36 = vpop.f32.mrb[116].mxu1 }
 0x1ea   : > { %v1429_v37 = vadd.f32 %v3031_v13, %v1428_v35  ;;  %v1685_v38 = vadd.f32 %v3031_v13, %v1684_v36  ;;  %v1430_v39 = vpop.f32.mrb[117].mxu0  ;;  %v1686_v40 = vpop.f32.mrb[117].mxu1 }
 0x1eb   : > { %v1431_v41 = vpop.f32.mrb[118].mxu0  ;;  %v1687_v42 = vpop.f32.mrb[118].mxu1 }
 0x1ec   : > { %v1765_v43 = vmax.f32 %v1429_v37, 0.0  ;;  %v1829_v44 = vmax.f32 %v1685_v38, 0.0  ;;  %v1432_v45 = vadd.f32 %v3031_v13, %v1431_v41  ;;  %v1688_v46 = vadd.f32 %v3031_v13, %v1687_v42  ;;  %v1433_v47 = vpop.f32.mrb[119].mxu0  ;;  %v1689_v48 = vpop.f32.mrb[119].mxu1 }
 0x1ee   : > { %1894 = vst.msk [vmem:[%s2725_s18 + $0x1d0] sm:$0xff] %vm1835_vm1, %v1765_v43  ;;  %1958 = vst.msk [vmem:[%s2725_s18 + $0x3d0] sm:$0xff] %vm1835_vm1, %v1829_v44  ;;  %v1766_v49 = vmax.f32 %v1432_v45, 0.0  ;;  %v1830_v50 = vmax.f32 %v1688_v46, 0.0 }
 0x1f0   : > { %1895 = vst.msk [vmem:[%s2725_s18 + $0x1d8] sm:$0xff] %vm1835_vm1, %v1766_v49  ;;  %1959 = vst.msk [vmem:[%s2725_s18 + $0x3d8] sm:$0xff] %vm1835_vm1, %v1830_v50 }
 0x1f1   : > { %v1436_v51 = vpop.f32.mrb[120].mxu0  ;;  %v1692_v52 = vpop.f32.mrb[120].mxu1 }
 0x1f2   : > { %v1437_v53 = vadd.f32 %v3031_v13, %v1436_v51  ;;  %v1693_v54 = vadd.f32 %v3031_v13, %v1692_v52  ;;  %v1438_v55 = vpop.f32.mrb[121].mxu0  ;;  %v1694_v56 = vpop.f32.mrb[121].mxu1 }
 0x1f3   : > { %v1439_v58 = vpop.f32.mrb[122].mxu0  ;;  %v1695_v59 = vpop.f32.mrb[122].mxu1 }
 0x1f4   : > { %v1767_v60 = vmax.f32 %v1437_v53, 0.0  ;;  %v1831_v61 = vmax.f32 %v1693_v54, 0.0  ;;  %v1440_v62 = vadd.f32 %v3031_v13, %v1439_v58  ;;  %v1696_v63 = vadd.f32 %v3031_v13, %v1695_v59  ;;  %v1441_v0 = vpop.f32.mrb[123].mxu0  ;;  %v1697_v1 = vpop.f32.mrb[123].mxu1 }
 0x1f6   : > { %1896 = vst.msk [vmem:[%s2725_s18 + $0x1e0] sm:$0xff] %vm1835_vm1, %v1767_v60  ;;  %1960 = vst.msk [vmem:[%s2725_s18 + $0x3e0] sm:$0xff] %vm1835_vm1, %v1831_v61  ;;  %v1768_v2 = vmax.f32 %v1440_v62, 0.0  ;;  %v1832_v3 = vmax.f32 %v1696_v63, 0.0 }
 0x1f8   : > { %1897 = vst.msk [vmem:[%s2725_s18 + $0x1e8] sm:$0xff] %vm1835_vm1, %v1768_v2  ;;  %1961 = vst.msk [vmem:[%s2725_s18 + $0x3e8] sm:$0xff] %vm1835_vm1, %v1832_v3 }
 0x1f9   : > { %v1444_v4 = vpop.f32.mrb[124].mxu0  ;;  %v1700_v5 = vpop.f32.mrb[124].mxu1 }
 0x1fa   : > { %v1445_v6 = vadd.f32 %v3031_v13, %v1444_v4  ;;  %v1701_v7 = vadd.f32 %v3031_v13, %v1700_v5  ;;  %v1446_v8 = vpop.f32.mrb[125].mxu0  ;;  %v1702_v9 = vpop.f32.mrb[125].mxu1 }
 0x1fb   : > { %v1447_v10 = vpop.f32.mrb[126].mxu0  ;;  %v1703_v11 = vpop.f32.mrb[126].mxu1 }
 0x1fc   : > { %v1769_v12 = vmax.f32 %v1445_v6, 0.0  ;;  %v1833_v14 = vmax.f32 %v1701_v7, 0.0  ;;  %v1448_v15 = vadd.f32 %v3031_v13, %v1447_v10  ;;  %v1704_v16 = vadd.f32 %v3031_v13, %v1703_v11  ;;  %v1449_v17 = vpop.f32.mrb[127].mxu0  ;;  %v1705_v18 = vpop.f32.mrb[127].mxu1 }
 0x1fe   : > { %1898 = vst.msk [vmem:[%s2725_s18 + $0x1f0] sm:$0xff] %vm1835_vm1, %v1769_v12  ;;  %1962 = vst.msk [vmem:[%s2725_s18 + $0x3f0] sm:$0xff] %vm1835_vm1, %v1833_v14  ;;  %v1770_v57 = vmax.f32 %v1448_v15, 0.0  ;;  %v1834_v19 = vmax.f32 %v1704_v16, 0.0 }
 0x200   : > { %1899 = vst.msk [vmem:[%s2725_s18 + $0x1f8] sm:$0xff] %vm1835_vm1, %v1770_v57  ;;  %1963 = vst.msk [vmem:[%s2725_s18 + $0x3f8] sm:$0xff] %vm1835_vm1, %v1834_v19 }
 0x201 PF: > { %s13_s12 = sadd.s32 1, %s2474_s12  }
 0x202   : > { %p10_p4 = scmp.ge.s32.totalorder %s13_s12, 22  }
 0x204   :  { %12 = sbr.rel (!%p10_p4) target bundleno = 1 (0x1), region = 62 }

</bundles_post_ra>
